<compile_context>
chip_gen: v7x
topology: tpu7x:2x2x1
jax: 0.10.0
libtpu: 0.0.40
codegen_flags: <defaults>
</compile_context>

<pallas_src>
import functools
import math

import jax
import jax.numpy as jnp
from jax.experimental import pallas as pl
from jax.experimental.pallas import tpu as pltpu


# --------------------------------------------------------------------------
# BlockSpec helpers
# --------------------------------------------------------------------------

def _const_spec(shape):
    """Whole-array block, same block for every grid step (DMA'd once)."""
    nd = len(shape)
    return pl.BlockSpec(shape, lambda l, _nd=nd: (0,) * _nd)


def _layer_spec(shape):
    """Leading dim is the layer axis; block l is prefetched for grid step l."""
    nd = len(shape)
    return pl.BlockSpec((1,) + tuple(shape[1:]),
                        lambda l, _nd=nd: (l,) + (0,) * (_nd - 1))


# --------------------------------------------------------------------------
# fully fused forward kernel (grid = (num_layers,))
# --------------------------------------------------------------------------

def _mfs_fused_kernel(x_ref, emb_w_ref, emb_b_ref, pe_ref,
                      in_w_ref, in_b_ref, out_w_ref, out_b_ref,
                      ln1_g_ref, ln1_b_ref, w1_ref, b1_ref,
                      w2_ref, b2_ref, ln2_g_ref, ln2_b_ref,
                      pw1_ref, pb1_ref, pw2_ref, pb2_ref, pw3_ref, pb3_ref,
                      o_ref,
                      h_ref, qkv_ref, attn_ref,
                      *, d0, d1, num_heads, eps):
    """One grid step = one nn.TransformerEncoderLayer (batch_first, post-norm,
    ReLU FFN, inference dropout = identity).  Step 0 additionally does the
    embedding Linear + PositionalEncoding; the last step additionally runs the
    audio_logits_predictor MLP.  h_ref is the (d0*d1, E) token slab kept
    resident in VMEM across all layers (row index = b*d1 + s)."""
    layer = pl.program_id(0)

    # ---- prologue (layer 0): embedding Linear + PositionalEncoding add ----
    @pl.when(layer == 0)
    def _():
        h_ref[...] = (jnp.dot(x_ref[...], emb_w_ref[...],
                              preferred_element_type=jnp.float32)
                      + emb_b_ref[...] + pe_ref[...])

    E = h_ref.shape[-1]
    Dh = E // num_heads
    scale = 1.0 / math.sqrt(Dh)

    x = h_ref[...]                                        # (B*S, E) residual input

    # ---- fused QKV projection: one MXU matmul for all tokens & heads ----
    qkv_ref[...] = (jnp.dot(x, in_w_ref[0], preferred_element_type=jnp.float32)
                    + in_b_ref[0])

    # ---- multi-head self-attention (all intermediates stay in VMEM scratch) ----
    # TODO(synk): src_key_padding_mask unsupported; the reference MFSLabeler forward
    # builds src_mask but never passes it to the encoder, so no masking is applied.
    for b in range(d0):
        r0 = b * d1
        for h in range(num_heads):
            c0 = h * Dh
            q = qkv_ref[r0:r0 + d1, c0:c0 + Dh]                       # (d1, Dh)
            k = qkv_ref[r0:r0 + d1, E + c0:E + c0 + Dh]
            v = qkv_ref[r0:r0 + d1, 2 * E + c0:2 * E + c0 + Dh]
            # q @ k^T via dot_general contracting last dims (no explicit transpose)
            s = jax.lax.dot_general(q, k, (((1,), (1,)), ((), ())),
                                    preferred_element_type=jnp.float32) * scale
            s = s - jnp.max(s, axis=-1, keepdims=True)
            p = jnp.exp(s)
            p = p * pl.reciprocal(jnp.sum(p, axis=-1, keepdims=True), approx=True)
            attn_ref[r0:r0 + d1, c0:c0 + Dh] = jnp.dot(
                p, v, preferred_element_type=jnp.float32)

    # ---- output projection + residual + LayerNorm 1 ----
    a = (jnp.dot(attn_ref[...], out_w_ref[0], preferred_element_type=jnp.float32)
         + out_b_ref[0])
    h1 = x + a
    mu = jnp.mean(h1, axis=-1, keepdims=True)
    var = jnp.mean(jnp.square(h1 - mu), axis=-1, keepdims=True)
    h1 = (h1 - mu) * jax.lax.rsqrt(var + eps) * ln1_g_ref[0] + ln1_b_ref[0]

    # ---- feed-forward (ReLU) + residual + LayerNorm 2 ----
    f = jnp.maximum(
        jnp.dot(h1, w1_ref[0], preferred_element_type=jnp.float32) + b1_ref[0], 0.0)
    f = jnp.dot(f, w2_ref[0], preferred_element_type=jnp.float32) + b2_ref[0]
    h2 = h1 + f
    mu = jnp.mean(h2, axis=-1, keepdims=True)
    var = jnp.mean(jnp.square(h2 - mu), axis=-1, keepdims=True)
    h2 = (h2 - mu) * jax.lax.rsqrt(var + eps) * ln2_g_ref[0] + ln2_b_ref[0]

    h_ref[...] = h2                                        # carry to next layer

    # ---- epilogue (last layer): fused Linear-ReLU-Linear-ReLU-Linear ----
    @pl.when(layer == pl.num_programs(0) - 1)
    def _():
        z = jnp.maximum(
            jnp.dot(h2, pw1_ref[...], preferred_element_type=jnp.float32)
            + pb1_ref[...], 0.0)
        z = jnp.maximum(
            jnp.dot(z, pw2_ref[...], preferred_element_type=jnp.float32)
            + pb2_ref[...], 0.0)
        o_ref[...] = (jnp.dot(z, pw3_ref[...], preferred_element_type=jnp.float32)
                      + pb3_ref[...]).astype(o_ref.dtype)


# --------------------------------------------------------------------------
# forward pass
# --------------------------------------------------------------------------

def mfs_labeler_forward(params, x, audio_embeddings, y=None, lengths=None,
                        *, num_heads, eval_mode=False, eps=1e-5):
    """MFSLabeler.forward (recurrent_encoder=True, get_predictions=False)."""
    # TODO(synk): self.joints_embed (gcns_model) + joints_encoder branch omitted — the
    # gcns model is an external module not defined in the spec and its output never
    # reaches the returned s_audio.
    del x, y, lengths
    N, S, A = audio_embeddings.shape
    enc = params["audio_encoder"]
    pred = params["audio_logits_predictor"]
    ly = enc["layers"]                       # dict of layer-stacked arrays (L, ...)
    L = ly["in_w"].shape[0]
    E = enc["emb_w"].shape[1]
    C = pred["w3"].shape[1]

    # .permute(1, 0, 2): encoder is batch_first, so d0 = S ("batch"), d1 = N ("seq")
    d0, d1 = S, N
    rows = d0 * d1
    ae2d = jnp.transpose(audio_embeddings, (1, 0, 2)).reshape(rows, A)
    # PE indexed by the first dim (d0) and broadcast over the second (d1)
    pe_rows = jnp.repeat(enc["pe"][:d0, 0, :], d1, axis=0)            # (rows, E)

    args = (ae2d, enc["emb_w"], enc["emb_b"], pe_rows,
            ly["in_w"], ly["in_b"], ly["out_w"], ly["out_b"],
            ly["ln1_g"], ly["ln1_b"], ly["w1"], ly["b1"],
            ly["w2"], ly["b2"], ly["ln2_g"], ly["ln2_b"],
            pred["w1"], pred["b1"], pred["w2"], pred["b2"],
            pred["w3"], pred["b3"])
    const_idx = {0, 1, 2, 3, 16, 17, 18, 19, 20, 21}
    in_specs = [(_const_spec(a.shape) if i in const_idx else _layer_spec(a.shape))
                for i, a in enumerate(args)]

    kern = functools.partial(_mfs_fused_kernel, d0=d0, d1=d1,
                             num_heads=num_heads, eps=eps)

    out2d = pl.pallas_call(
        kern,
        out_shape=jax.ShapeDtypeStruct((rows, C), jnp.float32),
        grid_spec=pltpu.PrefetchScalarGridSpec(
            num_scalar_prefetch=0,
            grid=(L,),
            in_specs=in_specs,
            out_specs=_const_spec((rows, C)),
            scratch_shapes=[
                pltpu.VMEM((rows, E), jnp.float32),        # activations (persist)
                pltpu.VMEM((rows, 3 * E), jnp.float32),    # fused QKV
                pltpu.VMEM((rows, E), jnp.float32),        # attention output
            ]),
        compiler_params=pltpu.CompilerParams(
            dimension_semantics=("arbitrary",)),           # layers are sequential
    )(*args)

    # undo the permute: (S*N, C) -> (S, N, C) -> (N, S, C)
    s_audio = jnp.transpose(out2d.reshape(d0, d1, C), (1, 0, 2))
    if eval_mode:                       # td.Categorical(logits=s_audio).probs
        return jax.nn.softmax(s_audio, axis=-1)
    return s_audio


# --------------------------------------------------------------------------
# parameter initialization (matches the reference init schemes)
# --------------------------------------------------------------------------

def _xavier_uniform(key, fan_in, fan_out):
    limit = math.sqrt(6.0 / (fan_in + fan_out))
    return jax.random.uniform(key, (fan_in, fan_out), jnp.float32, -limit, limit)


def init_encoder_params(key, input_dim, embed_dim, num_heads, num_layers, max_len=100):
    assert embed_dim % num_heads == 0
    dff = 4 * embed_dim
    keys = jax.random.split(key, 1 + 4 * num_layers)

    enc = {"emb_w": _xavier_uniform(keys[0], input_dim, embed_dim),
           "emb_b": jnp.zeros((1, embed_dim), jnp.float32)}

    # PositionalEncoding buffer (same construction as the PyTorch module)
    position = jnp.arange(max_len, dtype=jnp.float32)[:, None]
    div_term = jnp.exp(jnp.arange(0, embed_dim, 2, dtype=jnp.float32)
                       * (-math.log(10000.0) / embed_dim))
    pe = jnp.zeros((max_len, 1, embed_dim), jnp.float32)
    pe = pe.at[:, 0, 0::2].set(jnp.sin(position * div_term))
    pe = pe.at[:, 0, 1::2].set(jnp.cos(position * div_term))
    enc["pe"] = pe

    per_layer = []
    for l in range(num_layers):
        k = keys[1 + 4 * l: 1 + 4 * (l + 1)]
        per_layer.append(dict(
            in_w=_xavier_uniform(k[0], embed_dim, 3 * embed_dim),      # fused qkv proj
            in_b=jnp.zeros((1, 3 * embed_dim), jnp.float32),
            out_w=_xavier_uniform(k[1], embed_dim, embed_dim),
            out_b=jnp.zeros((1, embed_dim), jnp.float32),
            ln1_g=jnp.ones((1, embed_dim), jnp.float32),
            ln1_b=jnp.zeros((1, embed_dim), jnp.float32),
            w1=_xavier_uniform(k[2], embed_dim, dff),
            b1=jnp.zeros((1, dff), jnp.float32),
            w2=_xavier_uniform(k[3], dff, embed_dim),
            b2=jnp.zeros((1, embed_dim), jnp.float32),
            ln2_g=jnp.ones((1, embed_dim), jnp.float32),
            ln2_b=jnp.zeros((1, embed_dim), jnp.float32),
        ))
    # stack every per-layer tensor along a leading layer axis so the fused kernel
    # can block-index (and pipeline-prefetch) them by the grid's layer index
    enc["layers"] = {name: jnp.stack([lp[name] for lp in per_layer])
                     for name in per_layer[0]}
    return enc


def init_params(key, audio_embed_dim, embed_dim, num_heads, num_layers,
                hidden_size, num_classes):
    # On the recurrent_encoder path the predictor (built with input=audio_embed_dim)
    # consumes the encoder output (embed_dim wide) -> requires equality, as in the
    # reference construction.
    assert audio_embed_dim == embed_dim
    k_enc, k1, k2, k3 = jax.random.split(key, 4)
    std = math.sqrt(2.0 / hidden_size)            # nn.init.normal_(w, 0, sqrt(2/hidden))
    pred = dict(
        w1=std * jax.random.normal(k1, (audio_embed_dim, 2 * hidden_size), jnp.float32),
        b1=jnp.zeros((1, 2 * hidden_size), jnp.float32),
        w2=std * jax.random.normal(k2, (2 * hidden_size, hidden_size), jnp.float32),
        b2=jnp.zeros((1, hidden_size), jnp.float32),
        w3=std * jax.random.normal(k3, (hidden_size, num_classes), jnp.float32),
        b3=jnp.zeros((1, num_classes), jnp.float32),
    )
    return {"audio_encoder": init_encoder_params(k_enc, audio_embed_dim, embed_dim,
                                                 num_heads, num_layers),
            "audio_logits_predictor": pred}


# --------------------------------------------------------------------------
# demo
# --------------------------------------------------------------------------

if __name__ == "__main__":
    # Small shapes consistent with the module (scaled down from
    # audio_embed_dim = embed_dim = 512, nhead = 8, num_layers = 6, hidden = 128):
    N, S = 2, 8                        # batch, sequence length
    audio_embed_dim = 32
    embed_dim, num_heads, num_layers = 32, 4, 2
    hidden_size = 16
    num_classes = 4                    # ['outside', 'begin', 'inside', 'end']

    root = jax.random.PRNGKey(0)
    k_a, k_p = jax.random.split(root)
    audio = jax.random.normal(k_a, (N, S, audio_embed_dim), dtype=jnp.float32)
    params = init_params(k_p, audio_embed_dim, embed_dim, num_heads, num_layers,
                         hidden_size, num_classes)

    fwd = jax.jit(lambda prm, a: mfs_labeler_forward(prm, None, a, num_heads=num_heads))
    out = jax.block_until_ready(fwd(params, audio))

    assert out.shape == (N, S, num_classes)
    assert bool(jnp.all(jnp.isfinite(out)))
    print("KERNEL_OK")
</pallas_src>

<mosaic_0001>
module attributes {stable_mosaic.version = 11 : i64} {
  func.func @_mfs_fused_kernel(%arg0: i32, %arg1: memref<16x32xf32, #tpu.memory_space<vmem>>, %arg2: memref<32x32xf32, #tpu.memory_space<vmem>>, %arg3: memref<1x32xf32, #tpu.memory_space<vmem>>, %arg4: memref<16x32xf32, #tpu.memory_space<vmem>>, %arg5: memref<1x32x96xf32, #tpu.memory_space<vmem>>, %arg6: memref<1x1x96xf32, #tpu.memory_space<vmem>>, %arg7: memref<1x32x32xf32, #tpu.memory_space<vmem>>, %arg8: memref<1x1x32xf32, #tpu.memory_space<vmem>>, %arg9: memref<1x1x32xf32, #tpu.memory_space<vmem>>, %arg10: memref<1x1x32xf32, #tpu.memory_space<vmem>>, %arg11: memref<1x32x128xf32, #tpu.memory_space<vmem>>, %arg12: memref<1x1x128xf32, #tpu.memory_space<vmem>>, %arg13: memref<1x128x32xf32, #tpu.memory_space<vmem>>, %arg14: memref<1x1x32xf32, #tpu.memory_space<vmem>>, %arg15: memref<1x1x32xf32, #tpu.memory_space<vmem>>, %arg16: memref<1x1x32xf32, #tpu.memory_space<vmem>>, %arg17: memref<32x32xf32, #tpu.memory_space<vmem>>, %arg18: memref<1x32xf32, #tpu.memory_space<vmem>>, %arg19: memref<32x16xf32, #tpu.memory_space<vmem>>, %arg20: memref<1x16xf32, #tpu.memory_space<vmem>>, %arg21: memref<16x4xf32, #tpu.memory_space<vmem>>, %arg22: memref<1x4xf32, #tpu.memory_space<vmem>>, %arg23: memref<16x4xf32, #tpu.memory_space<vmem>>, %arg24: memref<16x32xf32, #tpu.memory_space<vmem>>, %arg25: memref<16x96xf32, #tpu.memory_space<vmem>>, %arg26: memref<16x32xf32, #tpu.memory_space<vmem>>) attributes {dimension_semantics = [#tpu.dimension_semantics<arbitrary>], iteration_bounds = array<i64: 2>, scalar_prefetch = 0 : i64, scratch_operands = 3 : i64, tpu.core_type = #tpu.core_type<tc>, window_params = [{pipeline_mode = #tpu.pipeline_mode<synchronous>, transform_indices = @transform_0, window_bounds = array<i64: 16, 32>}, {pipeline_mode = #tpu.pipeline_mode<synchronous>, transform_indices = @transform_1, window_bounds = array<i64: 32, 32>}, {pipeline_mode = #tpu.pipeline_mode<synchronous>, transform_indices = @transform_2, window_bounds = array<i64: 1, 32>}, {pipeline_mode = #tpu.pipeline_mode<synchronous>, transform_indices = @transform_3, window_bounds = array<i64: 16, 32>}, {transform_indices = @transform_4, window_bounds = array<i64: 1, 32, 96>}, {transform_indices = @transform_5, window_bounds = array<i64: 1, 1, 96>}, {transform_indices = @transform_6, window_bounds = array<i64: 1, 32, 32>}, {transform_indices = @transform_7, window_bounds = array<i64: 1, 1, 32>}, {transform_indices = @transform_8, window_bounds = array<i64: 1, 1, 32>}, {transform_indices = @transform_9, window_bounds = array<i64: 1, 1, 32>}, {transform_indices = @transform_10, window_bounds = array<i64: 1, 32, 128>}, {transform_indices = @transform_11, window_bounds = array<i64: 1, 1, 128>}, {transform_indices = @transform_12, window_bounds = array<i64: 1, 128, 32>}, {transform_indices = @transform_13, window_bounds = array<i64: 1, 1, 32>}, {transform_indices = @transform_14, window_bounds = array<i64: 1, 1, 32>}, {transform_indices = @transform_15, window_bounds = array<i64: 1, 1, 32>}, {pipeline_mode = #tpu.pipeline_mode<synchronous>, transform_indices = @transform_16, window_bounds = array<i64: 32, 32>}, {pipeline_mode = #tpu.pipeline_mode<synchronous>, transform_indices = @transform_17, window_bounds = array<i64: 1, 32>}, {pipeline_mode = #tpu.pipeline_mode<synchronous>, transform_indices = @transform_18, window_bounds = array<i64: 32, 16>}, {pipeline_mode = #tpu.pipeline_mode<synchronous>, transform_indices = @transform_19, window_bounds = array<i64: 1, 16>}, {pipeline_mode = #tpu.pipeline_mode<synchronous>, transform_indices = @transform_20, window_bounds = array<i64: 16, 4>}, {pipeline_mode = #tpu.pipeline_mode<synchronous>, transform_indices = @transform_21, window_bounds = array<i64: 1, 4>}, {pipeline_mode = #tpu.pipeline_mode<synchronous>, transform_indices = @transform_22, window_bounds = array<i64: 16, 4>}]} {
    %c0_i32 = arith.constant 0 : i32
    %0 = arith.cmpi eq, %arg0, %c0_i32 : i32
    %1 = arith.extui %0 : i1 to i32
    %c0_i32_0 = arith.constant 0 : i32
    %2 = arith.cmpi ne, %1, %c0_i32_0 : i32
    scf.if %2 {
      %c0_458 = arith.constant 0 : index
      %c0_459 = arith.constant 0 : index
      %670 = vector.load %arg1[%c0_458, %c0_459] : memref<16x32xf32, #tpu.memory_space<vmem>>, vector<16x32xf32>
      %c0_460 = arith.constant 0 : index
      %c0_461 = arith.constant 0 : index
      %671 = vector.load %arg2[%c0_460, %c0_461] : memref<32x32xf32, #tpu.memory_space<vmem>>, vector<32x32xf32>
      %cst_462 = arith.constant dense<0.000000e+00> : vector<16x32xf32>
      %672 = tpu.matmul %670, %671, %cst_462 {dimension_numbers = #tpu.dot_dimension_numbers<[1], [0], [0], [1], [0, 0, 1, 1], [], []>} : vector<16x32xf32>, vector<32x32xf32>, vector<16x32xf32> -> vector<16x32xf32>
      %c0_463 = arith.constant 0 : index
      %c0_464 = arith.constant 0 : index
      %673 = vector.load %arg3[%c0_463, %c0_464] : memref<1x32xf32, #tpu.memory_space<vmem>>, vector<1x32xf32>
      %674 = vector.broadcast %673 : vector<1x32xf32> to vector<16x32xf32>
      %675 = arith.addf %672, %674 : vector<16x32xf32>
      %c0_465 = arith.constant 0 : index
      %c0_466 = arith.constant 0 : index
      %676 = vector.load %arg4[%c0_465, %c0_466] : memref<16x32xf32, #tpu.memory_space<vmem>>, vector<16x32xf32>
      %677 = arith.addf %675, %676 : vector<16x32xf32>
      %c0_467 = arith.constant 0 : index
      %c0_468 = arith.constant 0 : index
      %678 = vector.load %arg24[%c0_467, %c0_468] : memref<16x32xf32, #tpu.memory_space<vmem>>, vector<16x32xf32>
      tpu.vector_store %arg24[%c0_467, %c0_468], %677 {strides = array<i32>} : memref<16x32xf32, #tpu.memory_space<vmem>>, vector<16x32xf32>,
    } else {
    }
    %c0 = arith.constant 0 : index
    %c0_1 = arith.constant 0 : index
    %3 = vector.load %arg24[%c0, %c0_1] : memref<16x32xf32, #tpu.memory_space<vmem>>, vector<16x32xf32>
    %c0_2 = arith.constant 0 : index
    %c0_3 = arith.constant 0 : index
    %c0_4 = arith.constant 0 : index
    %4 = vector.load %arg5[%c0_2, %c0_3, %c0_4] : memref<1x32x96xf32, #tpu.memory_space<vmem>>, vector<1x32x96xf32>
    %5 = vector.shape_cast %4 : vector<1x32x96xf32> to vector<32x96xf32>
    %cst = arith.constant dense<0.000000e+00> : vector<16x96xf32>
    %6 = tpu.matmul %3, %5, %cst {dimension_numbers = #tpu.dot_dimension_numbers<[1], [0], [0], [1], [0, 0, 1, 1], [], []>} : vector<16x32xf32>, vector<32x96xf32>, vector<16x96xf32> -> vector<16x96xf32>
    %c0_5 = arith.constant 0 : index
    %c0_6 = arith.constant 0 : index
    %c0_7 = arith.constant 0 : index
    %7 = vector.load %arg6[%c0_5, %c0_6, %c0_7] : memref<1x1x96xf32, #tpu.memory_space<vmem>>, vector<1x1x96xf32>
    %8 = vector.shape_cast %7 : vector<1x1x96xf32> to vector<1x96xf32>
    %9 = vector.broadcast %8 : vector<1x96xf32> to vector<16x96xf32>
    %10 = arith.addf %6, %9 : vector<16x96xf32>
    %c0_8 = arith.constant 0 : index
    %c0_9 = arith.constant 0 : index
    %11 = vector.load %arg25[%c0_8, %c0_9] : memref<16x96xf32, #tpu.memory_space<vmem>>, vector<16x96xf32>
    tpu.vector_store %arg25[%c0_8, %c0_9], %10 {strides = array<i32>} : memref<16x96xf32, #tpu.memory_space<vmem>>, vector<16x96xf32>,
    %c0_10 = arith.constant 0 : index
    %c0_11 = arith.constant 0 : index
    %12 = vector.load %arg25[%c0_10, %c0_11] : memref<16x96xf32, #tpu.memory_space<vmem>>, vector<2x8xf32>
    %c0_12 = arith.constant 0 : index
    %c32 = arith.constant 32 : index
    %13 = vector.load %arg25[%c0_12, %c32] : memref<16x96xf32, #tpu.memory_space<vmem>>, vector<2x8xf32>
    %c0_13 = arith.constant 0 : index
    %c64 = arith.constant 64 : index
    %14 = vector.load %arg25[%c0_13, %c64] : memref<16x96xf32, #tpu.memory_space<vmem>>, vector<2x8xf32>
    %cst_14 = arith.constant dense<0.000000e+00> : vector<2x2xf32>
    %15 = tpu.matmul %12, %13, %cst_14 {dimension_numbers = #tpu.dot_dimension_numbers<[1], [1], [0], [0], [0, 0, 1, 0], [], []>} : vector<2x8xf32>, vector<2x8xf32>, vector<2x2xf32> -> vector<2x2xf32>
    %cst_15 = arith.constant 0.353553385 : f32
    %16 = vector.broadcast %cst_15 : f32 to vector<2x2xf32>
    %17 = arith.mulf %15, %16 : vector<2x2xf32>
    %cst_16 = arith.constant dense<0xFF800000> : vector<2xf32>
    %18 = vector.multi_reduction <maximumf>, %17, %cst_16 [1] : vector<2x2xf32> to vector<2xf32>
    %19 = vector.shape_cast %18 : vector<2xf32> to vector<2x1xf32>
    %20 = vector.broadcast %19 : vector<2x1xf32> to vector<2x2xf32>
    %21 = arith.subf %17, %20 : vector<2x2xf32>
    %22 = math.exp %21 : vector<2x2xf32>
    %cst_17 = arith.constant dense<0.000000e+00> : vector<2xf32>
    %23 = vector.multi_reduction <add>, %22, %cst_17 [1] : vector<2x2xf32> to vector<2xf32>
    %24 = vector.shape_cast %23 : vector<2xf32> to vector<2x1xf32>
    %25 = tpu.reciprocal %24 {approx = true} : vector<2x1xf32> -> vector<2x1xf32>
    %26 = vector.broadcast %25 : vector<2x1xf32> to vector<2x2xf32>
    %27 = arith.mulf %22, %26 : vector<2x2xf32>
    %cst_18 = arith.constant dense<0.000000e+00> : vector<2x8xf32>
    %28 = tpu.matmul %27, %14, %cst_18 {dimension_numbers = #tpu.dot_dimension_numbers<[1], [0], [0], [1], [0, 0, 1, 1], [], []>} : vector<2x2xf32>, vector<2x8xf32>, vector<2x8xf32> -> vector<2x8xf32>
    %c0_19 = arith.constant 0 : index
    %c0_20 = arith.constant 0 : index
    %29 = vector.load %arg26[%c0_19, %c0_20] : memref<16x32xf32, #tpu.memory_space<vmem>>, vector<2x8xf32>
    tpu.vector_store %arg26[%c0_19, %c0_20], %28 {strides = array<i32>} : memref<16x32xf32, #tpu.memory_space<vmem>>, vector<2x8xf32>,
    %c0_21 = arith.constant 0 : index
    %c8 = arith.constant 8 : index
    %30 = vector.load %arg25[%c0_21, %c8] : memref<16x96xf32, #tpu.memory_space<vmem>>, vector<2x8xf32>
    %c0_22 = arith.constant 0 : index
    %c40 = arith.constant 40 : index
    %31 = vector.load %arg25[%c0_22, %c40] : memref<16x96xf32, #tpu.memory_space<vmem>>, vector<2x8xf32>
    %c0_23 = arith.constant 0 : index
    %c72 = arith.constant 72 : index
    %32 = vector.load %arg25[%c0_23, %c72] : memref<16x96xf32, #tpu.memory_space<vmem>>, vector<2x8xf32>
    %cst_24 = arith.constant dense<0.000000e+00> : vector<2x2xf32>
    %33 = tpu.matmul %30, %31, %cst_24 {dimension_numbers = #tpu.dot_dimension_numbers<[1], [1], [0], [0], [0, 0, 1, 0], [], []>} : vector<2x8xf32>, vector<2x8xf32>, vector<2x2xf32> -> vector<2x2xf32>
    %cst_25 = arith.constant 0.353553385 : f32
    %34 = vector.broadcast %cst_25 : f32 to vector<2x2xf32>
    %35 = arith.mulf %33, %34 : vector<2x2xf32>
    %cst_26 = arith.constant dense<0xFF800000> : vector<2xf32>
    %36 = vector.multi_reduction <maximumf>, %35, %cst_26 [1] : vector<2x2xf32> to vector<2xf32>
    %37 = vector.shape_cast %36 : vector<2xf32> to vector<2x1xf32>
    %38 = vector.broadcast %37 : vector<2x1xf32> to vector<2x2xf32>
    %39 = arith.subf %35, %38 : vector<2x2xf32>
    %40 = math.exp %39 : vector<2x2xf32>
    %cst_27 = arith.constant dense<0.000000e+00> : vector<2xf32>
    %41 = vector.multi_reduction <add>, %40, %cst_27 [1] : vector<2x2xf32> to vector<2xf32>
    %42 = vector.shape_cast %41 : vector<2xf32> to vector<2x1xf32>
    %43 = tpu.reciprocal %42 {approx = true} : vector<2x1xf32> -> vector<2x1xf32>
    %44 = vector.broadcast %43 : vector<2x1xf32> to vector<2x2xf32>
    %45 = arith.mulf %40, %44 : vector<2x2xf32>
    %cst_28 = arith.constant dense<0.000000e+00> : vector<2x8xf32>
    %46 = tpu.matmul %45, %32, %cst_28 {dimension_numbers = #tpu.dot_dimension_numbers<[1], [0], [0], [1], [0, 0, 1, 1], [], []>} : vector<2x2xf32>, vector<2x8xf32>, vector<2x8xf32> -> vector<2x8xf32>
    %c0_29 = arith.constant 0 : index
    %c8_30 = arith.constant 8 : index
    %47 = vector.load %arg26[%c0_29, %c8_30] : memref<16x32xf32, #tpu.memory_space<vmem>>, vector<2x8xf32>
    tpu.vector_store %arg26[%c0_29, %c8_30], %46 {strides = array<i32>} : memref<16x32xf32, #tpu.memory_space<vmem>>, vector<2x8xf32>,
    %c0_31 = arith.constant 0 : index
    %c16 = arith.constant 16 : index
    %48 = vector.load %arg25[%c0_31, %c16] : memref<16x96xf32, #tpu.memory_space<vmem>>, vector<2x8xf32>
    %c0_32 = arith.constant 0 : index
    %c48 = arith.constant 48 : index
    %49 = vector.load %arg25[%c0_32, %c48] : memref<16x96xf32, #tpu.memory_space<vmem>>, vector<2x8xf32>
    %c0_33 = arith.constant 0 : index
    %c80 = arith.constant 80 : index
    %50 = vector.load %arg25[%c0_33, %c80] : memref<16x96xf32, #tpu.memory_space<vmem>>, vector<2x8xf32>
    %cst_34 = arith.constant dense<0.000000e+00> : vector<2x2xf32>
    %51 = tpu.matmul %48, %49, %cst_34 {dimension_numbers = #tpu.dot_dimension_numbers<[1], [1], [0], [0], [0, 0, 1, 0], [], []>} : vector<2x8xf32>, vector<2x8xf32>, vector<2x2xf32> -> vector<2x2xf32>
    %cst_35 = arith.constant 0.353553385 : f32
    %52 = vector.broadcast %cst_35 : f32 to vector<2x2xf32>
    %53 = arith.mulf %51, %52 : vector<2x2xf32>
    %cst_36 = arith.constant dense<0xFF800000> : vector<2xf32>
    %54 = vector.multi_reduction <maximumf>, %53, %cst_36 [1] : vector<2x2xf32> to vector<2xf32>
    %55 = vector.shape_cast %54 : vector<2xf32> to vector<2x1xf32>
    %56 = vector.broadcast %55 : vector<2x1xf32> to vector<2x2xf32>
    %57 = arith.subf %53, %56 : vector<2x2xf32>
    %58 = math.exp %57 : vector<2x2xf32>
    %cst_37 = arith.constant dense<0.000000e+00> : vector<2xf32>
    %59 = vector.multi_reduction <add>, %58, %cst_37 [1] : vector<2x2xf32> to vector<2xf32>
    %60 = vector.shape_cast %59 : vector<2xf32> to vector<2x1xf32>
    %61 = tpu.reciprocal %60 {approx = true} : vector<2x1xf32> -> vector<2x1xf32>
    %62 = vector.broadcast %61 : vector<2x1xf32> to vector<2x2xf32>
    %63 = arith.mulf %58, %62 : vector<2x2xf32>
    %cst_38 = arith.constant dense<0.000000e+00> : vector<2x8xf32>
    %64 = tpu.matmul %63, %50, %cst_38 {dimension_numbers = #tpu.dot_dimension_numbers<[1], [0], [0], [1], [0, 0, 1, 1], [], []>} : vector<2x2xf32>, vector<2x8xf32>, vector<2x8xf32> -> vector<2x8xf32>
    %c0_39 = arith.constant 0 : index
    %c16_40 = arith.constant 16 : index
    %65 = vector.load %arg26[%c0_39, %c16_40] : memref<16x32xf32, #tpu.memory_space<vmem>>, vector<2x8xf32>
    tpu.vector_store %arg26[%c0_39, %c16_40], %64 {strides = array<i32>} : memref<16x32xf32, #tpu.memory_space<vmem>>, vector<2x8xf32>,
    %c0_41 = arith.constant 0 : index
    %c24 = arith.constant 24 : index
    %66 = vector.load %arg25[%c0_41, %c24] : memref<16x96xf32, #tpu.memory_space<vmem>>, vector<2x8xf32>
    %c0_42 = arith.constant 0 : index
    %c56 = arith.constant 56 : index
    %67 = vector.load %arg25[%c0_42, %c56] : memref<16x96xf32, #tpu.memory_space<vmem>>, vector<2x8xf32>
    %c0_43 = arith.constant 0 : index
    %c88 = arith.constant 88 : index
    %68 = vector.load %arg25[%c0_43, %c88] : memref<16x96xf32, #tpu.memory_space<vmem>>, vector<2x8xf32>
    %cst_44 = arith.constant dense<0.000000e+00> : vector<2x2xf32>
    %69 = tpu.matmul %66, %67, %cst_44 {dimension_numbers = #tpu.dot_dimension_numbers<[1], [1], [0], [0], [0, 0, 1, 0], [], []>} : vector<2x8xf32>, vector<2x8xf32>, vector<2x2xf32> -> vector<2x2xf32>
    %cst_45 = arith.constant 0.353553385 : f32
    %70 = vector.broadcast %cst_45 : f32 to vector<2x2xf32>
    %71 = arith.mulf %69, %70 : vector<2x2xf32>
    %cst_46 = arith.constant dense<0xFF800000> : vector<2xf32>
    %72 = vector.multi_reduction <maximumf>, %71, %cst_46 [1] : vector<2x2xf32> to vector<2xf32>
    %73 = vector.shape_cast %72 : vector<2xf32> to vector<2x1xf32>
    %74 = vector.broadcast %73 : vector<2x1xf32> to vector<2x2xf32>
    %75 = arith.subf %71, %74 : vector<2x2xf32>
    %76 = math.exp %75 : vector<2x2xf32>
    %cst_47 = arith.constant dense<0.000000e+00> : vector<2xf32>
    %77 = vector.multi_reduction <add>, %76, %cst_47 [1] : vector<2x2xf32> to vector<2xf32>
    %78 = vector.shape_cast %77 : vector<2xf32> to vector<2x1xf32>
    %79 = tpu.reciprocal %78 {approx = true} : vector<2x1xf32> -> vector<2x1xf32>
    %80 = vector.broadcast %79 : vector<2x1xf32> to vector<2x2xf32>
    %81 = arith.mulf %76, %80 : vector<2x2xf32>
    %cst_48 = arith.constant dense<0.000000e+00> : vector<2x8xf32>
    %82 = tpu.matmul %81, %68, %cst_48 {dimension_numbers = #tpu.dot_dimension_numbers<[1], [0], [0], [1], [0, 0, 1, 1], [], []>} : vector<2x2xf32>, vector<2x8xf32>, vector<2x8xf32> -> vector<2x8xf32>
    %c0_49 = arith.constant 0 : index
    %c24_50 = arith.constant 24 : index
    %83 = vector.load %arg26[%c0_49, %c24_50] : memref<16x32xf32, #tpu.memory_space<vmem>>, vector<2x8xf32>
    tpu.vector_store %arg26[%c0_49, %c24_50], %82 {strides = array<i32>} : memref<16x32xf32, #tpu.memory_space<vmem>>, vector<2x8xf32>,
    %c2 = arith.constant 2 : index
    %c0_51 = arith.constant 0 : index
    %84 = vector.load %arg25[%c2, %c0_51] : memref<16x96xf32, #tpu.memory_space<vmem>>, vector<2x8xf32>
    %c2_52 = arith.constant 2 : index
    %c32_53 = arith.constant 32 : index
    %85 = vector.load %arg25[%c2_52, %c32_53] : memref<16x96xf32, #tpu.memory_space<vmem>>, vector<2x8xf32>
    %c2_54 = arith.constant 2 : index
    %c64_55 = arith.constant 64 : index
    %86 = vector.load %arg25[%c2_54, %c64_55] : memref<16x96xf32, #tpu.memory_space<vmem>>, vector<2x8xf32>
    %cst_56 = arith.constant dense<0.000000e+00> : vector<2x2xf32>
    %87 = tpu.matmul %84, %85, %cst_56 {dimension_numbers = #tpu.dot_dimension_numbers<[1], [1], [0], [0], [0, 0, 1, 0], [], []>} : vector<2x8xf32>, vector<2x8xf32>, vector<2x2xf32> -> vector<2x2xf32>
    %cst_57 = arith.constant 0.353553385 : f32
    %88 = vector.broadcast %cst_57 : f32 to vector<2x2xf32>
    %89 = arith.mulf %87, %88 : vector<2x2xf32>
    %cst_58 = arith.constant dense<0xFF800000> : vector<2xf32>
    %90 = vector.multi_reduction <maximumf>, %89, %cst_58 [1] : vector<2x2xf32> to vector<2xf32>
    %91 = vector.shape_cast %90 : vector<2xf32> to vector<2x1xf32>
    %92 = vector.broadcast %91 : vector<2x1xf32> to vector<2x2xf32>
    %93 = arith.subf %89, %92 : vector<2x2xf32>
    %94 = math.exp %93 : vector<2x2xf32>
    %cst_59 = arith.constant dense<0.000000e+00> : vector<2xf32>
    %95 = vector.multi_reduction <add>, %94, %cst_59 [1] : vector<2x2xf32> to vector<2xf32>
    %96 = vector.shape_cast %95 : vector<2xf32> to vector<2x1xf32>
    %97 = tpu.reciprocal %96 {approx = true} : vector<2x1xf32> -> vector<2x1xf32>
    %98 = vector.broadcast %97 : vector<2x1xf32> to vector<2x2xf32>
    %99 = arith.mulf %94, %98 : vector<2x2xf32>
    %cst_60 = arith.constant dense<0.000000e+00> : vector<2x8xf32>
    %100 = tpu.matmul %99, %86, %cst_60 {dimension_numbers = #tpu.dot_dimension_numbers<[1], [0], [0], [1], [0, 0, 1, 1], [], []>} : vector<2x2xf32>, vector<2x8xf32>, vector<2x8xf32> -> vector<2x8xf32>
    %c2_61 = arith.constant 2 : index
    %c0_62 = arith.constant 0 : index
    %101 = vector.load %arg26[%c2_61, %c0_62] : memref<16x32xf32, #tpu.memory_space<vmem>>, vector<2x8xf32>
    tpu.vector_store %arg26[%c2_61, %c0_62], %100 {strides = array<i32>} : memref<16x32xf32, #tpu.memory_space<vmem>>, vector<2x8xf32>,
    %c2_63 = arith.constant 2 : index
    %c8_64 = arith.constant 8 : index
    %102 = vector.load %arg25[%c2_63, %c8_64] : memref<16x96xf32, #tpu.memory_space<vmem>>, vector<2x8xf32>
    %c2_65 = arith.constant 2 : index
    %c40_66 = arith.constant 40 : index
    %103 = vector.load %arg25[%c2_65, %c40_66] : memref<16x96xf32, #tpu.memory_space<vmem>>, vector<2x8xf32>
    %c2_67 = arith.constant 2 : index
    %c72_68 = arith.constant 72 : index
    %104 = vector.load %arg25[%c2_67, %c72_68] : memref<16x96xf32, #tpu.memory_space<vmem>>, vector<2x8xf32>
    %cst_69 = arith.constant dense<0.000000e+00> : vector<2x2xf32>
    %105 = tpu.matmul %102, %103, %cst_69 {dimension_numbers = #tpu.dot_dimension_numbers<[1], [1], [0], [0], [0, 0, 1, 0], [], []>} : vector<2x8xf32>, vector<2x8xf32>, vector<2x2xf32> -> vector<2x2xf32>
    %cst_70 = arith.constant 0.353553385 : f32
    %106 = vector.broadcast %cst_70 : f32 to vector<2x2xf32>
    %107 = arith.mulf %105, %106 : vector<2x2xf32>
    %cst_71 = arith.constant dense<0xFF800000> : vector<2xf32>
    %108 = vector.multi_reduction <maximumf>, %107, %cst_71 [1] : vector<2x2xf32> to vector<2xf32>
    %109 = vector.shape_cast %108 : vector<2xf32> to vector<2x1xf32>
    %110 = vector.broadcast %109 : vector<2x1xf32> to vector<2x2xf32>
    %111 = arith.subf %107, %110 : vector<2x2xf32>
    %112 = math.exp %111 : vector<2x2xf32>
    %cst_72 = arith.constant dense<0.000000e+00> : vector<2xf32>
    %113 = vector.multi_reduction <add>, %112, %cst_72 [1] : vector<2x2xf32> to vector<2xf32>
    %114 = vector.shape_cast %113 : vector<2xf32> to vector<2x1xf32>
    %115 = tpu.reciprocal %114 {approx = true} : vector<2x1xf32> -> vector<2x1xf32>
    %116 = vector.broadcast %115 : vector<2x1xf32> to vector<2x2xf32>
    %117 = arith.mulf %112, %116 : vector<2x2xf32>
    %cst_73 = arith.constant dense<0.000000e+00> : vector<2x8xf32>
    %118 = tpu.matmul %117, %104, %cst_73 {dimension_numbers = #tpu.dot_dimension_numbers<[1], [0], [0], [1], [0, 0, 1, 1], [], []>} : vector<2x2xf32>, vector<2x8xf32>, vector<2x8xf32> -> vector<2x8xf32>
    %c2_74 = arith.constant 2 : index
    %c8_75 = arith.constant 8 : index
    %119 = vector.load %arg26[%c2_74, %c8_75] : memref<16x32xf32, #tpu.memory_space<vmem>>, vector<2x8xf32>
    tpu.vector_store %arg26[%c2_74, %c8_75], %118 {strides = array<i32>} : memref<16x32xf32, #tpu.memory_space<vmem>>, vector<2x8xf32>,
    %c2_76 = arith.constant 2 : index
    %c16_77 = arith.constant 16 : index
    %120 = vector.load %arg25[%c2_76, %c16_77] : memref<16x96xf32, #tpu.memory_space<vmem>>, vector<2x8xf32>
    %c2_78 = arith.constant 2 : index
    %c48_79 = arith.constant 48 : index
    %121 = vector.load %arg25[%c2_78, %c48_79] : memref<16x96xf32, #tpu.memory_space<vmem>>, vector<2x8xf32>
    %c2_80 = arith.constant 2 : index
    %c80_81 = arith.constant 80 : index
    %122 = vector.load %arg25[%c2_80, %c80_81] : memref<16x96xf32, #tpu.memory_space<vmem>>, vector<2x8xf32>
    %cst_82 = arith.constant dense<0.000000e+00> : vector<2x2xf32>
    %123 = tpu.matmul %120, %121, %cst_82 {dimension_numbers = #tpu.dot_dimension_numbers<[1], [1], [0], [0], [0, 0, 1, 0], [], []>} : vector<2x8xf32>, vector<2x8xf32>, vector<2x2xf32> -> vector<2x2xf32>
    %cst_83 = arith.constant 0.353553385 : f32
    %124 = vector.broadcast %cst_83 : f32 to vector<2x2xf32>
    %125 = arith.mulf %123, %124 : vector<2x2xf32>
    %cst_84 = arith.constant dense<0xFF800000> : vector<2xf32>
    %126 = vector.multi_reduction <maximumf>, %125, %cst_84 [1] : vector<2x2xf32> to vector<2xf32>
    %127 = vector.shape_cast %126 : vector<2xf32> to vector<2x1xf32>
    %128 = vector.broadcast %127 : vector<2x1xf32> to vector<2x2xf32>
    %129 = arith.subf %125, %128 : vector<2x2xf32>
    %130 = math.exp %129 : vector<2x2xf32>
    %cst_85 = arith.constant dense<0.000000e+00> : vector<2xf32>
    %131 = vector.multi_reduction <add>, %130, %cst_85 [1] : vector<2x2xf32> to vector<2xf32>
    %132 = vector.shape_cast %131 : vector<2xf32> to vector<2x1xf32>
    %133 = tpu.reciprocal %132 {approx = true} : vector<2x1xf32> -> vector<2x1xf32>
    %134 = vector.broadcast %133 : vector<2x1xf32> to vector<2x2xf32>
    %135 = arith.mulf %130, %134 : vector<2x2xf32>
    %cst_86 = arith.constant dense<0.000000e+00> : vector<2x8xf32>
    %136 = tpu.matmul %135, %122, %cst_86 {dimension_numbers = #tpu.dot_dimension_numbers<[1], [0], [0], [1], [0, 0, 1, 1], [], []>} : vector<2x2xf32>, vector<2x8xf32>, vector<2x8xf32> -> vector<2x8xf32>
    %c2_87 = arith.constant 2 : index
    %c16_88 = arith.constant 16 : index
    %137 = vector.load %arg26[%c2_87, %c16_88] : memref<16x32xf32, #tpu.memory_space<vmem>>, vector<2x8xf32>
    tpu.vector_store %arg26[%c2_87, %c16_88], %136 {strides = array<i32>} : memref<16x32xf32, #tpu.memory_space<vmem>>, vector<2x8xf32>,
    %c2_89 = arith.constant 2 : index
    %c24_90 = arith.constant 24 : index
    %138 = vector.load %arg25[%c2_89, %c24_90] : memref<16x96xf32, #tpu.memory_space<vmem>>, vector<2x8xf32>
    %c2_91 = arith.constant 2 : index
    %c56_92 = arith.constant 56 : index
    %139 = vector.load %arg25[%c2_91, %c56_92] : memref<16x96xf32, #tpu.memory_space<vmem>>, vector<2x8xf32>
    %c2_93 = arith.constant 2 : index
    %c88_94 = arith.constant 88 : index
    %140 = vector.load %arg25[%c2_93, %c88_94] : memref<16x96xf32, #tpu.memory_space<vmem>>, vector<2x8xf32>
    %cst_95 = arith.constant dense<0.000000e+00> : vector<2x2xf32>
    %141 = tpu.matmul %138, %139, %cst_95 {dimension_numbers = #tpu.dot_dimension_numbers<[1], [1], [0], [0], [0, 0, 1, 0], [], []>} : vector<2x8xf32>, vector<2x8xf32>, vector<2x2xf32> -> vector<2x2xf32>
    %cst_96 = arith.constant 0.353553385 : f32
    %142 = vector.broadcast %cst_96 : f32 to vector<2x2xf32>
    %143 = arith.mulf %141, %142 : vector<2x2xf32>
    %cst_97 = arith.constant dense<0xFF800000> : vector<2xf32>
    %144 = vector.multi_reduction <maximumf>, %143, %cst_97 [1] : vector<2x2xf32> to vector<2xf32>
    %145 = vector.shape_cast %144 : vector<2xf32> to vector<2x1xf32>
    %146 = vector.broadcast %145 : vector<2x1xf32> to vector<2x2xf32>
    %147 = arith.subf %143, %146 : vector<2x2xf32>
    %148 = math.exp %147 : vector<2x2xf32>
    %cst_98 = arith.constant dense<0.000000e+00> : vector<2xf32>
    %149 = vector.multi_reduction <add>, %148, %cst_98 [1] : vector<2x2xf32> to vector<2xf32>
    %150 = vector.shape_cast %149 : vector<2xf32> to vector<2x1xf32>
    %151 = tpu.reciprocal %150 {approx = true} : vector<2x1xf32> -> vector<2x1xf32>
    %152 = vector.broadcast %151 : vector<2x1xf32> to vector<2x2xf32>
    %153 = arith.mulf %148, %152 : vector<2x2xf32>
    %cst_99 = arith.constant dense<0.000000e+00> : vector<2x8xf32>
    %154 = tpu.matmul %153, %140, %cst_99 {dimension_numbers = #tpu.dot_dimension_numbers<[1], [0], [0], [1], [0, 0, 1, 1], [], []>} : vector<2x2xf32>, vector<2x8xf32>, vector<2x8xf32> -> vector<2x8xf32>
    %c2_100 = arith.constant 2 : index
    %c24_101 = arith.constant 24 : index
    %155 = vector.load %arg26[%c2_100, %c24_101] : memref<16x32xf32, #tpu.memory_space<vmem>>, vector<2x8xf32>
    tpu.vector_store %arg26[%c2_100, %c24_101], %154 {strides = array<i32>} : memref<16x32xf32, #tpu.memory_space<vmem>>, vector<2x8xf32>,
    %c4 = arith.constant 4 : index
    %c0_102 = arith.constant 0 : index
    %156 = vector.load %arg25[%c4, %c0_102] : memref<16x96xf32, #tpu.memory_space<vmem>>, vector<2x8xf32>
    %c4_103 = arith.constant 4 : index
    %c32_104 = arith.constant 32 : index
    %157 = vector.load %arg25[%c4_103, %c32_104] : memref<16x96xf32, #tpu.memory_space<vmem>>, vector<2x8xf32>
    %c4_105 = arith.constant 4 : index
    %c64_106 = arith.constant 64 : index
    %158 = vector.load %arg25[%c4_105, %c64_106] : memref<16x96xf32, #tpu.memory_space<vmem>>, vector<2x8xf32>
    %cst_107 = arith.constant dense<0.000000e+00> : vector<2x2xf32>
    %159 = tpu.matmul %156, %157, %cst_107 {dimension_numbers = #tpu.dot_dimension_numbers<[1], [1], [0], [0], [0, 0, 1, 0], [], []>} : vector<2x8xf32>, vector<2x8xf32>, vector<2x2xf32> -> vector<2x2xf32>
    %cst_108 = arith.constant 0.353553385 : f32
    %160 = vector.broadcast %cst_108 : f32 to vector<2x2xf32>
    %161 = arith.mulf %159, %160 : vector<2x2xf32>
    %cst_109 = arith.constant dense<0xFF800000> : vector<2xf32>
    %162 = vector.multi_reduction <maximumf>, %161, %cst_109 [1] : vector<2x2xf32> to vector<2xf32>
    %163 = vector.shape_cast %162 : vector<2xf32> to vector<2x1xf32>
    %164 = vector.broadcast %163 : vector<2x1xf32> to vector<2x2xf32>
    %165 = arith.subf %161, %164 : vector<2x2xf32>
    %166 = math.exp %165 : vector<2x2xf32>
    %cst_110 = arith.constant dense<0.000000e+00> : vector<2xf32>
    %167 = vector.multi_reduction <add>, %166, %cst_110 [1] : vector<2x2xf32> to vector<2xf32>
    %168 = vector.shape_cast %167 : vector<2xf32> to vector<2x1xf32>
    %169 = tpu.reciprocal %168 {approx = true} : vector<2x1xf32> -> vector<2x1xf32>
    %170 = vector.broadcast %169 : vector<2x1xf32> to vector<2x2xf32>
    %171 = arith.mulf %166, %170 : vector<2x2xf32>
    %cst_111 = arith.constant dense<0.000000e+00> : vector<2x8xf32>
    %172 = tpu.matmul %171, %158, %cst_111 {dimension_numbers = #tpu.dot_dimension_numbers<[1], [0], [0], [1], [0, 0, 1, 1], [], []>} : vector<2x2xf32>, vector<2x8xf32>, vector<2x8xf32> -> vector<2x8xf32>
    %c4_112 = arith.constant 4 : index
    %c0_113 = arith.constant 0 : index
    %173 = vector.load %arg26[%c4_112, %c0_113] : memref<16x32xf32, #tpu.memory_space<vmem>>, vector<2x8xf32>
    tpu.vector_store %arg26[%c4_112, %c0_113], %172 {strides = array<i32>} : memref<16x32xf32, #tpu.memory_space<vmem>>, vector<2x8xf32>,
    %c4_114 = arith.constant 4 : index
    %c8_115 = arith.constant 8 : index
    %174 = vector.load %arg25[%c4_114, %c8_115] : memref<16x96xf32, #tpu.memory_space<vmem>>, vector<2x8xf32>
    %c4_116 = arith.constant 4 : index
    %c40_117 = arith.constant 40 : index
    %175 = vector.load %arg25[%c4_116, %c40_117] : memref<16x96xf32, #tpu.memory_space<vmem>>, vector<2x8xf32>
    %c4_118 = arith.constant 4 : index
    %c72_119 = arith.constant 72 : index
    %176 = vector.load %arg25[%c4_118, %c72_119] : memref<16x96xf32, #tpu.memory_space<vmem>>, vector<2x8xf32>
    %cst_120 = arith.constant dense<0.000000e+00> : vector<2x2xf32>
    %177 = tpu.matmul %174, %175, %cst_120 {dimension_numbers = #tpu.dot_dimension_numbers<[1], [1], [0], [0], [0, 0, 1, 0], [], []>} : vector<2x8xf32>, vector<2x8xf32>, vector<2x2xf32> -> vector<2x2xf32>
    %cst_121 = arith.constant 0.353553385 : f32
    %178 = vector.broadcast %cst_121 : f32 to vector<2x2xf32>
    %179 = arith.mulf %177, %178 : vector<2x2xf32>
    %cst_122 = arith.constant dense<0xFF800000> : vector<2xf32>
    %180 = vector.multi_reduction <maximumf>, %179, %cst_122 [1] : vector<2x2xf32> to vector<2xf32>
    %181 = vector.shape_cast %180 : vector<2xf32> to vector<2x1xf32>
    %182 = vector.broadcast %181 : vector<2x1xf32> to vector<2x2xf32>
    %183 = arith.subf %179, %182 : vector<2x2xf32>
    %184 = math.exp %183 : vector<2x2xf32>
    %cst_123 = arith.constant dense<0.000000e+00> : vector<2xf32>
    %185 = vector.multi_reduction <add>, %184, %cst_123 [1] : vector<2x2xf32> to vector<2xf32>
    %186 = vector.shape_cast %185 : vector<2xf32> to vector<2x1xf32>
    %187 = tpu.reciprocal %186 {approx = true} : vector<2x1xf32> -> vector<2x1xf32>
    %188 = vector.broadcast %187 : vector<2x1xf32> to vector<2x2xf32>
    %189 = arith.mulf %184, %188 : vector<2x2xf32>
    %cst_124 = arith.constant dense<0.000000e+00> : vector<2x8xf32>
    %190 = tpu.matmul %189, %176, %cst_124 {dimension_numbers = #tpu.dot_dimension_numbers<[1], [0], [0], [1], [0, 0, 1, 1], [], []>} : vector<2x2xf32>, vector<2x8xf32>, vector<2x8xf32> -> vector<2x8xf32>
    %c4_125 = arith.constant 4 : index
    %c8_126 = arith.constant 8 : index
    %191 = vector.load %arg26[%c4_125, %c8_126] : memref<16x32xf32, #tpu.memory_space<vmem>>, vector<2x8xf32>
    tpu.vector_store %arg26[%c4_125, %c8_126], %190 {strides = array<i32>} : memref<16x32xf32, #tpu.memory_space<vmem>>, vector<2x8xf32>,
    %c4_127 = arith.constant 4 : index
    %c16_128 = arith.constant 16 : index
    %192 = vector.load %arg25[%c4_127, %c16_128] : memref<16x96xf32, #tpu.memory_space<vmem>>, vector<2x8xf32>
    %c4_129 = arith.constant 4 : index
    %c48_130 = arith.constant 48 : index
    %193 = vector.load %arg25[%c4_129, %c48_130] : memref<16x96xf32, #tpu.memory_space<vmem>>, vector<2x8xf32>
    %c4_131 = arith.constant 4 : index
    %c80_132 = arith.constant 80 : index
    %194 = vector.load %arg25[%c4_131, %c80_132] : memref<16x96xf32, #tpu.memory_space<vmem>>, vector<2x8xf32>
    %cst_133 = arith.constant dense<0.000000e+00> : vector<2x2xf32>
    %195 = tpu.matmul %192, %193, %cst_133 {dimension_numbers = #tpu.dot_dimension_numbers<[1], [1], [0], [0], [0, 0, 1, 0], [], []>} : vector<2x8xf32>, vector<2x8xf32>, vector<2x2xf32> -> vector<2x2xf32>
    %cst_134 = arith.constant 0.353553385 : f32
    %196 = vector.broadcast %cst_134 : f32 to vector<2x2xf32>
    %197 = arith.mulf %195, %196 : vector<2x2xf32>
    %cst_135 = arith.constant dense<0xFF800000> : vector<2xf32>
    %198 = vector.multi_reduction <maximumf>, %197, %cst_135 [1] : vector<2x2xf32> to vector<2xf32>
    %199 = vector.shape_cast %198 : vector<2xf32> to vector<2x1xf32>
    %200 = vector.broadcast %199 : vector<2x1xf32> to vector<2x2xf32>
    %201 = arith.subf %197, %200 : vector<2x2xf32>
    %202 = math.exp %201 : vector<2x2xf32>
    %cst_136 = arith.constant dense<0.000000e+00> : vector<2xf32>
    %203 = vector.multi_reduction <add>, %202, %cst_136 [1] : vector<2x2xf32> to vector<2xf32>
    %204 = vector.shape_cast %203 : vector<2xf32> to vector<2x1xf32>
    %205 = tpu.reciprocal %204 {approx = true} : vector<2x1xf32> -> vector<2x1xf32>
    %206 = vector.broadcast %205 : vector<2x1xf32> to vector<2x2xf32>
    %207 = arith.mulf %202, %206 : vector<2x2xf32>
    %cst_137 = arith.constant dense<0.000000e+00> : vector<2x8xf32>
    %208 = tpu.matmul %207, %194, %cst_137 {dimension_numbers = #tpu.dot_dimension_numbers<[1], [0], [0], [1], [0, 0, 1, 1], [], []>} : vector<2x2xf32>, vector<2x8xf32>, vector<2x8xf32> -> vector<2x8xf32>
    %c4_138 = arith.constant 4 : index
    %c16_139 = arith.constant 16 : index
    %209 = vector.load %arg26[%c4_138, %c16_139] : memref<16x32xf32, #tpu.memory_space<vmem>>, vector<2x8xf32>
    tpu.vector_store %arg26[%c4_138, %c16_139], %208 {strides = array<i32>} : memref<16x32xf32, #tpu.memory_space<vmem>>, vector<2x8xf32>,
    %c4_140 = arith.constant 4 : index
    %c24_141 = arith.constant 24 : index
    %210 = vector.load %arg25[%c4_140, %c24_141] : memref<16x96xf32, #tpu.memory_space<vmem>>, vector<2x8xf32>
    %c4_142 = arith.constant 4 : index
    %c56_143 = arith.constant 56 : index
    %211 = vector.load %arg25[%c4_142, %c56_143] : memref<16x96xf32, #tpu.memory_space<vmem>>, vector<2x8xf32>
    %c4_144 = arith.constant 4 : index
    %c88_145 = arith.constant 88 : index
    %212 = vector.load %arg25[%c4_144, %c88_145] : memref<16x96xf32, #tpu.memory_space<vmem>>, vector<2x8xf32>
    %cst_146 = arith.constant dense<0.000000e+00> : vector<2x2xf32>
    %213 = tpu.matmul %210, %211, %cst_146 {dimension_numbers = #tpu.dot_dimension_numbers<[1], [1], [0], [0], [0, 0, 1, 0], [], []>} : vector<2x8xf32>, vector<2x8xf32>, vector<2x2xf32> -> vector<2x2xf32>
    %cst_147 = arith.constant 0.353553385 : f32
    %214 = vector.broadcast %cst_147 : f32 to vector<2x2xf32>
    %215 = arith.mulf %213, %214 : vector<2x2xf32>
    %cst_148 = arith.constant dense<0xFF800000> : vector<2xf32>
    %216 = vector.multi_reduction <maximumf>, %215, %cst_148 [1] : vector<2x2xf32> to vector<2xf32>
    %217 = vector.shape_cast %216 : vector<2xf32> to vector<2x1xf32>
    %218 = vector.broadcast %217 : vector<2x1xf32> to vector<2x2xf32>
    %219 = arith.subf %215, %218 : vector<2x2xf32>
    %220 = math.exp %219 : vector<2x2xf32>
    %cst_149 = arith.constant dense<0.000000e+00> : vector<2xf32>
    %221 = vector.multi_reduction <add>, %220, %cst_149 [1] : vector<2x2xf32> to vector<2xf32>
    %222 = vector.shape_cast %221 : vector<2xf32> to vector<2x1xf32>
    %223 = tpu.reciprocal %222 {approx = true} : vector<2x1xf32> -> vector<2x1xf32>
    %224 = vector.broadcast %223 : vector<2x1xf32> to vector<2x2xf32>
    %225 = arith.mulf %220, %224 : vector<2x2xf32>
    %cst_150 = arith.constant dense<0.000000e+00> : vector<2x8xf32>
    %226 = tpu.matmul %225, %212, %cst_150 {dimension_numbers = #tpu.dot_dimension_numbers<[1], [0], [0], [1], [0, 0, 1, 1], [], []>} : vector<2x2xf32>, vector<2x8xf32>, vector<2x8xf32> -> vector<2x8xf32>
    %c4_151 = arith.constant 4 : index
    %c24_152 = arith.constant 24 : index
    %227 = vector.load %arg26[%c4_151, %c24_152] : memref<16x32xf32, #tpu.memory_space<vmem>>, vector<2x8xf32>
    tpu.vector_store %arg26[%c4_151, %c24_152], %226 {strides = array<i32>} : memref<16x32xf32, #tpu.memory_space<vmem>>, vector<2x8xf32>,
    %c6 = arith.constant 6 : index
    %c0_153 = arith.constant 0 : index
    %228 = vector.load %arg25[%c6, %c0_153] : memref<16x96xf32, #tpu.memory_space<vmem>>, vector<2x8xf32>
    %c6_154 = arith.constant 6 : index
    %c32_155 = arith.constant 32 : index
    %229 = vector.load %arg25[%c6_154, %c32_155] : memref<16x96xf32, #tpu.memory_space<vmem>>, vector<2x8xf32>
    %c6_156 = arith.constant 6 : index
    %c64_157 = arith.constant 64 : index
    %230 = vector.load %arg25[%c6_156, %c64_157] : memref<16x96xf32, #tpu.memory_space<vmem>>, vector<2x8xf32>
    %cst_158 = arith.constant dense<0.000000e+00> : vector<2x2xf32>
    %231 = tpu.matmul %228, %229, %cst_158 {dimension_numbers = #tpu.dot_dimension_numbers<[1], [1], [0], [0], [0, 0, 1, 0], [], []>} : vector<2x8xf32>, vector<2x8xf32>, vector<2x2xf32> -> vector<2x2xf32>
    %cst_159 = arith.constant 0.353553385 : f32
    %232 = vector.broadcast %cst_159 : f32 to vector<2x2xf32>
    %233 = arith.mulf %231, %232 : vector<2x2xf32>
    %cst_160 = arith.constant dense<0xFF800000> : vector<2xf32>
    %234 = vector.multi_reduction <maximumf>, %233, %cst_160 [1] : vector<2x2xf32> to vector<2xf32>
    %235 = vector.shape_cast %234 : vector<2xf32> to vector<2x1xf32>
    %236 = vector.broadcast %235 : vector<2x1xf32> to vector<2x2xf32>
    %237 = arith.subf %233, %236 : vector<2x2xf32>
    %238 = math.exp %237 : vector<2x2xf32>
    %cst_161 = arith.constant dense<0.000000e+00> : vector<2xf32>
    %239 = vector.multi_reduction <add>, %238, %cst_161 [1] : vector<2x2xf32> to vector<2xf32>
    %240 = vector.shape_cast %239 : vector<2xf32> to vector<2x1xf32>
    %241 = tpu.reciprocal %240 {approx = true} : vector<2x1xf32> -> vector<2x1xf32>
    %242 = vector.broadcast %241 : vector<2x1xf32> to vector<2x2xf32>
    %243 = arith.mulf %238, %242 : vector<2x2xf32>
    %cst_162 = arith.constant dense<0.000000e+00> : vector<2x8xf32>
    %244 = tpu.matmul %243, %230, %cst_162 {dimension_numbers = #tpu.dot_dimension_numbers<[1], [0], [0], [1], [0, 0, 1, 1], [], []>} : vector<2x2xf32>, vector<2x8xf32>, vector<2x8xf32> -> vector<2x8xf32>
    %c6_163 = arith.constant 6 : index
    %c0_164 = arith.constant 0 : index
    %245 = vector.load %arg26[%c6_163, %c0_164] : memref<16x32xf32, #tpu.memory_space<vmem>>, vector<2x8xf32>
    tpu.vector_store %arg26[%c6_163, %c0_164], %244 {strides = array<i32>} : memref<16x32xf32, #tpu.memory_space<vmem>>, vector<2x8xf32>,
    %c6_165 = arith.constant 6 : index
    %c8_166 = arith.constant 8 : index
    %246 = vector.load %arg25[%c6_165, %c8_166] : memref<16x96xf32, #tpu.memory_space<vmem>>, vector<2x8xf32>
    %c6_167 = arith.constant 6 : index
    %c40_168 = arith.constant 40 : index
    %247 = vector.load %arg25[%c6_167, %c40_168] : memref<16x96xf32, #tpu.memory_space<vmem>>, vector<2x8xf32>
    %c6_169 = arith.constant 6 : index
    %c72_170 = arith.constant 72 : index
    %248 = vector.load %arg25[%c6_169, %c72_170] : memref<16x96xf32, #tpu.memory_space<vmem>>, vector<2x8xf32>
    %cst_171 = arith.constant dense<0.000000e+00> : vector<2x2xf32>
    %249 = tpu.matmul %246, %247, %cst_171 {dimension_numbers = #tpu.dot_dimension_numbers<[1], [1], [0], [0], [0, 0, 1, 0], [], []>} : vector<2x8xf32>, vector<2x8xf32>, vector<2x2xf32> -> vector<2x2xf32>
    %cst_172 = arith.constant 0.353553385 : f32
    %250 = vector.broadcast %cst_172 : f32 to vector<2x2xf32>
    %251 = arith.mulf %249, %250 : vector<2x2xf32>
    %cst_173 = arith.constant dense<0xFF800000> : vector<2xf32>
    %252 = vector.multi_reduction <maximumf>, %251, %cst_173 [1] : vector<2x2xf32> to vector<2xf32>
    %253 = vector.shape_cast %252 : vector<2xf32> to vector<2x1xf32>
    %254 = vector.broadcast %253 : vector<2x1xf32> to vector<2x2xf32>
    %255 = arith.subf %251, %254 : vector<2x2xf32>
    %256 = math.exp %255 : vector<2x2xf32>
    %cst_174 = arith.constant dense<0.000000e+00> : vector<2xf32>
    %257 = vector.multi_reduction <add>, %256, %cst_174 [1] : vector<2x2xf32> to vector<2xf32>
    %258 = vector.shape_cast %257 : vector<2xf32> to vector<2x1xf32>
    %259 = tpu.reciprocal %258 {approx = true} : vector<2x1xf32> -> vector<2x1xf32>
    %260 = vector.broadcast %259 : vector<2x1xf32> to vector<2x2xf32>
    %261 = arith.mulf %256, %260 : vector<2x2xf32>
    %cst_175 = arith.constant dense<0.000000e+00> : vector<2x8xf32>
    %262 = tpu.matmul %261, %248, %cst_175 {dimension_numbers = #tpu.dot_dimension_numbers<[1], [0], [0], [1], [0, 0, 1, 1], [], []>} : vector<2x2xf32>, vector<2x8xf32>, vector<2x8xf32> -> vector<2x8xf32>
    %c6_176 = arith.constant 6 : index
    %c8_177 = arith.constant 8 : index
    %263 = vector.load %arg26[%c6_176, %c8_177] : memref<16x32xf32, #tpu.memory_space<vmem>>, vector<2x8xf32>
    tpu.vector_store %arg26[%c6_176, %c8_177], %262 {strides = array<i32>} : memref<16x32xf32, #tpu.memory_space<vmem>>, vector<2x8xf32>,
    %c6_178 = arith.constant 6 : index
    %c16_179 = arith.constant 16 : index
    %264 = vector.load %arg25[%c6_178, %c16_179] : memref<16x96xf32, #tpu.memory_space<vmem>>, vector<2x8xf32>
    %c6_180 = arith.constant 6 : index
    %c48_181 = arith.constant 48 : index
    %265 = vector.load %arg25[%c6_180, %c48_181] : memref<16x96xf32, #tpu.memory_space<vmem>>, vector<2x8xf32>
    %c6_182 = arith.constant 6 : index
    %c80_183 = arith.constant 80 : index
    %266 = vector.load %arg25[%c6_182, %c80_183] : memref<16x96xf32, #tpu.memory_space<vmem>>, vector<2x8xf32>
    %cst_184 = arith.constant dense<0.000000e+00> : vector<2x2xf32>
    %267 = tpu.matmul %264, %265, %cst_184 {dimension_numbers = #tpu.dot_dimension_numbers<[1], [1], [0], [0], [0, 0, 1, 0], [], []>} : vector<2x8xf32>, vector<2x8xf32>, vector<2x2xf32> -> vector<2x2xf32>
    %cst_185 = arith.constant 0.353553385 : f32
    %268 = vector.broadcast %cst_185 : f32 to vector<2x2xf32>
    %269 = arith.mulf %267, %268 : vector<2x2xf32>
    %cst_186 = arith.constant dense<0xFF800000> : vector<2xf32>
    %270 = vector.multi_reduction <maximumf>, %269, %cst_186 [1] : vector<2x2xf32> to vector<2xf32>
    %271 = vector.shape_cast %270 : vector<2xf32> to vector<2x1xf32>
    %272 = vector.broadcast %271 : vector<2x1xf32> to vector<2x2xf32>
    %273 = arith.subf %269, %272 : vector<2x2xf32>
    %274 = math.exp %273 : vector<2x2xf32>
    %cst_187 = arith.constant dense<0.000000e+00> : vector<2xf32>
    %275 = vector.multi_reduction <add>, %274, %cst_187 [1] : vector<2x2xf32> to vector<2xf32>
    %276 = vector.shape_cast %275 : vector<2xf32> to vector<2x1xf32>
    %277 = tpu.reciprocal %276 {approx = true} : vector<2x1xf32> -> vector<2x1xf32>
    %278 = vector.broadcast %277 : vector<2x1xf32> to vector<2x2xf32>
    %279 = arith.mulf %274, %278 : vector<2x2xf32>
    %cst_188 = arith.constant dense<0.000000e+00> : vector<2x8xf32>
    %280 = tpu.matmul %279, %266, %cst_188 {dimension_numbers = #tpu.dot_dimension_numbers<[1], [0], [0], [1], [0, 0, 1, 1], [], []>} : vector<2x2xf32>, vector<2x8xf32>, vector<2x8xf32> -> vector<2x8xf32>
    %c6_189 = arith.constant 6 : index
    %c16_190 = arith.constant 16 : index
    %281 = vector.load %arg26[%c6_189, %c16_190] : memref<16x32xf32, #tpu.memory_space<vmem>>, vector<2x8xf32>
    tpu.vector_store %arg26[%c6_189, %c16_190], %280 {strides = array<i32>} : memref<16x32xf32, #tpu.memory_space<vmem>>, vector<2x8xf32>,
    %c6_191 = arith.constant 6 : index
    %c24_192 = arith.constant 24 : index
    %282 = vector.load %arg25[%c6_191, %c24_192] : memref<16x96xf32, #tpu.memory_space<vmem>>, vector<2x8xf32>
    %c6_193 = arith.constant 6 : index
    %c56_194 = arith.constant 56 : index
    %283 = vector.load %arg25[%c6_193, %c56_194] : memref<16x96xf32, #tpu.memory_space<vmem>>, vector<2x8xf32>
    %c6_195 = arith.constant 6 : index
    %c88_196 = arith.constant 88 : index
    %284 = vector.load %arg25[%c6_195, %c88_196] : memref<16x96xf32, #tpu.memory_space<vmem>>, vector<2x8xf32>
    %cst_197 = arith.constant dense<0.000000e+00> : vector<2x2xf32>
    %285 = tpu.matmul %282, %283, %cst_197 {dimension_numbers = #tpu.dot_dimension_numbers<[1], [1], [0], [0], [0, 0, 1, 0], [], []>} : vector<2x8xf32>, vector<2x8xf32>, vector<2x2xf32> -> vector<2x2xf32>
    %cst_198 = arith.constant 0.353553385 : f32
    %286 = vector.broadcast %cst_198 : f32 to vector<2x2xf32>
    %287 = arith.mulf %285, %286 : vector<2x2xf32>
    %cst_199 = arith.constant dense<0xFF800000> : vector<2xf32>
    %288 = vector.multi_reduction <maximumf>, %287, %cst_199 [1] : vector<2x2xf32> to vector<2xf32>
    %289 = vector.shape_cast %288 : vector<2xf32> to vector<2x1xf32>
    %290 = vector.broadcast %289 : vector<2x1xf32> to vector<2x2xf32>
    %291 = arith.subf %287, %290 : vector<2x2xf32>
    %292 = math.exp %291 : vector<2x2xf32>
    %cst_200 = arith.constant dense<0.000000e+00> : vector<2xf32>
    %293 = vector.multi_reduction <add>, %292, %cst_200 [1] : vector<2x2xf32> to vector<2xf32>
    %294 = vector.shape_cast %293 : vector<2xf32> to vector<2x1xf32>
    %295 = tpu.reciprocal %294 {approx = true} : vector<2x1xf32> -> vector<2x1xf32>
    %296 = vector.broadcast %295 : vector<2x1xf32> to vector<2x2xf32>
    %297 = arith.mulf %292, %296 : vector<2x2xf32>
    %cst_201 = arith.constant dense<0.000000e+00> : vector<2x8xf32>
    %298 = tpu.matmul %297, %284, %cst_201 {dimension_numbers = #tpu.dot_dimension_numbers<[1], [0], [0], [1], [0, 0, 1, 1], [], []>} : vector<2x2xf32>, vector<2x8xf32>, vector<2x8xf32> -> vector<2x8xf32>
    %c6_202 = arith.constant 6 : index
    %c24_203 = arith.constant 24 : index
    %299 = vector.load %arg26[%c6_202, %c24_203] : memref<16x32xf32, #tpu.memory_space<vmem>>, vector<2x8xf32>
    tpu.vector_store %arg26[%c6_202, %c24_203], %298 {strides = array<i32>} : memref<16x32xf32, #tpu.memory_space<vmem>>, vector<2x8xf32>,
    %c8_204 = arith.constant 8 : index
    %c0_205 = arith.constant 0 : index
    %300 = vector.load %arg25[%c8_204, %c0_205] : memref<16x96xf32, #tpu.memory_space<vmem>>, vector<2x8xf32>
    %c8_206 = arith.constant 8 : index
    %c32_207 = arith.constant 32 : index
    %301 = vector.load %arg25[%c8_206, %c32_207] : memref<16x96xf32, #tpu.memory_space<vmem>>, vector<2x8xf32>
    %c8_208 = arith.constant 8 : index
    %c64_209 = arith.constant 64 : index
    %302 = vector.load %arg25[%c8_208, %c64_209] : memref<16x96xf32, #tpu.memory_space<vmem>>, vector<2x8xf32>
    %cst_210 = arith.constant dense<0.000000e+00> : vector<2x2xf32>
    %303 = tpu.matmul %300, %301, %cst_210 {dimension_numbers = #tpu.dot_dimension_numbers<[1], [1], [0], [0], [0, 0, 1, 0], [], []>} : vector<2x8xf32>, vector<2x8xf32>, vector<2x2xf32> -> vector<2x2xf32>
    %cst_211 = arith.constant 0.353553385 : f32
    %304 = vector.broadcast %cst_211 : f32 to vector<2x2xf32>
    %305 = arith.mulf %303, %304 : vector<2x2xf32>
    %cst_212 = arith.constant dense<0xFF800000> : vector<2xf32>
    %306 = vector.multi_reduction <maximumf>, %305, %cst_212 [1] : vector<2x2xf32> to vector<2xf32>
    %307 = vector.shape_cast %306 : vector<2xf32> to vector<2x1xf32>
    %308 = vector.broadcast %307 : vector<2x1xf32> to vector<2x2xf32>
    %309 = arith.subf %305, %308 : vector<2x2xf32>
    %310 = math.exp %309 : vector<2x2xf32>
    %cst_213 = arith.constant dense<0.000000e+00> : vector<2xf32>
    %311 = vector.multi_reduction <add>, %310, %cst_213 [1] : vector<2x2xf32> to vector<2xf32>
    %312 = vector.shape_cast %311 : vector<2xf32> to vector<2x1xf32>
    %313 = tpu.reciprocal %312 {approx = true} : vector<2x1xf32> -> vector<2x1xf32>
    %314 = vector.broadcast %313 : vector<2x1xf32> to vector<2x2xf32>
    %315 = arith.mulf %310, %314 : vector<2x2xf32>
    %cst_214 = arith.constant dense<0.000000e+00> : vector<2x8xf32>
    %316 = tpu.matmul %315, %302, %cst_214 {dimension_numbers = #tpu.dot_dimension_numbers<[1], [0], [0], [1], [0, 0, 1, 1], [], []>} : vector<2x2xf32>, vector<2x8xf32>, vector<2x8xf32> -> vector<2x8xf32>
    %c8_215 = arith.constant 8 : index
    %c0_216 = arith.constant 0 : index
    %317 = vector.load %arg26[%c8_215, %c0_216] : memref<16x32xf32, #tpu.memory_space<vmem>>, vector<2x8xf32>
    tpu.vector_store %arg26[%c8_215, %c0_216], %316 {strides = array<i32>} : memref<16x32xf32, #tpu.memory_space<vmem>>, vector<2x8xf32>,
    %c8_217 = arith.constant 8 : index
    %c8_218 = arith.constant 8 : index
    %318 = vector.load %arg25[%c8_217, %c8_218] : memref<16x96xf32, #tpu.memory_space<vmem>>, vector<2x8xf32>
    %c8_219 = arith.constant 8 : index
    %c40_220 = arith.constant 40 : index
    %319 = vector.load %arg25[%c8_219, %c40_220] : memref<16x96xf32, #tpu.memory_space<vmem>>, vector<2x8xf32>
    %c8_221 = arith.constant 8 : index
    %c72_222 = arith.constant 72 : index
    %320 = vector.load %arg25[%c8_221, %c72_222] : memref<16x96xf32, #tpu.memory_space<vmem>>, vector<2x8xf32>
    %cst_223 = arith.constant dense<0.000000e+00> : vector<2x2xf32>
    %321 = tpu.matmul %318, %319, %cst_223 {dimension_numbers = #tpu.dot_dimension_numbers<[1], [1], [0], [0], [0, 0, 1, 0], [], []>} : vector<2x8xf32>, vector<2x8xf32>, vector<2x2xf32> -> vector<2x2xf32>
    %cst_224 = arith.constant 0.353553385 : f32
    %322 = vector.broadcast %cst_224 : f32 to vector<2x2xf32>
    %323 = arith.mulf %321, %322 : vector<2x2xf32>
    %cst_225 = arith.constant dense<0xFF800000> : vector<2xf32>
    %324 = vector.multi_reduction <maximumf>, %323, %cst_225 [1] : vector<2x2xf32> to vector<2xf32>
    %325 = vector.shape_cast %324 : vector<2xf32> to vector<2x1xf32>
    %326 = vector.broadcast %325 : vector<2x1xf32> to vector<2x2xf32>
    %327 = arith.subf %323, %326 : vector<2x2xf32>
    %328 = math.exp %327 : vector<2x2xf32>
    %cst_226 = arith.constant dense<0.000000e+00> : vector<2xf32>
    %329 = vector.multi_reduction <add>, %328, %cst_226 [1] : vector<2x2xf32> to vector<2xf32>
    %330 = vector.shape_cast %329 : vector<2xf32> to vector<2x1xf32>
    %331 = tpu.reciprocal %330 {approx = true} : vector<2x1xf32> -> vector<2x1xf32>
    %332 = vector.broadcast %331 : vector<2x1xf32> to vector<2x2xf32>
    %333 = arith.mulf %328, %332 : vector<2x2xf32>
    %cst_227 = arith.constant dense<0.000000e+00> : vector<2x8xf32>
    %334 = tpu.matmul %333, %320, %cst_227 {dimension_numbers = #tpu.dot_dimension_numbers<[1], [0], [0], [1], [0, 0, 1, 1], [], []>} : vector<2x2xf32>, vector<2x8xf32>, vector<2x8xf32> -> vector<2x8xf32>
    %c8_228 = arith.constant 8 : index
    %c8_229 = arith.constant 8 : index
    %335 = vector.load %arg26[%c8_228, %c8_229] : memref<16x32xf32, #tpu.memory_space<vmem>>, vector<2x8xf32>
    tpu.vector_store %arg26[%c8_228, %c8_229], %334 {strides = array<i32>} : memref<16x32xf32, #tpu.memory_space<vmem>>, vector<2x8xf32>,
    %c8_230 = arith.constant 8 : index
    %c16_231 = arith.constant 16 : index
    %336 = vector.load %arg25[%c8_230, %c16_231] : memref<16x96xf32, #tpu.memory_space<vmem>>, vector<2x8xf32>
    %c8_232 = arith.constant 8 : index
    %c48_233 = arith.constant 48 : index
    %337 = vector.load %arg25[%c8_232, %c48_233] : memref<16x96xf32, #tpu.memory_space<vmem>>, vector<2x8xf32>
    %c8_234 = arith.constant 8 : index
    %c80_235 = arith.constant 80 : index
    %338 = vector.load %arg25[%c8_234, %c80_235] : memref<16x96xf32, #tpu.memory_space<vmem>>, vector<2x8xf32>
    %cst_236 = arith.constant dense<0.000000e+00> : vector<2x2xf32>
    %339 = tpu.matmul %336, %337, %cst_236 {dimension_numbers = #tpu.dot_dimension_numbers<[1], [1], [0], [0], [0, 0, 1, 0], [], []>} : vector<2x8xf32>, vector<2x8xf32>, vector<2x2xf32> -> vector<2x2xf32>
    %cst_237 = arith.constant 0.353553385 : f32
    %340 = vector.broadcast %cst_237 : f32 to vector<2x2xf32>
    %341 = arith.mulf %339, %340 : vector<2x2xf32>
    %cst_238 = arith.constant dense<0xFF800000> : vector<2xf32>
    %342 = vector.multi_reduction <maximumf>, %341, %cst_238 [1] : vector<2x2xf32> to vector<2xf32>
    %343 = vector.shape_cast %342 : vector<2xf32> to vector<2x1xf32>
    %344 = vector.broadcast %343 : vector<2x1xf32> to vector<2x2xf32>
    %345 = arith.subf %341, %344 : vector<2x2xf32>
    %346 = math.exp %345 : vector<2x2xf32>
    %cst_239 = arith.constant dense<0.000000e+00> : vector<2xf32>
    %347 = vector.multi_reduction <add>, %346, %cst_239 [1] : vector<2x2xf32> to vector<2xf32>
    %348 = vector.shape_cast %347 : vector<2xf32> to vector<2x1xf32>
    %349 = tpu.reciprocal %348 {approx = true} : vector<2x1xf32> -> vector<2x1xf32>
    %350 = vector.broadcast %349 : vector<2x1xf32> to vector<2x2xf32>
    %351 = arith.mulf %346, %350 : vector<2x2xf32>
    %cst_240 = arith.constant dense<0.000000e+00> : vector<2x8xf32>
    %352 = tpu.matmul %351, %338, %cst_240 {dimension_numbers = #tpu.dot_dimension_numbers<[1], [0], [0], [1], [0, 0, 1, 1], [], []>} : vector<2x2xf32>, vector<2x8xf32>, vector<2x8xf32> -> vector<2x8xf32>
    %c8_241 = arith.constant 8 : index
    %c16_242 = arith.constant 16 : index
    %353 = vector.load %arg26[%c8_241, %c16_242] : memref<16x32xf32, #tpu.memory_space<vmem>>, vector<2x8xf32>
    tpu.vector_store %arg26[%c8_241, %c16_242], %352 {strides = array<i32>} : memref<16x32xf32, #tpu.memory_space<vmem>>, vector<2x8xf32>,
    %c8_243 = arith.constant 8 : index
    %c24_244 = arith.constant 24 : index
    %354 = vector.load %arg25[%c8_243, %c24_244] : memref<16x96xf32, #tpu.memory_space<vmem>>, vector<2x8xf32>
    %c8_245 = arith.constant 8 : index
    %c56_246 = arith.constant 56 : index
    %355 = vector.load %arg25[%c8_245, %c56_246] : memref<16x96xf32, #tpu.memory_space<vmem>>, vector<2x8xf32>
    %c8_247 = arith.constant 8 : index
    %c88_248 = arith.constant 88 : index
    %356 = vector.load %arg25[%c8_247, %c88_248] : memref<16x96xf32, #tpu.memory_space<vmem>>, vector<2x8xf32>
    %cst_249 = arith.constant dense<0.000000e+00> : vector<2x2xf32>
    %357 = tpu.matmul %354, %355, %cst_249 {dimension_numbers = #tpu.dot_dimension_numbers<[1], [1], [0], [0], [0, 0, 1, 0], [], []>} : vector<2x8xf32>, vector<2x8xf32>, vector<2x2xf32> -> vector<2x2xf32>
    %cst_250 = arith.constant 0.353553385 : f32
    %358 = vector.broadcast %cst_250 : f32 to vector<2x2xf32>
    %359 = arith.mulf %357, %358 : vector<2x2xf32>
    %cst_251 = arith.constant dense<0xFF800000> : vector<2xf32>
    %360 = vector.multi_reduction <maximumf>, %359, %cst_251 [1] : vector<2x2xf32> to vector<2xf32>
    %361 = vector.shape_cast %360 : vector<2xf32> to vector<2x1xf32>
    %362 = vector.broadcast %361 : vector<2x1xf32> to vector<2x2xf32>
    %363 = arith.subf %359, %362 : vector<2x2xf32>
    %364 = math.exp %363 : vector<2x2xf32>
    %cst_252 = arith.constant dense<0.000000e+00> : vector<2xf32>
    %365 = vector.multi_reduction <add>, %364, %cst_252 [1] : vector<2x2xf32> to vector<2xf32>
    %366 = vector.shape_cast %365 : vector<2xf32> to vector<2x1xf32>
    %367 = tpu.reciprocal %366 {approx = true} : vector<2x1xf32> -> vector<2x1xf32>
    %368 = vector.broadcast %367 : vector<2x1xf32> to vector<2x2xf32>
    %369 = arith.mulf %364, %368 : vector<2x2xf32>
    %cst_253 = arith.constant dense<0.000000e+00> : vector<2x8xf32>
    %370 = tpu.matmul %369, %356, %cst_253 {dimension_numbers = #tpu.dot_dimension_numbers<[1], [0], [0], [1], [0, 0, 1, 1], [], []>} : vector<2x2xf32>, vector<2x8xf32>, vector<2x8xf32> -> vector<2x8xf32>
    %c8_254 = arith.constant 8 : index
    %c24_255 = arith.constant 24 : index
    %371 = vector.load %arg26[%c8_254, %c24_255] : memref<16x32xf32, #tpu.memory_space<vmem>>, vector<2x8xf32>
    tpu.vector_store %arg26[%c8_254, %c24_255], %370 {strides = array<i32>} : memref<16x32xf32, #tpu.memory_space<vmem>>, vector<2x8xf32>,
    %c10 = arith.constant 10 : index
    %c0_256 = arith.constant 0 : index
    %372 = vector.load %arg25[%c10, %c0_256] : memref<16x96xf32, #tpu.memory_space<vmem>>, vector<2x8xf32>
    %c10_257 = arith.constant 10 : index
    %c32_258 = arith.constant 32 : index
    %373 = vector.load %arg25[%c10_257, %c32_258] : memref<16x96xf32, #tpu.memory_space<vmem>>, vector<2x8xf32>
    %c10_259 = arith.constant 10 : index
    %c64_260 = arith.constant 64 : index
    %374 = vector.load %arg25[%c10_259, %c64_260] : memref<16x96xf32, #tpu.memory_space<vmem>>, vector<2x8xf32>
    %cst_261 = arith.constant dense<0.000000e+00> : vector<2x2xf32>
    %375 = tpu.matmul %372, %373, %cst_261 {dimension_numbers = #tpu.dot_dimension_numbers<[1], [1], [0], [0], [0, 0, 1, 0], [], []>} : vector<2x8xf32>, vector<2x8xf32>, vector<2x2xf32> -> vector<2x2xf32>
    %cst_262 = arith.constant 0.353553385 : f32
    %376 = vector.broadcast %cst_262 : f32 to vector<2x2xf32>
    %377 = arith.mulf %375, %376 : vector<2x2xf32>
    %cst_263 = arith.constant dense<0xFF800000> : vector<2xf32>
    %378 = vector.multi_reduction <maximumf>, %377, %cst_263 [1] : vector<2x2xf32> to vector<2xf32>
    %379 = vector.shape_cast %378 : vector<2xf32> to vector<2x1xf32>
    %380 = vector.broadcast %379 : vector<2x1xf32> to vector<2x2xf32>
    %381 = arith.subf %377, %380 : vector<2x2xf32>
    %382 = math.exp %381 : vector<2x2xf32>
    %cst_264 = arith.constant dense<0.000000e+00> : vector<2xf32>
    %383 = vector.multi_reduction <add>, %382, %cst_264 [1] : vector<2x2xf32> to vector<2xf32>
    %384 = vector.shape_cast %383 : vector<2xf32> to vector<2x1xf32>
    %385 = tpu.reciprocal %384 {approx = true} : vector<2x1xf32> -> vector<2x1xf32>
    %386 = vector.broadcast %385 : vector<2x1xf32> to vector<2x2xf32>
    %387 = arith.mulf %382, %386 : vector<2x2xf32>
    %cst_265 = arith.constant dense<0.000000e+00> : vector<2x8xf32>
    %388 = tpu.matmul %387, %374, %cst_265 {dimension_numbers = #tpu.dot_dimension_numbers<[1], [0], [0], [1], [0, 0, 1, 1], [], []>} : vector<2x2xf32>, vector<2x8xf32>, vector<2x8xf32> -> vector<2x8xf32>
    %c10_266 = arith.constant 10 : index
    %c0_267 = arith.constant 0 : index
    %389 = vector.load %arg26[%c10_266, %c0_267] : memref<16x32xf32, #tpu.memory_space<vmem>>, vector<2x8xf32>
    tpu.vector_store %arg26[%c10_266, %c0_267], %388 {strides = array<i32>} : memref<16x32xf32, #tpu.memory_space<vmem>>, vector<2x8xf32>,
    %c10_268 = arith.constant 10 : index
    %c8_269 = arith.constant 8 : index
    %390 = vector.load %arg25[%c10_268, %c8_269] : memref<16x96xf32, #tpu.memory_space<vmem>>, vector<2x8xf32>
    %c10_270 = arith.constant 10 : index
    %c40_271 = arith.constant 40 : index
    %391 = vector.load %arg25[%c10_270, %c40_271] : memref<16x96xf32, #tpu.memory_space<vmem>>, vector<2x8xf32>
    %c10_272 = arith.constant 10 : index
    %c72_273 = arith.constant 72 : index
    %392 = vector.load %arg25[%c10_272, %c72_273] : memref<16x96xf32, #tpu.memory_space<vmem>>, vector<2x8xf32>
    %cst_274 = arith.constant dense<0.000000e+00> : vector<2x2xf32>
    %393 = tpu.matmul %390, %391, %cst_274 {dimension_numbers = #tpu.dot_dimension_numbers<[1], [1], [0], [0], [0, 0, 1, 0], [], []>} : vector<2x8xf32>, vector<2x8xf32>, vector<2x2xf32> -> vector<2x2xf32>
    %cst_275 = arith.constant 0.353553385 : f32
    %394 = vector.broadcast %cst_275 : f32 to vector<2x2xf32>
    %395 = arith.mulf %393, %394 : vector<2x2xf32>
    %cst_276 = arith.constant dense<0xFF800000> : vector<2xf32>
    %396 = vector.multi_reduction <maximumf>, %395, %cst_276 [1] : vector<2x2xf32> to vector<2xf32>
    %397 = vector.shape_cast %396 : vector<2xf32> to vector<2x1xf32>
    %398 = vector.broadcast %397 : vector<2x1xf32> to vector<2x2xf32>
    %399 = arith.subf %395, %398 : vector<2x2xf32>
    %400 = math.exp %399 : vector<2x2xf32>
    %cst_277 = arith.constant dense<0.000000e+00> : vector<2xf32>
    %401 = vector.multi_reduction <add>, %400, %cst_277 [1] : vector<2x2xf32> to vector<2xf32>
    %402 = vector.shape_cast %401 : vector<2xf32> to vector<2x1xf32>
    %403 = tpu.reciprocal %402 {approx = true} : vector<2x1xf32> -> vector<2x1xf32>
    %404 = vector.broadcast %403 : vector<2x1xf32> to vector<2x2xf32>
    %405 = arith.mulf %400, %404 : vector<2x2xf32>
    %cst_278 = arith.constant dense<0.000000e+00> : vector<2x8xf32>
    %406 = tpu.matmul %405, %392, %cst_278 {dimension_numbers = #tpu.dot_dimension_numbers<[1], [0], [0], [1], [0, 0, 1, 1], [], []>} : vector<2x2xf32>, vector<2x8xf32>, vector<2x8xf32> -> vector<2x8xf32>
    %c10_279 = arith.constant 10 : index
    %c8_280 = arith.constant 8 : index
    %407 = vector.load %arg26[%c10_279, %c8_280] : memref<16x32xf32, #tpu.memory_space<vmem>>, vector<2x8xf32>
    tpu.vector_store %arg26[%c10_279, %c8_280], %406 {strides = array<i32>} : memref<16x32xf32, #tpu.memory_space<vmem>>, vector<2x8xf32>,
    %c10_281 = arith.constant 10 : index
    %c16_282 = arith.constant 16 : index
    %408 = vector.load %arg25[%c10_281, %c16_282] : memref<16x96xf32, #tpu.memory_space<vmem>>, vector<2x8xf32>
    %c10_283 = arith.constant 10 : index
    %c48_284 = arith.constant 48 : index
    %409 = vector.load %arg25[%c10_283, %c48_284] : memref<16x96xf32, #tpu.memory_space<vmem>>, vector<2x8xf32>
    %c10_285 = arith.constant 10 : index
    %c80_286 = arith.constant 80 : index
    %410 = vector.load %arg25[%c10_285, %c80_286] : memref<16x96xf32, #tpu.memory_space<vmem>>, vector<2x8xf32>
    %cst_287 = arith.constant dense<0.000000e+00> : vector<2x2xf32>
    %411 = tpu.matmul %408, %409, %cst_287 {dimension_numbers = #tpu.dot_dimension_numbers<[1], [1], [0], [0], [0, 0, 1, 0], [], []>} : vector<2x8xf32>, vector<2x8xf32>, vector<2x2xf32> -> vector<2x2xf32>
    %cst_288 = arith.constant 0.353553385 : f32
    %412 = vector.broadcast %cst_288 : f32 to vector<2x2xf32>
    %413 = arith.mulf %411, %412 : vector<2x2xf32>
    %cst_289 = arith.constant dense<0xFF800000> : vector<2xf32>
    %414 = vector.multi_reduction <maximumf>, %413, %cst_289 [1] : vector<2x2xf32> to vector<2xf32>
    %415 = vector.shape_cast %414 : vector<2xf32> to vector<2x1xf32>
    %416 = vector.broadcast %415 : vector<2x1xf32> to vector<2x2xf32>
    %417 = arith.subf %413, %416 : vector<2x2xf32>
    %418 = math.exp %417 : vector<2x2xf32>
    %cst_290 = arith.constant dense<0.000000e+00> : vector<2xf32>
    %419 = vector.multi_reduction <add>, %418, %cst_290 [1] : vector<2x2xf32> to vector<2xf32>
    %420 = vector.shape_cast %419 : vector<2xf32> to vector<2x1xf32>
    %421 = tpu.reciprocal %420 {approx = true} : vector<2x1xf32> -> vector<2x1xf32>
    %422 = vector.broadcast %421 : vector<2x1xf32> to vector<2x2xf32>
    %423 = arith.mulf %418, %422 : vector<2x2xf32>
    %cst_291 = arith.constant dense<0.000000e+00> : vector<2x8xf32>
    %424 = tpu.matmul %423, %410, %cst_291 {dimension_numbers = #tpu.dot_dimension_numbers<[1], [0], [0], [1], [0, 0, 1, 1], [], []>} : vector<2x2xf32>, vector<2x8xf32>, vector<2x8xf32> -> vector<2x8xf32>
    %c10_292 = arith.constant 10 : index
    %c16_293 = arith.constant 16 : index
    %425 = vector.load %arg26[%c10_292, %c16_293] : memref<16x32xf32, #tpu.memory_space<vmem>>, vector<2x8xf32>
    tpu.vector_store %arg26[%c10_292, %c16_293], %424 {strides = array<i32>} : memref<16x32xf32, #tpu.memory_space<vmem>>, vector<2x8xf32>,
    %c10_294 = arith.constant 10 : index
    %c24_295 = arith.constant 24 : index
    %426 = vector.load %arg25[%c10_294, %c24_295] : memref<16x96xf32, #tpu.memory_space<vmem>>, vector<2x8xf32>
    %c10_296 = arith.constant 10 : index
    %c56_297 = arith.constant 56 : index
    %427 = vector.load %arg25[%c10_296, %c56_297] : memref<16x96xf32, #tpu.memory_space<vmem>>, vector<2x8xf32>
    %c10_298 = arith.constant 10 : index
    %c88_299 = arith.constant 88 : index
    %428 = vector.load %arg25[%c10_298, %c88_299] : memref<16x96xf32, #tpu.memory_space<vmem>>, vector<2x8xf32>
    %cst_300 = arith.constant dense<0.000000e+00> : vector<2x2xf32>
    %429 = tpu.matmul %426, %427, %cst_300 {dimension_numbers = #tpu.dot_dimension_numbers<[1], [1], [0], [0], [0, 0, 1, 0], [], []>} : vector<2x8xf32>, vector<2x8xf32>, vector<2x2xf32> -> vector<2x2xf32>
    %cst_301 = arith.constant 0.353553385 : f32
    %430 = vector.broadcast %cst_301 : f32 to vector<2x2xf32>
    %431 = arith.mulf %429, %430 : vector<2x2xf32>
    %cst_302 = arith.constant dense<0xFF800000> : vector<2xf32>
    %432 = vector.multi_reduction <maximumf>, %431, %cst_302 [1] : vector<2x2xf32> to vector<2xf32>
    %433 = vector.shape_cast %432 : vector<2xf32> to vector<2x1xf32>
    %434 = vector.broadcast %433 : vector<2x1xf32> to vector<2x2xf32>
    %435 = arith.subf %431, %434 : vector<2x2xf32>
    %436 = math.exp %435 : vector<2x2xf32>
    %cst_303 = arith.constant dense<0.000000e+00> : vector<2xf32>
    %437 = vector.multi_reduction <add>, %436, %cst_303 [1] : vector<2x2xf32> to vector<2xf32>
    %438 = vector.shape_cast %437 : vector<2xf32> to vector<2x1xf32>
    %439 = tpu.reciprocal %438 {approx = true} : vector<2x1xf32> -> vector<2x1xf32>
    %440 = vector.broadcast %439 : vector<2x1xf32> to vector<2x2xf32>
    %441 = arith.mulf %436, %440 : vector<2x2xf32>
    %cst_304 = arith.constant dense<0.000000e+00> : vector<2x8xf32>
    %442 = tpu.matmul %441, %428, %cst_304 {dimension_numbers = #tpu.dot_dimension_numbers<[1], [0], [0], [1], [0, 0, 1, 1], [], []>} : vector<2x2xf32>, vector<2x8xf32>, vector<2x8xf32> -> vector<2x8xf32>
    %c10_305 = arith.constant 10 : index
    %c24_306 = arith.constant 24 : index
    %443 = vector.load %arg26[%c10_305, %c24_306] : memref<16x32xf32, #tpu.memory_space<vmem>>, vector<2x8xf32>
    tpu.vector_store %arg26[%c10_305, %c24_306], %442 {strides = array<i32>} : memref<16x32xf32, #tpu.memory_space<vmem>>, vector<2x8xf32>,
    %c12 = arith.constant 12 : index
    %c0_307 = arith.constant 0 : index
    %444 = vector.load %arg25[%c12, %c0_307] : memref<16x96xf32, #tpu.memory_space<vmem>>, vector<2x8xf32>
    %c12_308 = arith.constant 12 : index
    %c32_309 = arith.constant 32 : index
    %445 = vector.load %arg25[%c12_308, %c32_309] : memref<16x96xf32, #tpu.memory_space<vmem>>, vector<2x8xf32>
    %c12_310 = arith.constant 12 : index
    %c64_311 = arith.constant 64 : index
    %446 = vector.load %arg25[%c12_310, %c64_311] : memref<16x96xf32, #tpu.memory_space<vmem>>, vector<2x8xf32>
    %cst_312 = arith.constant dense<0.000000e+00> : vector<2x2xf32>
    %447 = tpu.matmul %444, %445, %cst_312 {dimension_numbers = #tpu.dot_dimension_numbers<[1], [1], [0], [0], [0, 0, 1, 0], [], []>} : vector<2x8xf32>, vector<2x8xf32>, vector<2x2xf32> -> vector<2x2xf32>
    %cst_313 = arith.constant 0.353553385 : f32
    %448 = vector.broadcast %cst_313 : f32 to vector<2x2xf32>
    %449 = arith.mulf %447, %448 : vector<2x2xf32>
    %cst_314 = arith.constant dense<0xFF800000> : vector<2xf32>
    %450 = vector.multi_reduction <maximumf>, %449, %cst_314 [1] : vector<2x2xf32> to vector<2xf32>
    %451 = vector.shape_cast %450 : vector<2xf32> to vector<2x1xf32>
    %452 = vector.broadcast %451 : vector<2x1xf32> to vector<2x2xf32>
    %453 = arith.subf %449, %452 : vector<2x2xf32>
    %454 = math.exp %453 : vector<2x2xf32>
    %cst_315 = arith.constant dense<0.000000e+00> : vector<2xf32>
    %455 = vector.multi_reduction <add>, %454, %cst_315 [1] : vector<2x2xf32> to vector<2xf32>
    %456 = vector.shape_cast %455 : vector<2xf32> to vector<2x1xf32>
    %457 = tpu.reciprocal %456 {approx = true} : vector<2x1xf32> -> vector<2x1xf32>
    %458 = vector.broadcast %457 : vector<2x1xf32> to vector<2x2xf32>
    %459 = arith.mulf %454, %458 : vector<2x2xf32>
    %cst_316 = arith.constant dense<0.000000e+00> : vector<2x8xf32>
    %460 = tpu.matmul %459, %446, %cst_316 {dimension_numbers = #tpu.dot_dimension_numbers<[1], [0], [0], [1], [0, 0, 1, 1], [], []>} : vector<2x2xf32>, vector<2x8xf32>, vector<2x8xf32> -> vector<2x8xf32>
    %c12_317 = arith.constant 12 : index
    %c0_318 = arith.constant 0 : index
    %461 = vector.load %arg26[%c12_317, %c0_318] : memref<16x32xf32, #tpu.memory_space<vmem>>, vector<2x8xf32>
    tpu.vector_store %arg26[%c12_317, %c0_318], %460 {strides = array<i32>} : memref<16x32xf32, #tpu.memory_space<vmem>>, vector<2x8xf32>,
    %c12_319 = arith.constant 12 : index
    %c8_320 = arith.constant 8 : index
    %462 = vector.load %arg25[%c12_319, %c8_320] : memref<16x96xf32, #tpu.memory_space<vmem>>, vector<2x8xf32>
    %c12_321 = arith.constant 12 : index
    %c40_322 = arith.constant 40 : index
    %463 = vector.load %arg25[%c12_321, %c40_322] : memref<16x96xf32, #tpu.memory_space<vmem>>, vector<2x8xf32>
    %c12_323 = arith.constant 12 : index
    %c72_324 = arith.constant 72 : index
    %464 = vector.load %arg25[%c12_323, %c72_324] : memref<16x96xf32, #tpu.memory_space<vmem>>, vector<2x8xf32>
    %cst_325 = arith.constant dense<0.000000e+00> : vector<2x2xf32>
    %465 = tpu.matmul %462, %463, %cst_325 {dimension_numbers = #tpu.dot_dimension_numbers<[1], [1], [0], [0], [0, 0, 1, 0], [], []>} : vector<2x8xf32>, vector<2x8xf32>, vector<2x2xf32> -> vector<2x2xf32>
    %cst_326 = arith.constant 0.353553385 : f32
    %466 = vector.broadcast %cst_326 : f32 to vector<2x2xf32>
    %467 = arith.mulf %465, %466 : vector<2x2xf32>
    %cst_327 = arith.constant dense<0xFF800000> : vector<2xf32>
    %468 = vector.multi_reduction <maximumf>, %467, %cst_327 [1] : vector<2x2xf32> to vector<2xf32>
    %469 = vector.shape_cast %468 : vector<2xf32> to vector<2x1xf32>
    %470 = vector.broadcast %469 : vector<2x1xf32> to vector<2x2xf32>
    %471 = arith.subf %467, %470 : vector<2x2xf32>
    %472 = math.exp %471 : vector<2x2xf32>
    %cst_328 = arith.constant dense<0.000000e+00> : vector<2xf32>
    %473 = vector.multi_reduction <add>, %472, %cst_328 [1] : vector<2x2xf32> to vector<2xf32>
    %474 = vector.shape_cast %473 : vector<2xf32> to vector<2x1xf32>
    %475 = tpu.reciprocal %474 {approx = true} : vector<2x1xf32> -> vector<2x1xf32>
    %476 = vector.broadcast %475 : vector<2x1xf32> to vector<2x2xf32>
    %477 = arith.mulf %472, %476 : vector<2x2xf32>
    %cst_329 = arith.constant dense<0.000000e+00> : vector<2x8xf32>
    %478 = tpu.matmul %477, %464, %cst_329 {dimension_numbers = #tpu.dot_dimension_numbers<[1], [0], [0], [1], [0, 0, 1, 1], [], []>} : vector<2x2xf32>, vector<2x8xf32>, vector<2x8xf32> -> vector<2x8xf32>
    %c12_330 = arith.constant 12 : index
    %c8_331 = arith.constant 8 : index
    %479 = vector.load %arg26[%c12_330, %c8_331] : memref<16x32xf32, #tpu.memory_space<vmem>>, vector<2x8xf32>
    tpu.vector_store %arg26[%c12_330, %c8_331], %478 {strides = array<i32>} : memref<16x32xf32, #tpu.memory_space<vmem>>, vector<2x8xf32>,
    %c12_332 = arith.constant 12 : index
    %c16_333 = arith.constant 16 : index
    %480 = vector.load %arg25[%c12_332, %c16_333] : memref<16x96xf32, #tpu.memory_space<vmem>>, vector<2x8xf32>
    %c12_334 = arith.constant 12 : index
    %c48_335 = arith.constant 48 : index
    %481 = vector.load %arg25[%c12_334, %c48_335] : memref<16x96xf32, #tpu.memory_space<vmem>>, vector<2x8xf32>
    %c12_336 = arith.constant 12 : index
    %c80_337 = arith.constant 80 : index
    %482 = vector.load %arg25[%c12_336, %c80_337] : memref<16x96xf32, #tpu.memory_space<vmem>>, vector<2x8xf32>
    %cst_338 = arith.constant dense<0.000000e+00> : vector<2x2xf32>
    %483 = tpu.matmul %480, %481, %cst_338 {dimension_numbers = #tpu.dot_dimension_numbers<[1], [1], [0], [0], [0, 0, 1, 0], [], []>} : vector<2x8xf32>, vector<2x8xf32>, vector<2x2xf32> -> vector<2x2xf32>
    %cst_339 = arith.constant 0.353553385 : f32
    %484 = vector.broadcast %cst_339 : f32 to vector<2x2xf32>
    %485 = arith.mulf %483, %484 : vector<2x2xf32>
    %cst_340 = arith.constant dense<0xFF800000> : vector<2xf32>
    %486 = vector.multi_reduction <maximumf>, %485, %cst_340 [1] : vector<2x2xf32> to vector<2xf32>
    %487 = vector.shape_cast %486 : vector<2xf32> to vector<2x1xf32>
    %488 = vector.broadcast %487 : vector<2x1xf32> to vector<2x2xf32>
    %489 = arith.subf %485, %488 : vector<2x2xf32>
    %490 = math.exp %489 : vector<2x2xf32>
    %cst_341 = arith.constant dense<0.000000e+00> : vector<2xf32>
    %491 = vector.multi_reduction <add>, %490, %cst_341 [1] : vector<2x2xf32> to vector<2xf32>
    %492 = vector.shape_cast %491 : vector<2xf32> to vector<2x1xf32>
    %493 = tpu.reciprocal %492 {approx = true} : vector<2x1xf32> -> vector<2x1xf32>
    %494 = vector.broadcast %493 : vector<2x1xf32> to vector<2x2xf32>
    %495 = arith.mulf %490, %494 : vector<2x2xf32>
    %cst_342 = arith.constant dense<0.000000e+00> : vector<2x8xf32>
    %496 = tpu.matmul %495, %482, %cst_342 {dimension_numbers = #tpu.dot_dimension_numbers<[1], [0], [0], [1], [0, 0, 1, 1], [], []>} : vector<2x2xf32>, vector<2x8xf32>, vector<2x8xf32> -> vector<2x8xf32>
    %c12_343 = arith.constant 12 : index
    %c16_344 = arith.constant 16 : index
    %497 = vector.load %arg26[%c12_343, %c16_344] : memref<16x32xf32, #tpu.memory_space<vmem>>, vector<2x8xf32>
    tpu.vector_store %arg26[%c12_343, %c16_344], %496 {strides = array<i32>} : memref<16x32xf32, #tpu.memory_space<vmem>>, vector<2x8xf32>,
    %c12_345 = arith.constant 12 : index
    %c24_346 = arith.constant 24 : index
    %498 = vector.load %arg25[%c12_345, %c24_346] : memref<16x96xf32, #tpu.memory_space<vmem>>, vector<2x8xf32>
    %c12_347 = arith.constant 12 : index
    %c56_348 = arith.constant 56 : index
    %499 = vector.load %arg25[%c12_347, %c56_348] : memref<16x96xf32, #tpu.memory_space<vmem>>, vector<2x8xf32>
    %c12_349 = arith.constant 12 : index
    %c88_350 = arith.constant 88 : index
    %500 = vector.load %arg25[%c12_349, %c88_350] : memref<16x96xf32, #tpu.memory_space<vmem>>, vector<2x8xf32>
    %cst_351 = arith.constant dense<0.000000e+00> : vector<2x2xf32>
    %501 = tpu.matmul %498, %499, %cst_351 {dimension_numbers = #tpu.dot_dimension_numbers<[1], [1], [0], [0], [0, 0, 1, 0], [], []>} : vector<2x8xf32>, vector<2x8xf32>, vector<2x2xf32> -> vector<2x2xf32>
    %cst_352 = arith.constant 0.353553385 : f32
    %502 = vector.broadcast %cst_352 : f32 to vector<2x2xf32>
    %503 = arith.mulf %501, %502 : vector<2x2xf32>
    %cst_353 = arith.constant dense<0xFF800000> : vector<2xf32>
    %504 = vector.multi_reduction <maximumf>, %503, %cst_353 [1] : vector<2x2xf32> to vector<2xf32>
    %505 = vector.shape_cast %504 : vector<2xf32> to vector<2x1xf32>
    %506 = vector.broadcast %505 : vector<2x1xf32> to vector<2x2xf32>
    %507 = arith.subf %503, %506 : vector<2x2xf32>
    %508 = math.exp %507 : vector<2x2xf32>
    %cst_354 = arith.constant dense<0.000000e+00> : vector<2xf32>
    %509 = vector.multi_reduction <add>, %508, %cst_354 [1] : vector<2x2xf32> to vector<2xf32>
    %510 = vector.shape_cast %509 : vector<2xf32> to vector<2x1xf32>
    %511 = tpu.reciprocal %510 {approx = true} : vector<2x1xf32> -> vector<2x1xf32>
    %512 = vector.broadcast %511 : vector<2x1xf32> to vector<2x2xf32>
    %513 = arith.mulf %508, %512 : vector<2x2xf32>
    %cst_355 = arith.constant dense<0.000000e+00> : vector<2x8xf32>
    %514 = tpu.matmul %513, %500, %cst_355 {dimension_numbers = #tpu.dot_dimension_numbers<[1], [0], [0], [1], [0, 0, 1, 1], [], []>} : vector<2x2xf32>, vector<2x8xf32>, vector<2x8xf32> -> vector<2x8xf32>
    %c12_356 = arith.constant 12 : index
    %c24_357 = arith.constant 24 : index
    %515 = vector.load %arg26[%c12_356, %c24_357] : memref<16x32xf32, #tpu.memory_space<vmem>>, vector<2x8xf32>
    tpu.vector_store %arg26[%c12_356, %c24_357], %514 {strides = array<i32>} : memref<16x32xf32, #tpu.memory_space<vmem>>, vector<2x8xf32>,
    %c14 = arith.constant 14 : index
    %c0_358 = arith.constant 0 : index
    %516 = vector.load %arg25[%c14, %c0_358] : memref<16x96xf32, #tpu.memory_space<vmem>>, vector<2x8xf32>
    %c14_359 = arith.constant 14 : index
    %c32_360 = arith.constant 32 : index
    %517 = vector.load %arg25[%c14_359, %c32_360] : memref<16x96xf32, #tpu.memory_space<vmem>>, vector<2x8xf32>
    %c14_361 = arith.constant 14 : index
    %c64_362 = arith.constant 64 : index
    %518 = vector.load %arg25[%c14_361, %c64_362] : memref<16x96xf32, #tpu.memory_space<vmem>>, vector<2x8xf32>
    %cst_363 = arith.constant dense<0.000000e+00> : vector<2x2xf32>
    %519 = tpu.matmul %516, %517, %cst_363 {dimension_numbers = #tpu.dot_dimension_numbers<[1], [1], [0], [0], [0, 0, 1, 0], [], []>} : vector<2x8xf32>, vector<2x8xf32>, vector<2x2xf32> -> vector<2x2xf32>
    %cst_364 = arith.constant 0.353553385 : f32
    %520 = vector.broadcast %cst_364 : f32 to vector<2x2xf32>
    %521 = arith.mulf %519, %520 : vector<2x2xf32>
    %cst_365 = arith.constant dense<0xFF800000> : vector<2xf32>
    %522 = vector.multi_reduction <maximumf>, %521, %cst_365 [1] : vector<2x2xf32> to vector<2xf32>
    %523 = vector.shape_cast %522 : vector<2xf32> to vector<2x1xf32>
    %524 = vector.broadcast %523 : vector<2x1xf32> to vector<2x2xf32>
    %525 = arith.subf %521, %524 : vector<2x2xf32>
    %526 = math.exp %525 : vector<2x2xf32>
    %cst_366 = arith.constant dense<0.000000e+00> : vector<2xf32>
    %527 = vector.multi_reduction <add>, %526, %cst_366 [1] : vector<2x2xf32> to vector<2xf32>
    %528 = vector.shape_cast %527 : vector<2xf32> to vector<2x1xf32>
    %529 = tpu.reciprocal %528 {approx = true} : vector<2x1xf32> -> vector<2x1xf32>
    %530 = vector.broadcast %529 : vector<2x1xf32> to vector<2x2xf32>
    %531 = arith.mulf %526, %530 : vector<2x2xf32>
    %cst_367 = arith.constant dense<0.000000e+00> : vector<2x8xf32>
    %532 = tpu.matmul %531, %518, %cst_367 {dimension_numbers = #tpu.dot_dimension_numbers<[1], [0], [0], [1], [0, 0, 1, 1], [], []>} : vector<2x2xf32>, vector<2x8xf32>, vector<2x8xf32> -> vector<2x8xf32>
    %c14_368 = arith.constant 14 : index
    %c0_369 = arith.constant 0 : index
    %533 = vector.load %arg26[%c14_368, %c0_369] : memref<16x32xf32, #tpu.memory_space<vmem>>, vector<2x8xf32>
    tpu.vector_store %arg26[%c14_368, %c0_369], %532 {strides = array<i32>} : memref<16x32xf32, #tpu.memory_space<vmem>>, vector<2x8xf32>,
    %c14_370 = arith.constant 14 : index
    %c8_371 = arith.constant 8 : index
    %534 = vector.load %arg25[%c14_370, %c8_371] : memref<16x96xf32, #tpu.memory_space<vmem>>, vector<2x8xf32>
    %c14_372 = arith.constant 14 : index
    %c40_373 = arith.constant 40 : index
    %535 = vector.load %arg25[%c14_372, %c40_373] : memref<16x96xf32, #tpu.memory_space<vmem>>, vector<2x8xf32>
    %c14_374 = arith.constant 14 : index
    %c72_375 = arith.constant 72 : index
    %536 = vector.load %arg25[%c14_374, %c72_375] : memref<16x96xf32, #tpu.memory_space<vmem>>, vector<2x8xf32>
    %cst_376 = arith.constant dense<0.000000e+00> : vector<2x2xf32>
    %537 = tpu.matmul %534, %535, %cst_376 {dimension_numbers = #tpu.dot_dimension_numbers<[1], [1], [0], [0], [0, 0, 1, 0], [], []>} : vector<2x8xf32>, vector<2x8xf32>, vector<2x2xf32> -> vector<2x2xf32>
    %cst_377 = arith.constant 0.353553385 : f32
    %538 = vector.broadcast %cst_377 : f32 to vector<2x2xf32>
    %539 = arith.mulf %537, %538 : vector<2x2xf32>
    %cst_378 = arith.constant dense<0xFF800000> : vector<2xf32>
    %540 = vector.multi_reduction <maximumf>, %539, %cst_378 [1] : vector<2x2xf32> to vector<2xf32>
    %541 = vector.shape_cast %540 : vector<2xf32> to vector<2x1xf32>
    %542 = vector.broadcast %541 : vector<2x1xf32> to vector<2x2xf32>
    %543 = arith.subf %539, %542 : vector<2x2xf32>
    %544 = math.exp %543 : vector<2x2xf32>
    %cst_379 = arith.constant dense<0.000000e+00> : vector<2xf32>
    %545 = vector.multi_reduction <add>, %544, %cst_379 [1] : vector<2x2xf32> to vector<2xf32>
    %546 = vector.shape_cast %545 : vector<2xf32> to vector<2x1xf32>
    %547 = tpu.reciprocal %546 {approx = true} : vector<2x1xf32> -> vector<2x1xf32>
    %548 = vector.broadcast %547 : vector<2x1xf32> to vector<2x2xf32>
    %549 = arith.mulf %544, %548 : vector<2x2xf32>
    %cst_380 = arith.constant dense<0.000000e+00> : vector<2x8xf32>
    %550 = tpu.matmul %549, %536, %cst_380 {dimension_numbers = #tpu.dot_dimension_numbers<[1], [0], [0], [1], [0, 0, 1, 1], [], []>} : vector<2x2xf32>, vector<2x8xf32>, vector<2x8xf32> -> vector<2x8xf32>
    %c14_381 = arith.constant 14 : index
    %c8_382 = arith.constant 8 : index
    %551 = vector.load %arg26[%c14_381, %c8_382] : memref<16x32xf32, #tpu.memory_space<vmem>>, vector<2x8xf32>
    tpu.vector_store %arg26[%c14_381, %c8_382], %550 {strides = array<i32>} : memref<16x32xf32, #tpu.memory_space<vmem>>, vector<2x8xf32>,
    %c14_383 = arith.constant 14 : index
    %c16_384 = arith.constant 16 : index
    %552 = vector.load %arg25[%c14_383, %c16_384] : memref<16x96xf32, #tpu.memory_space<vmem>>, vector<2x8xf32>
    %c14_385 = arith.constant 14 : index
    %c48_386 = arith.constant 48 : index
    %553 = vector.load %arg25[%c14_385, %c48_386] : memref<16x96xf32, #tpu.memory_space<vmem>>, vector<2x8xf32>
    %c14_387 = arith.constant 14 : index
    %c80_388 = arith.constant 80 : index
    %554 = vector.load %arg25[%c14_387, %c80_388] : memref<16x96xf32, #tpu.memory_space<vmem>>, vector<2x8xf32>
    %cst_389 = arith.constant dense<0.000000e+00> : vector<2x2xf32>
    %555 = tpu.matmul %552, %553, %cst_389 {dimension_numbers = #tpu.dot_dimension_numbers<[1], [1], [0], [0], [0, 0, 1, 0], [], []>} : vector<2x8xf32>, vector<2x8xf32>, vector<2x2xf32> -> vector<2x2xf32>
    %cst_390 = arith.constant 0.353553385 : f32
    %556 = vector.broadcast %cst_390 : f32 to vector<2x2xf32>
    %557 = arith.mulf %555, %556 : vector<2x2xf32>
    %cst_391 = arith.constant dense<0xFF800000> : vector<2xf32>
    %558 = vector.multi_reduction <maximumf>, %557, %cst_391 [1] : vector<2x2xf32> to vector<2xf32>
    %559 = vector.shape_cast %558 : vector<2xf32> to vector<2x1xf32>
    %560 = vector.broadcast %559 : vector<2x1xf32> to vector<2x2xf32>
    %561 = arith.subf %557, %560 : vector<2x2xf32>
    %562 = math.exp %561 : vector<2x2xf32>
    %cst_392 = arith.constant dense<0.000000e+00> : vector<2xf32>
    %563 = vector.multi_reduction <add>, %562, %cst_392 [1] : vector<2x2xf32> to vector<2xf32>
    %564 = vector.shape_cast %563 : vector<2xf32> to vector<2x1xf32>
    %565 = tpu.reciprocal %564 {approx = true} : vector<2x1xf32> -> vector<2x1xf32>
    %566 = vector.broadcast %565 : vector<2x1xf32> to vector<2x2xf32>
    %567 = arith.mulf %562, %566 : vector<2x2xf32>
    %cst_393 = arith.constant dense<0.000000e+00> : vector<2x8xf32>
    %568 = tpu.matmul %567, %554, %cst_393 {dimension_numbers = #tpu.dot_dimension_numbers<[1], [0], [0], [1], [0, 0, 1, 1], [], []>} : vector<2x2xf32>, vector<2x8xf32>, vector<2x8xf32> -> vector<2x8xf32>
    %c14_394 = arith.constant 14 : index
    %c16_395 = arith.constant 16 : index
    %569 = vector.load %arg26[%c14_394, %c16_395] : memref<16x32xf32, #tpu.memory_space<vmem>>, vector<2x8xf32>
    tpu.vector_store %arg26[%c14_394, %c16_395], %568 {strides = array<i32>} : memref<16x32xf32, #tpu.memory_space<vmem>>, vector<2x8xf32>,
    %c14_396 = arith.constant 14 : index
    %c24_397 = arith.constant 24 : index
    %570 = vector.load %arg25[%c14_396, %c24_397] : memref<16x96xf32, #tpu.memory_space<vmem>>, vector<2x8xf32>
    %c14_398 = arith.constant 14 : index
    %c56_399 = arith.constant 56 : index
    %571 = vector.load %arg25[%c14_398, %c56_399] : memref<16x96xf32, #tpu.memory_space<vmem>>, vector<2x8xf32>
    %c14_400 = arith.constant 14 : index
    %c88_401 = arith.constant 88 : index
    %572 = vector.load %arg25[%c14_400, %c88_401] : memref<16x96xf32, #tpu.memory_space<vmem>>, vector<2x8xf32>
    %cst_402 = arith.constant dense<0.000000e+00> : vector<2x2xf32>
    %573 = tpu.matmul %570, %571, %cst_402 {dimension_numbers = #tpu.dot_dimension_numbers<[1], [1], [0], [0], [0, 0, 1, 0], [], []>} : vector<2x8xf32>, vector<2x8xf32>, vector<2x2xf32> -> vector<2x2xf32>
    %cst_403 = arith.constant 0.353553385 : f32
    %574 = vector.broadcast %cst_403 : f32 to vector<2x2xf32>
    %575 = arith.mulf %573, %574 : vector<2x2xf32>
    %cst_404 = arith.constant dense<0xFF800000> : vector<2xf32>
    %576 = vector.multi_reduction <maximumf>, %575, %cst_404 [1] : vector<2x2xf32> to vector<2xf32>
    %577 = vector.shape_cast %576 : vector<2xf32> to vector<2x1xf32>
    %578 = vector.broadcast %577 : vector<2x1xf32> to vector<2x2xf32>
    %579 = arith.subf %575, %578 : vector<2x2xf32>
    %580 = math.exp %579 : vector<2x2xf32>
    %cst_405 = arith.constant dense<0.000000e+00> : vector<2xf32>
    %581 = vector.multi_reduction <add>, %580, %cst_405 [1] : vector<2x2xf32> to vector<2xf32>
    %582 = vector.shape_cast %581 : vector<2xf32> to vector<2x1xf32>
    %583 = tpu.reciprocal %582 {approx = true} : vector<2x1xf32> -> vector<2x1xf32>
    %584 = vector.broadcast %583 : vector<2x1xf32> to vector<2x2xf32>
    %585 = arith.mulf %580, %584 : vector<2x2xf32>
    %cst_406 = arith.constant dense<0.000000e+00> : vector<2x8xf32>
    %586 = tpu.matmul %585, %572, %cst_406 {dimension_numbers = #tpu.dot_dimension_numbers<[1], [0], [0], [1], [0, 0, 1, 1], [], []>} : vector<2x2xf32>, vector<2x8xf32>, vector<2x8xf32> -> vector<2x8xf32>
    %c14_407 = arith.constant 14 : index
    %c24_408 = arith.constant 24 : index
    %587 = vector.load %arg26[%c14_407, %c24_408] : memref<16x32xf32, #tpu.memory_space<vmem>>, vector<2x8xf32>
    tpu.vector_store %arg26[%c14_407, %c24_408], %586 {strides = array<i32>} : memref<16x32xf32, #tpu.memory_space<vmem>>, vector<2x8xf32>,
    %c0_409 = arith.constant 0 : index
    %c0_410 = arith.constant 0 : index
    %588 = vector.load %arg26[%c0_409, %c0_410] : memref<16x32xf32, #tpu.memory_space<vmem>>, vector<16x32xf32>
    %c0_411 = arith.constant 0 : index
    %c0_412 = arith.constant 0 : index
    %c0_413 = arith.constant 0 : index
    %589 = vector.load %arg7[%c0_411, %c0_412, %c0_413] : memref<1x32x32xf32, #tpu.memory_space<vmem>>, vector<1x32x32xf32>
    %590 = vector.shape_cast %589 : vector<1x32x32xf32> to vector<32x32xf32>
    %cst_414 = arith.constant dense<0.000000e+00> : vector<16x32xf32>
    %591 = tpu.matmul %588, %590, %cst_414 {dimension_numbers = #tpu.dot_dimension_numbers<[1], [0], [0], [1], [0, 0, 1, 1], [], []>} : vector<16x32xf32>, vector<32x32xf32>, vector<16x32xf32> -> vector<16x32xf32>
    %c0_415 = arith.constant 0 : index
    %c0_416 = arith.constant 0 : index
    %c0_417 = arith.constant 0 : index
    %592 = vector.load %arg8[%c0_415, %c0_416, %c0_417] : memref<1x1x32xf32, #tpu.memory_space<vmem>>, vector<1x1x32xf32>
    %593 = vector.shape_cast %592 : vector<1x1x32xf32> to vector<1x32xf32>
    %594 = vector.broadcast %593 : vector<1x32xf32> to vector<16x32xf32>
    %595 = arith.addf %591, %594 : vector<16x32xf32>
    %596 = arith.addf %3, %595 : vector<16x32xf32>
    %cst_418 = arith.constant dense<0.000000e+00> : vector<16xf32>
    %597 = vector.multi_reduction <add>, %596, %cst_418 [1] : vector<16x32xf32> to vector<16xf32>
    %598 = vector.shape_cast %597 : vector<16xf32> to vector<16x1xf32>
    %cst_419 = arith.constant 3.200000e+01 : f32
    %599 = vector.broadcast %cst_419 : f32 to vector<16x1xf32>
    %600 = arith.divf %598, %599 : vector<16x1xf32>
    %601 = vector.broadcast %600 : vector<16x1xf32> to vector<16x32xf32>
    %602 = arith.subf %596, %601 : vector<16x32xf32>
    %603 = arith.mulf %602, %602 : vector<16x32xf32>
    %cst_420 = arith.constant dense<0.000000e+00> : vector<16xf32>
    %604 = vector.multi_reduction <add>, %603, %cst_420 [1] : vector<16x32xf32> to vector<16xf32>
    %605 = vector.shape_cast %604 : vector<16xf32> to vector<16x1xf32>
    %cst_421 = arith.constant 3.200000e+01 : f32
    %606 = vector.broadcast %cst_421 : f32 to vector<16x1xf32>
    %607 = arith.divf %605, %606 : vector<16x1xf32>
    %608 = vector.broadcast %600 : vector<16x1xf32> to vector<16x32xf32>
    %609 = arith.subf %596, %608 : vector<16x32xf32>
    %cst_422 = arith.constant 9.99999974E-6 : f32
    %610 = vector.broadcast %cst_422 : f32 to vector<16x1xf32>
    %611 = arith.addf %607, %610 : vector<16x1xf32>
    %612 = math.rsqrt %611 : vector<16x1xf32>
    %613 = vector.broadcast %612 : vector<16x1xf32> to vector<16x32xf32>
    %614 = arith.mulf %609, %613 : vector<16x32xf32>
    %c0_423 = arith.constant 0 : index
    %c0_424 = arith.constant 0 : index
    %c0_425 = arith.constant 0 : index
    %615 = vector.load %arg9[%c0_423, %c0_424, %c0_425] : memref<1x1x32xf32, #tpu.memory_space<vmem>>, vector<1x1x32xf32>
    %616 = vector.shape_cast %615 : vector<1x1x32xf32> to vector<1x32xf32>
    %617 = vector.broadcast %616 : vector<1x32xf32> to vector<16x32xf32>
    %618 = arith.mulf %614, %617 : vector<16x32xf32>
    %c0_426 = arith.constant 0 : index
    %c0_427 = arith.constant 0 : index
    %c0_428 = arith.constant 0 : index
    %619 = vector.load %arg10[%c0_426, %c0_427, %c0_428] : memref<1x1x32xf32, #tpu.memory_space<vmem>>, vector<1x1x32xf32>
    %620 = vector.shape_cast %619 : vector<1x1x32xf32> to vector<1x32xf32>
    %621 = vector.broadcast %620 : vector<1x32xf32> to vector<16x32xf32>
    %622 = arith.addf %618, %621 : vector<16x32xf32>
    %c0_429 = arith.constant 0 : index
    %c0_430 = arith.constant 0 : index
    %c0_431 = arith.constant 0 : index
    %623 = vector.load %arg11[%c0_429, %c0_430, %c0_431] : memref<1x32x128xf32, #tpu.memory_space<vmem>>, vector<1x32x128xf32>
    %624 = vector.shape_cast %623 : vector<1x32x128xf32> to vector<32x128xf32>
    %cst_432 = arith.constant dense<0.000000e+00> : vector<16x128xf32>
    %625 = tpu.matmul %622, %624, %cst_432 {dimension_numbers = #tpu.dot_dimension_numbers<[1], [0], [0], [1], [0, 0, 1, 1], [], []>} : vector<16x32xf32>, vector<32x128xf32>, vector<16x128xf32> -> vector<16x128xf32>
    %c0_433 = arith.constant 0 : index
    %c0_434 = arith.constant 0 : index
    %c0_435 = arith.constant 0 : index
    %626 = vector.load %arg12[%c0_433, %c0_434, %c0_435] : memref<1x1x128xf32, #tpu.memory_space<vmem>>, vector<1x1x128xf32>
    %627 = vector.shape_cast %626 : vector<1x1x128xf32> to vector<1x128xf32>
    %628 = vector.broadcast %627 : vector<1x128xf32> to vector<16x128xf32>
    %629 = arith.addf %625, %628 : vector<16x128xf32>
    %cst_436 = arith.constant 0.000000e+00 : f32
    %630 = vector.broadcast %cst_436 : f32 to vector<16x128xf32>
    %631 = arith.maximumf %629, %630 : vector<16x128xf32>
    %c0_437 = arith.constant 0 : index
    %c0_438 = arith.constant 0 : index
    %c0_439 = arith.constant 0 : index
    %632 = vector.load %arg13[%c0_437, %c0_438, %c0_439] : memref<1x128x32xf32, #tpu.memory_space<vmem>>, vector<1x128x32xf32>
    %633 = vector.shape_cast %632 : vector<1x128x32xf32> to vector<128x32xf32>
    %cst_440 = arith.constant dense<0.000000e+00> : vector<16x32xf32>
    %634 = tpu.matmul %631, %633, %cst_440 {dimension_numbers = #tpu.dot_dimension_numbers<[1], [0], [0], [1], [0, 0, 1, 1], [], []>} : vector<16x128xf32>, vector<128x32xf32>, vector<16x32xf32> -> vector<16x32xf32>
    %c0_441 = arith.constant 0 : index
    %c0_442 = arith.constant 0 : index
    %c0_443 = arith.constant 0 : index
    %635 = vector.load %arg14[%c0_441, %c0_442, %c0_443] : memref<1x1x32xf32, #tpu.memory_space<vmem>>, vector<1x1x32xf32>
    %636 = vector.shape_cast %635 : vector<1x1x32xf32> to vector<1x32xf32>
    %637 = vector.broadcast %636 : vector<1x32xf32> to vector<16x32xf32>
    %638 = arith.addf %634, %637 : vector<16x32xf32>
    %639 = arith.addf %622, %638 : vector<16x32xf32>
    %cst_444 = arith.constant dense<0.000000e+00> : vector<16xf32>
    %640 = vector.multi_reduction <add>, %639, %cst_444 [1] : vector<16x32xf32> to vector<16xf32>
    %641 = vector.shape_cast %640 : vector<16xf32> to vector<16x1xf32>
    %cst_445 = arith.constant 3.200000e+01 : f32
    %642 = vector.broadcast %cst_445 : f32 to vector<16x1xf32>
    %643 = arith.divf %641, %642 : vector<16x1xf32>
    %644 = vector.broadcast %643 : vector<16x1xf32> to vector<16x32xf32>
    %645 = arith.subf %639, %644 : vector<16x32xf32>
    %646 = arith.mulf %645, %645 : vector<16x32xf32>
    %cst_446 = arith.constant dense<0.000000e+00> : vector<16xf32>
    %647 = vector.multi_reduction <add>, %646, %cst_446 [1] : vector<16x32xf32> to vector<16xf32>
    %648 = vector.shape_cast %647 : vector<16xf32> to vector<16x1xf32>
    %cst_447 = arith.constant 3.200000e+01 : f32
    %649 = vector.broadcast %cst_447 : f32 to vector<16x1xf32>
    %650 = arith.divf %648, %649 : vector<16x1xf32>
    %651 = vector.broadcast %643 : vector<16x1xf32> to vector<16x32xf32>
    %652 = arith.subf %639, %651 : vector<16x32xf32>
    %cst_448 = arith.constant 9.99999974E-6 : f32
    %653 = vector.broadcast %cst_448 : f32 to vector<16x1xf32>
    %654 = arith.addf %650, %653 : vector<16x1xf32>
    %655 = math.rsqrt %654 : vector<16x1xf32>
    %656 = vector.broadcast %655 : vector<16x1xf32> to vector<16x32xf32>
    %657 = arith.mulf %652, %656 : vector<16x32xf32>
    %c0_449 = arith.constant 0 : index
    %c0_450 = arith.constant 0 : index
    %c0_451 = arith.constant 0 : index
    %658 = vector.load %arg15[%c0_449, %c0_450, %c0_451] : memref<1x1x32xf32, #tpu.memory_space<vmem>>, vector<1x1x32xf32>
    %659 = vector.shape_cast %658 : vector<1x1x32xf32> to vector<1x32xf32>
    %660 = vector.broadcast %659 : vector<1x32xf32> to vector<16x32xf32>
    %661 = arith.mulf %657, %660 : vector<16x32xf32>
    %c0_452 = arith.constant 0 : index
    %c0_453 = arith.constant 0 : index
    %c0_454 = arith.constant 0 : index
    %662 = vector.load %arg16[%c0_452, %c0_453, %c0_454] : memref<1x1x32xf32, #tpu.memory_space<vmem>>, vector<1x1x32xf32>
    %663 = vector.shape_cast %662 : vector<1x1x32xf32> to vector<1x32xf32>
    %664 = vector.broadcast %663 : vector<1x32xf32> to vector<16x32xf32>
    %665 = arith.addf %661, %664 : vector<16x32xf32>
    %c0_455 = arith.constant 0 : index
    %c0_456 = arith.constant 0 : index
    %666 = vector.load %arg24[%c0_455, %c0_456] : memref<16x32xf32, #tpu.memory_space<vmem>>, vector<16x32xf32>
    tpu.vector_store %arg24[%c0_455, %c0_456], %665 {strides = array<i32>} : memref<16x32xf32, #tpu.memory_space<vmem>>, vector<16x32xf32>,
    %c1_i32 = arith.constant 1 : i32
    %667 = arith.cmpi eq, %arg0, %c1_i32 : i32
    %668 = arith.extui %667 : i1 to i32
    %c0_i32_457 = arith.constant 0 : i32
    %669 = arith.cmpi ne, %668, %c0_i32_457 : i32
    scf.if %669 {
      %c0_458 = arith.constant 0 : index
      %c0_459 = arith.constant 0 : index
      %670 = vector.load %arg17[%c0_458, %c0_459] : memref<32x32xf32, #tpu.memory_space<vmem>>, vector<32x32xf32>
      %cst_460 = arith.constant dense<0.000000e+00> : vector<16x32xf32>
      %671 = tpu.matmul %665, %670, %cst_460 {dimension_numbers = #tpu.dot_dimension_numbers<[1], [0], [0], [1], [0, 0, 1, 1], [], []>} : vector<16x32xf32>, vector<32x32xf32>, vector<16x32xf32> -> vector<16x32xf32>
      %c0_461 = arith.constant 0 : index
      %c0_462 = arith.constant 0 : index
      %672 = vector.load %arg18[%c0_461, %c0_462] : memref<1x32xf32, #tpu.memory_space<vmem>>, vector<1x32xf32>
      %673 = vector.broadcast %672 : vector<1x32xf32> to vector<16x32xf32>
      %674 = arith.addf %671, %673 : vector<16x32xf32>
      %cst_463 = arith.constant 0.000000e+00 : f32
      %675 = vector.broadcast %cst_463 : f32 to vector<16x32xf32>
      %676 = arith.maximumf %674, %675 : vector<16x32xf32>
      %c0_464 = arith.constant 0 : index
      %c0_465 = arith.constant 0 : index
      %677 = vector.load %arg19[%c0_464, %c0_465] : memref<32x16xf32, #tpu.memory_space<vmem>>, vector<32x16xf32>
      %cst_466 = arith.constant dense<0.000000e+00> : vector<16x16xf32>
      %678 = tpu.matmul %676, %677, %cst_466 {dimension_numbers = #tpu.dot_dimension_numbers<[1], [0], [0], [1], [0, 0, 1, 1], [], []>} : vector<16x32xf32>, vector<32x16xf32>, vector<16x16xf32> -> vector<16x16xf32>
      %c0_467 = arith.constant 0 : index
      %c0_468 = arith.constant 0 : index
      %679 = vector.load %arg20[%c0_467, %c0_468] : memref<1x16xf32, #tpu.memory_space<vmem>>, vector<1x16xf32>
      %680 = vector.broadcast %679 : vector<1x16xf32> to vector<16x16xf32>
      %681 = arith.addf %678, %680 : vector<16x16xf32>
      %cst_469 = arith.constant 0.000000e+00 : f32
      %682 = vector.broadcast %cst_469 : f32 to vector<16x16xf32>
      %683 = arith.maximumf %681, %682 : vector<16x16xf32>
      %c0_470 = arith.constant 0 : index
      %c0_471 = arith.constant 0 : index
      %684 = vector.load %arg21[%c0_470, %c0_471] : memref<16x4xf32, #tpu.memory_space<vmem>>, vector<16x4xf32>
      %cst_472 = arith.constant dense<0.000000e+00> : vector<16x4xf32>
      %685 = tpu.matmul %683, %684, %cst_472 {dimension_numbers = #tpu.dot_dimension_numbers<[1], [0], [0], [1], [0, 0, 1, 1], [], []>} : vector<16x16xf32>, vector<16x4xf32>, vector<16x4xf32> -> vector<16x4xf32>
      %c0_473 = arith.constant 0 : index
      %c0_474 = arith.constant 0 : index
      %686 = vector.load %arg22[%c0_473, %c0_474] : memref<1x4xf32, #tpu.memory_space<vmem>>, vector<1x4xf32>
      %687 = vector.broadcast %686 : vector<1x4xf32> to vector<16x4xf32>
      %688 = arith.addf %685, %687 : vector<16x4xf32>
      %c0_475 = arith.constant 0 : index
      %c0_476 = arith.constant 0 : index
      %689 = vector.load %arg23[%c0_475, %c0_476] : memref<16x4xf32, #tpu.memory_space<vmem>>, vector<16x4xf32>
      tpu.vector_store %arg23[%c0_475, %c0_476], %688 {strides = array<i32>} : memref<16x4xf32, #tpu.memory_space<vmem>>, vector<16x4xf32>,
    } else {
    }
    return
  }
  func.func @transform_0(%arg0: i32) -> (i32, i32) {
    %c0_i32 = arith.constant 0 : i32
    %c0_i32_0 = arith.constant 0 : i32
    %c0_i32_1 = arith.constant 0 : i32
    return %c0_i32, %c0_i32_0 : i32, i32
  }
  func.func @transform_1(%arg0: i32) -> (i32, i32) {
    %c0_i32 = arith.constant 0 : i32
    %c0_i32_0 = arith.constant 0 : i32
    %c0_i32_1 = arith.constant 0 : i32
    return %c0_i32, %c0_i32_0 : i32, i32
  }
  func.func @transform_2(%arg0: i32) -> (i32, i32) {
    %c0_i32 = arith.constant 0 : i32
    %c0_i32_0 = arith.constant 0 : i32
    %c0_i32_1 = arith.constant 0 : i32
    return %c0_i32, %c0_i32_0 : i32, i32
  }
  func.func @transform_3(%arg0: i32) -> (i32, i32) {
    %c0_i32 = arith.constant 0 : i32
    %c0_i32_0 = arith.constant 0 : i32
    %c0_i32_1 = arith.constant 0 : i32
    return %c0_i32, %c0_i32_0 : i32, i32
  }
  func.func @transform_4(%arg0: i32) -> (i32, i32, i32) {
    %c0_i32 = arith.constant 0 : i32
    %c0_i32_0 = arith.constant 0 : i32
    %c0_i32_1 = arith.constant 0 : i32
    return %arg0, %c0_i32, %c0_i32_0 : i32, i32, i32
  }
  func.func @transform_5(%arg0: i32) -> (i32, i32, i32) {
    %c0_i32 = arith.constant 0 : i32
    %c0_i32_0 = arith.constant 0 : i32
    %c0_i32_1 = arith.constant 0 : i32
    return %arg0, %c0_i32, %c0_i32_0 : i32, i32, i32
  }
  func.func @transform_6(%arg0: i32) -> (i32, i32, i32) {
    %c0_i32 = arith.constant 0 : i32
    %c0_i32_0 = arith.constant 0 : i32
    %c0_i32_1 = arith.constant 0 : i32
    return %arg0, %c0_i32, %c0_i32_0 : i32, i32, i32
  }
  func.func @transform_7(%arg0: i32) -> (i32, i32, i32) {
    %c0_i32 = arith.constant 0 : i32
    %c0_i32_0 = arith.constant 0 : i32
    %c0_i32_1 = arith.constant 0 : i32
    return %arg0, %c0_i32, %c0_i32_0 : i32, i32, i32
  }
  func.func @transform_8(%arg0: i32) -> (i32, i32, i32) {
    %c0_i32 = arith.constant 0 : i32
    %c0_i32_0 = arith.constant 0 : i32
    %c0_i32_1 = arith.constant 0 : i32
    return %arg0, %c0_i32, %c0_i32_0 : i32, i32, i32
  }
  func.func @transform_9(%arg0: i32) -> (i32, i32, i32) {
    %c0_i32 = arith.constant 0 : i32
    %c0_i32_0 = arith.constant 0 : i32
    %c0_i32_1 = arith.constant 0 : i32
    return %arg0, %c0_i32, %c0_i32_0 : i32, i32, i32
  }
  func.func @transform_10(%arg0: i32) -> (i32, i32, i32) {
    %c0_i32 = arith.constant 0 : i32
    %c0_i32_0 = arith.constant 0 : i32
    %c0_i32_1 = arith.constant 0 : i32
    return %arg0, %c0_i32, %c0_i32_0 : i32, i32, i32
  }
  func.func @transform_11(%arg0: i32) -> (i32, i32, i32) {
    %c0_i32 = arith.constant 0 : i32
    %c0_i32_0 = arith.constant 0 : i32
    %c0_i32_1 = arith.constant 0 : i32
    return %arg0, %c0_i32, %c0_i32_0 : i32, i32, i32
  }
  func.func @transform_12(%arg0: i32) -> (i32, i32, i32) {
    %c0_i32 = arith.constant 0 : i32
    %c0_i32_0 = arith.constant 0 : i32
    %c0_i32_1 = arith.constant 0 : i32
    return %arg0, %c0_i32, %c0_i32_0 : i32, i32, i32
  }
  func.func @transform_13(%arg0: i32) -> (i32, i32, i32) {
    %c0_i32 = arith.constant 0 : i32
    %c0_i32_0 = arith.constant 0 : i32
    %c0_i32_1 = arith.constant 0 : i32
    return %arg0, %c0_i32, %c0_i32_0 : i32, i32, i32
  }
  func.func @transform_14(%arg0: i32) -> (i32, i32, i32) {
    %c0_i32 = arith.constant 0 : i32
    %c0_i32_0 = arith.constant 0 : i32
    %c0_i32_1 = arith.constant 0 : i32
    return %arg0, %c0_i32, %c0_i32_0 : i32, i32, i32
  }
  func.func @transform_15(%arg0: i32) -> (i32, i32, i32) {
    %c0_i32 = arith.constant 0 : i32
    %c0_i32_0 = arith.constant 0 : i32
    %c0_i32_1 = arith.constant 0 : i32
    return %arg0, %c0_i32, %c0_i32_0 : i32, i32, i32
  }
  func.func @transform_16(%arg0: i32) -> (i32, i32) {
    %c0_i32 = arith.constant 0 : i32
    %c0_i32_0 = arith.constant 0 : i32
    %c0_i32_1 = arith.constant 0 : i32
    return %c0_i32, %c0_i32_0 : i32, i32
  }
  func.func @transform_17(%arg0: i32) -> (i32, i32) {
    %c0_i32 = arith.constant 0 : i32
    %c0_i32_0 = arith.constant 0 : i32
    %c0_i32_1 = arith.constant 0 : i32
    return %c0_i32, %c0_i32_0 : i32, i32
  }
  func.func @transform_18(%arg0: i32) -> (i32, i32) {
    %c0_i32 = arith.constant 0 : i32
    %c0_i32_0 = arith.constant 0 : i32
    %c0_i32_1 = arith.constant 0 : i32
    return %c0_i32, %c0_i32_0 : i32, i32
  }
  func.func @transform_19(%arg0: i32) -> (i32, i32) {
    %c0_i32 = arith.constant 0 : i32
    %c0_i32_0 = arith.constant 0 : i32
    %c0_i32_1 = arith.constant 0 : i32
    return %c0_i32, %c0_i32_0 : i32, i32
  }
  func.func @transform_20(%arg0: i32) -> (i32, i32) {
    %c0_i32 = arith.constant 0 : i32
    %c0_i32_0 = arith.constant 0 : i32
    %c0_i32_1 = arith.constant 0 : i32
    return %c0_i32, %c0_i32_0 : i32, i32
  }
  func.func @transform_21(%arg0: i32) -> (i32, i32) {
    %c0_i32 = arith.constant 0 : i32
    %c0_i32_0 = arith.constant 0 : i32
    %c0_i32_1 = arith.constant 0 : i32
    return %c0_i32, %c0_i32_0 : i32, i32
  }
  func.func @transform_22(%arg0: i32) -> (i32, i32) {
    %c0_i32 = arith.constant 0 : i32
    %c0_i32_0 = arith.constant 0 : i32
    %c0_i32_1 = arith.constant 0 : i32
    return %c0_i32, %c0_i32_0 : i32, i32
  }
}

</mosaic_0001>

<bundles_post_ra>
// kernel: _lambda_.1
= control target key start
LH: loop header
LB: loop body
LE: loop exit
PB: predicated region body
PF: predicated region fallthrough
CT: control target
= control target key end

     0   :  { %s9710_s0 = inlined_call_operand.vmem [shape: f32[16,32], index: 0, kind: input, shape index: {}]   ;;  %s9711_s1 = inlined_call_operand.vmem [shape: f32[32,32], index: 1, kind: input, shape index: {}]   ;;  %s9712_s2 = inlined_call_operand.vmem [shape: f32[1,32], index: 2, kind: input, shape index: {}]   ;;  %s9713_s3 = inlined_call_operand.vmem [shape: f32[16,32], index: 3, kind: input, shape index: {}]   ;;  %s9714_s4 = inlined_call_operand.vmem [shape: f32[2,32,96], index: 4, kind: input, shape index: {}]   ;;  %s9715_s5 = inlined_call_operand.vmem [shape: f32[2,1,96], index: 5, kind: input, shape index: {}]   ;;  %s9716_s6 = inlined_call_operand.vmem [shape: f32[2,32,32], index: 6, kind: input, shape index: {}]   ;;  %s9717_s7 = inlined_call_operand.vmem [shape: f32[2,1,32], index: 7, kind: input, shape index: {}]   ;;  %s9718_s8 = inlined_call_operand.vmem [shape: f32[2,1,32], index: 8, kind: input, shape index: {}]   ;;  %s9719_s9 = inlined_call_operand.vmem [shape: f32[2,1,32], index: 9, kind: input, shape index: {}]   ;;  %s9720_s10 = inlined_call_operand.vmem [shape: f32[2,32,128], index: 10, kind: input, shape index: {}]   ;;  %s9721_s11 = inlined_call_operand.vmem [shape: f32[2,1,128], index: 11, kind: input, shape index: {}]   ;;  %s9722_s12 = inlined_call_operand.vmem [shape: f32[2,128,32], index: 12, kind: input, shape index: {}]   ;;  %s9723_s13 = inlined_call_operand.vmem [shape: f32[2,1,32], index: 13, kind: input, shape index: {}]   ;;  %s9724_s14 = inlined_call_operand.vmem [shape: f32[2,1,32], index: 14, kind: input, shape index: {}]   ;;  %s9725_s15 = inlined_call_operand.vmem [shape: f32[2,1,32], index: 15, kind: input, shape index: {}]   ;;  %s9726_s16 = inlined_call_operand.vmem [shape: f32[32,32], index: 16, kind: input, shape index: {}]   ;;  %s9727_s17 = inlined_call_operand.vmem [shape: f32[1,32], index: 17, kind: input, shape index: {}]   ;;  %s9728_s18 = inlined_call_operand.vmem [shape: f32[32,16], index: 18, kind: input, shape index: {}]   ;;  %s9729_s19 = inlined_call_operand.vmem [shape: f32[1,16], index: 19, kind: input, shape index: {}]   ;;  %s9730_s20 = inlined_call_operand.vmem [shape: f32[16,4], index: 20, kind: input, shape index: {}]   ;;  %s9731_s21 = inlined_call_operand.vmem [shape: f32[1,4], index: 21, kind: input, shape index: {}]   ;;  %s9732_s22 = inlined_call_operand.vmem [shape: f32[16,4], index: 22, kind: output, shape index: {}]  }
   0x1   :  { %9740 = sst [smem:[#allocation6_spill]] %s9710_s0 }
   0x2   :  { %9741 = sst [smem:[#allocation7_spill]] %s9711_s1 }
   0x3   :  { %9742 = sst [smem:[#allocation8_spill]] %s9712_s2 }
   0x4   :  { %9743 = sst [smem:[#allocation9_spill]] %s9713_s3  ;;  %s8571_s3 = smov 0  }
   0x5   :  { %9744 = sst [smem:[#allocation10_spill]] %s9714_s4 }
   0x6   :  { %9745 = sst [smem:[#allocation11_spill]] %s9715_s5 }
   0x7   :  { %9746 = sst [smem:[#allocation12_spill]] %s9716_s6 }
   0x8   :  { %9747 = sst [smem:[#allocation13_spill]] %s9727_s17 }
   0x9   :  { %9748 = sst [smem:[#allocation14_spill]] %s9728_s18 }
   0xa   :  { %9749 = sst [smem:[#allocation15_spill]] %s9729_s19 }
   0xb   :  { %9750 = sst [smem:[#allocation16_spill]] %s9730_s20 }
   0xc   :  { %9751 = sst [smem:[#allocation17_spill]] %s9731_s21 }
   0xd   :  { %9752 = sst [smem:[#allocation18_spill]] %s9732_s22 }
   0xe LB: > { %9753 = sst [smem:[#allocation5_spill]] %s8438_s3  ;;  %s8577_s28 = sadd.s32 4294967295, %s8438_s3   ;;  %s8438_s3 = sphi %s8571_s3, %s32_s3  }
   0xf   : > { %p7378_p0 = scmp.ge.s32.totalorder %s8438_s3, 1  ;;  %p701_p1 = scmp.lt.s32.totalorder %s8438_s3, 3 }
  0x11   : > { %p702_p2 = pnand %p7378_p0, %p701_p1 }
  0x12   : > { %p797_p3 = scmp.lt.s32.totalorder (!%p702_p2), %s8577_s28, 1  ;;  %s9755_s6 = sld [smem:[#allocation10_spill]] (!%p702_p2) }
  0x13   : > { %705 = sbr.rel (%p702_p2) target bundleno = 3647 (0xe3f), region = 108  ;;  %s9756_s27 = sld [smem:[#allocation12_spill]] (!%p702_p2) }
  0x14   : > { %p7387_p4 = scmp.ne.s32.totalorder (!%p702_p2), %s8577_s28, 0 }
  0x1a   : > { %s8583_s29 = scalar_select %p797_p3, %s8577_s28, 1 }
  0x1b   : > { %844 = sbr.rel (%p7387_p4) target bundleno = 262 (0x106), region = 112  ;;  %s9757_s21 = sld [smem:[#allocation7_spill]] (!%p7387_p4)  ;;  %vm858_vm0 = vcmask (!%p7387_p4), 261120  }
  0x1c   : > { %s7545_s30 = sshll.u32 %s8583_s29, 5  ;;  %s7548_s1 = sshll.u32 %s8583_s29, 7 }
  0x1d   : > { %s8593_s25 = scalar_lea.vmem %s9755_s6, %s7545_s30  ;;  %s8598_s3 = scalar_lea.vmem %s9756_s27, %s7545_s30 }
  0x1e   : > { %s8615_s6 = scalar_lea.vmem %s9720_s10, %s7545_s30  ;;  %s826_s27 = scalar_lea.vmem %s9721_s11, %s8583_s29 }
  0x1f   : > { %s8625_s19 = scalar_lea.vmem %s9722_s12, %s7548_s1  ;;  %s834_s4 = scalar_lea.vmem %s9723_s13, %s8583_s29 }
  0x20   : > { %s837_s5 = scalar_lea.vmem %s9724_s14, %s8583_s29  ;;  %s9758_s18 = sld [smem:[#allocation6_spill]] (!%p7387_p4) }
  0x21   : > { %v847_v0 = vld [vmem:[%s9757_s21] sm:$0xff] (!%p7387_p4)  ;;  %v848_v1 = vld [vmem:[%s9757_s21 + $0x8] sm:$0xff] (!%p7387_p4)  ;;  %v849_v2 = vld [vmem:[%s9757_s21 + $0x10] sm:$0xff] (!%p7387_p4)  ;;  %s9759_s17 = sld [smem:[#allocation8_spill]] (!%p7387_p4)  ;;  %s9760_s0 = sld [smem:[#allocation9_spill]] (!%p7387_p4) }
  0x22   : > { %v8163_v3 = vpack.c.bf16 %v848_v1, %v847_v0  ;;  %v850_v4 = vld [vmem:[%s9757_s21 + $0x18] sm:$0xff] }
  0x23   : > { %v8167_v6 = vpack.c.bf16 %v850_v4, %v849_v2 }
  0x24   : > { %8164 = vmatprep.subr.bf16.mxu0 %v8163_v3 }
  0x25   : > { %8166 = vmatpush3.bf16.msra.mxu0 %v8163_v3 }
  0x26   : > { %v845_v5 = vld [vmem:[%s9758_s18] sm:$0xff]  ;;  %8168 = vmatprep.subr.bf16.mxu0 %v8167_v6  ;;  %v846_v7 = vld [vmem:[%s9758_s18 + $0x8] sm:$0xff] }
  0x27   : > { %7743 = vmatprep.mubr.msk.f32.mxu0 %vm858_vm0, %v845_v5  ;;  %v7388_v8 = vld [vmem:[%s9759_s17] ss:$0 sm:$0xff]  ;;  %v941_v10 = vld [vmem:[%s9760_s0 + $0x8] sm:$0xff] }
  0x28   : > { %v940_v13 = vld [vmem:[%s9760_s0] sm:$0xff] }
  0x29   : > { %8170 = vmatpush3.bf16.msra.mxu0 %v8167_v6 }
  0x2c   : > { %7744 = vmatmul.mubr.msk.f32.vlgmr.msra.gmra.mrb[0].mxu0 %vm858_vm0, %v846_v7 }
  0xff   : > { %v7745_v9 = vpop.f32.mrb[0].mxu0 }
 0x100   : > { %v937_v11 = vadd.f32 %v7745_v9, %v7388_v8  ;;  %v931_v12 = vpop.f32.mrb[1].mxu0 }
 0x101   : > { %v932_v14 = vadd.f32 %v7388_v8, %v931_v12 }
 0x102   : > { %v943_v15 = vadd.f32 %v941_v10, %v937_v11 }
 0x103   : > { %v942_v16 = vadd.f32 %v940_v13, %v932_v14 }
 0x104   : > { %945 = vst.msk [vmem:[#allocation2 + $0x8] sm:$0xff] %vm858_vm0, %v943_v15 }
 0x105   : > { %944 = vst.msk [vmem:[#allocation2] sm:$0xff] %vm858_vm0, %v942_v16 }
 0x106 PF: > { %v948_v17 = vld [vmem:[%s8593_s25] sm:$0xff]  ;;  %v949_v18 = vld [vmem:[%s8593_s25 + $0x8] sm:$0xff]  ;;  %v950_v19 = vld [vmem:[%s8593_s25 + $0x10] sm:$0xff]  ;;  %vm959_vm1 = vcmask 261120   ;;  %v8440_v25 = vmov 0.0   ;;  %s9761_s1 = sld [smem:[#allocation11_spill]] }
 0x107   : > { %v8171_v20 = vpack.c.bf16 %v949_v18, %v948_v17  ;;  %v951_v21 = vld [vmem:[%s8593_s25 + $0x18] sm:$0xff]  ;;  %7767 = vmatprep.subr.mxu0 %v8440_v25  ;;  %vm1041_vm2 = vcmask 785408   ;;  %vm8441_vm3 = vmmov 0   ;;  %s8442_s22 = smov 120   ;;  %s8443_s17 = smov 96   ;;  %vm1048_vm4 = vcmask 64512  }
 0x108   : > { %v8175_v23 = vpack.c.bf16 %v951_v21, %v950_v19  ;;  %7769 = vmatprep.mubr.msk.f32.mxu0 %vm8441_vm3, %v8440_v25  ;;  %s8444_s20 = smov 80   ;;  %s8445_s23 = smov 88   ;;  %vm1142_vm5 = vcmask 1041408   ;;  %vm1124_vm6 = vcmask 9216   ;;  %vm1138_vm7 = vcmask 15360  }
 0x109   : > { %8172 = vmatprep.subr.bf16.mxu1 %v8171_v20  ;;  %s8446_s30 = smov 72   ;;  %s8447_s24 = smov 112   ;;  %vm1215_vm8 = vcmask 58368   ;;  %vm1390_vm9 = vcmask 123968   ;;  %vm1565_vm10 = vcmask 189568   ;;  %vm1740_vm11 = vcmask 255168  }
 0x10a   : > { %8174 = vmatpush3.bf16.msra.mxu1 %v8171_v20  ;;  %s8448_s26 = smov 104   ;;  %s8449_s2 = smov 64  }
 0x10b   : > { %8176 = vmatprep.subr.bf16.mxu1 %v8175_v23  ;;  %v947_v24 = vld [vmem:[#allocation2 + $0x8] sm:$0xff]  ;;  %p7533_p5 = scmp.ne.s32.totalorder %s8577_s28, 1 }
 0x10c   : > { %v946_v22 = vld [vmem:[#allocation2] sm:$0xff]  ;;  %s9762_s25 = scalar_lea.vmem %s9761_s1, %s8583_s29  ;;  %s8450_s1 = smov 48   ;;  %vm7154_vm12 = vcmask (!%p7533_p5), 130048   ;;  %vm7236_vm13 = vcmask (!%p7533_p5), 31744  }
 0x10d   : > { %7754 = vmatprep.mubr.msk.f32.mxu1 %vm959_vm1, %v946_v22  ;;  %v7391_v26 = vld [vmem:[%s9762_s25] ss:$0 sm:$0xff]  ;;  %s8451_s25 = smov 40  }
 0x10e   : > { %8178 = vmatpush3.bf16.msra.mxu1 %v8175_v23 }
 0x10f   : > { %7757 = vmatprep.subr.mxu1 %v8440_v25 }
 0x111   : > { %7755 = vmatmul.mubr.msk.f32.vlgmr.msra.gmra.mrb[0].mxu1 %vm959_vm1, %v947_v24 }
 0x112   : > { %7759 = vmatprep.mubr.msk.f32.mxu1 %vm8441_vm3, %v8440_v25 }
 0x1e4   : > { %v7756_v27 = vpop.f32.mrb[0].mxu1 }
 0x1e5   : > { %v1038_v28 = vadd.f32 %v7756_v27, %v7391_v26  ;;  %v1032_v29 = vpop.f32.mrb[1].mxu1 }
 0x1e6   : > { %v1033_v30 = vadd.f32 %v7391_v26, %v1032_v29 }
 0x1e7   : > { %1043 = vst.msk [vmem:[#allocation3 + $0x8] sm:$0xff] %vm1041_vm2, %v1038_v28 }
 0x1e8   : > { %1042 = vst.msk [vmem:[#allocation3] sm:$0xff] %vm1041_vm2, %v1033_v30 }
 0x1ee   : > { %v3980_v47 = vld [vmem:[#allocation3 + $0x8] sm:$0x3]  ;;  %v8761_v51 = vld [vmem:[#allocation3 + $0xa] sm:$0x3]  ;;  %v5360_v55 = vld [vmem:[#allocation3 + $0xc] sm:$0x3] }
 0x1ef   : > { %v8688_v31 = vld [vmem:[#allocation3] sm:$0x3]  ;;  %v8708_v35 = vld [vmem:[#allocation3 + $0x2] sm:$0x3]  ;;  %v2600_v39 = vld [vmem:[#allocation3 + $0x4] sm:$0x3] }
 0x1f0   : > { %v8690_v32 = vld [vmem:[#allocation3] sm:$0x3]  ;;  %1219 = vrot.lane.b32.xlu1 %v8688_v31, %s8442_s22  ;;  %v8714_v36 = vld [vmem:[#allocation3 + $0x2] sm:$0x3]  ;;  %v8732_v40 = vld [vmem:[#allocation3 + $0x4] sm:$0x3] }
 0x1f1   : > { %1046 = vrot.lane.b32.xlu0 %v8690_v32, %s8443_s17  ;;  %v8696_v33 = vld [vmem:[#allocation3] sm:$0x3]  ;;  %v8720_v37 = vld [vmem:[#allocation3 + $0x2] sm:$0x3]  ;;  %v2774_v41 = vld [vmem:[#allocation3 + $0x4] sm:$0x3] }
 0x1f2   : > { %v8702_v34 = vld [vmem:[#allocation3] sm:$0x3]  ;;  %v8726_v38 = vld [vmem:[#allocation3 + $0x2] sm:$0x3]  ;;  %v2948_v42 = vld [vmem:[#allocation3 + $0x4] sm:$0x3] }
 0x1f3   : > { %v8741_v43 = vld [vmem:[#allocation3 + $0x6] sm:$0x3]  ;;  %v8752_v48 = vld [vmem:[#allocation3 + $0x8] sm:$0x3]  ;;  %v4670_v52 = vld [vmem:[#allocation3 + $0xa] sm:$0x3] }
 0x1f4   : > { %1396 = vrot.lane.b32.xlu1 %v8696_v33, %s8444_s20  ;;  %v3290_v44 = vld [vmem:[#allocation3 + $0x6] sm:$0x3]  ;;  %v4154_v49 = vld [vmem:[#allocation3 + $0x8] sm:$0x3]  ;;  %v4844_v53 = vld [vmem:[#allocation3 + $0xa] sm:$0x3] }
 0x1f5   : > { %1221 = vrot.lane.b32.xlu0 %v8688_v31, %s8445_s23  ;;  %v3464_v45 = vld [vmem:[#allocation3 + $0x6] sm:$0x3]  ;;  %v4328_v50 = vld [vmem:[#allocation3 + $0x8] sm:$0x3]  ;;  %v5018_v54 = vld [vmem:[#allocation3 + $0xa] sm:$0x3] }
 0x1f6   : > { %v3638_v46 = vld [vmem:[#allocation3 + $0x6] sm:$0x3]  ;;  %v8772_v56 = vld [vmem:[#allocation3 + $0xc] sm:$0x3]  ;;  %v8781_v59 = vld [vmem:[#allocation3 + $0xe] sm:$0x3] }
 0x1f7   : > { %v5534_v57 = vld [vmem:[#allocation3 + $0xc] sm:$0x3]  ;;  %v6050_v60 = vld [vmem:[#allocation3 + $0xe] sm:$0x3] }
 0x1f8   : > { %1571 = vrot.lane.b32.xlu1 %v8702_v34, %s8446_s30  ;;  %v5708_v58 = vld [vmem:[#allocation3 + $0xc] sm:$0x3]  ;;  %v6224_v61 = vld [vmem:[#allocation3 + $0xe] sm:$0x3] }
 0x1f9   : > { %1394 = vrot.lane.b32.xlu0 %v8696_v33, %s8447_s24  ;;  %v6398_v62 = vld [vmem:[#allocation3 + $0xe] sm:$0x3] }
 0x1fc   : > { %1744 = vrot.lane.b32.xlu1 %v8708_v35, %s8443_s17 }
 0x1fd   : > { %1569 = vrot.lane.b32.xlu0 %v8702_v34, %s8448_s26 }
 0x200   : > { %1912 = vrot.lane.b32.xlu1 %v8714_v36, %s8442_s22 }
 0x201   : > { %1914 = vrot.lane.b32.xlu0 %v8714_v36, %s8445_s23 }
 0x204   : > { %2086 = vrot.lane.b32.xlu1 %v8720_v37, %s8447_s24 }
 0x205   : > { %2088 = vrot.lane.b32.xlu0 %v8720_v37, %s8444_s20 }
 0x208   : > { %2260 = vrot.lane.b32.xlu1 %v8726_v38, %s8448_s26 }
 0x209   : > { %2262 = vrot.lane.b32.xlu0 %v8726_v38, %s8446_s30 }
 0x20c   : > { %2604 = vrot.lane.b32.xlu1 %v2600_v39, %s8445_s23 }
 0x20d   : > { %2434 = vrot.lane.b32.xlu0 %v8732_v40, %s8443_s17 }
 0x210   : > { %2778 = vrot.lane.b32.xlu1 %v2774_v41, %s8444_s20 }
 0x211   : > { %2602 = vrot.lane.b32.xlu0 %v2600_v39, %s8442_s22 }
 0x214   : > { %2952 = vrot.lane.b32.xlu1 %v2948_v42, %s8446_s30 }
 0x215   : > { %2776 = vrot.lane.b32.xlu0 %v2774_v41, %s8447_s24 }
 0x218   : > { %3124 = vrot.lane.b32.xlu1 %v8741_v43, %s8443_s17 }
 0x219   : > { %2950 = vrot.lane.b32.xlu0 %v2948_v42, %s8448_s26 }
 0x21c   : > { %3292 = vrot.lane.b32.xlu1 %v3290_v44, %s8442_s22 }
 0x21d   : > { %3294 = vrot.lane.b32.xlu0 %v3290_v44, %s8445_s23 }
 0x220   : > { %3466 = vrot.lane.b32.xlu1 %v3464_v45, %s8447_s24 }
 0x221   : > { %3468 = vrot.lane.b32.xlu0 %v3464_v45, %s8444_s20 }
 0x224   : > { %3640 = vrot.lane.b32.xlu1 %v3638_v46, %s8448_s26 }
 0x225   : > { %3642 = vrot.lane.b32.xlu0 %v3638_v46, %s8446_s30 }
 0x228   : > { %3984 = vrot.lane.b32.xlu1 %v3980_v47, %s8445_s23 }
 0x229   : > { %3814 = vrot.lane.b32.xlu0 %v8752_v48, %s8443_s17 }
 0x22c   : > { %4158 = vrot.lane.b32.xlu1 %v4154_v49, %s8444_s20 }
 0x22d   : > { %3982 = vrot.lane.b32.xlu0 %v3980_v47, %s8442_s22 }
 0x230   : > { %4332 = vrot.lane.b32.xlu1 %v4328_v50, %s8446_s30 }
 0x231   : > { %4156 = vrot.lane.b32.xlu0 %v4154_v49, %s8447_s24 }
 0x234   : > { %4504 = vrot.lane.b32.xlu1 %v8761_v51, %s8443_s17 }
 0x235   : > { %4330 = vrot.lane.b32.xlu0 %v4328_v50, %s8448_s26 }
 0x238   : > { %4672 = vrot.lane.b32.xlu1 %v4670_v52, %s8442_s22 }
 0x239   : > { %4674 = vrot.lane.b32.xlu0 %v4670_v52, %s8445_s23 }
 0x23c   : > { %4846 = vrot.lane.b32.xlu1 %v4844_v53, %s8447_s24 }
 0x23d   : > { %4848 = vrot.lane.b32.xlu0 %v4844_v53, %s8444_s20 }
 0x240   : > { %5020 = vrot.lane.b32.xlu1 %v5018_v54, %s8448_s26 }
 0x241   : > { %5022 = vrot.lane.b32.xlu0 %v5018_v54, %s8446_s30 }
 0x244   : > { %5364 = vrot.lane.b32.xlu1 %v5360_v55, %s8445_s23 }
 0x245   : > { %5194 = vrot.lane.b32.xlu0 %v8772_v56, %s8443_s17 }
 0x248   : > { %5538 = vrot.lane.b32.xlu1 %v5534_v57, %s8444_s20 }
 0x249   : > { %5362 = vrot.lane.b32.xlu0 %v5360_v55, %s8442_s22 }
 0x24c   : > { %5712 = vrot.lane.b32.xlu1 %v5708_v58, %s8446_s30 }
 0x24d   : > { %5536 = vrot.lane.b32.xlu0 %v5534_v57, %s8447_s24 }
 0x250   : > { %5884 = vrot.lane.b32.xlu1 %v8781_v59, %s8443_s17  ;;  %s8453_s17 = smov 8  }
 0x251   : > { %5710 = vrot.lane.b32.xlu0 %v5708_v58, %s8448_s26 }
 0x254   : > { %6052 = vrot.lane.b32.xlu1 %v6050_v60, %s8442_s22  ;;  %s8452_s22 = smov 56  }
 0x255   : > { %6054 = vrot.lane.b32.xlu0 %v6050_v60, %s8445_s23  ;;  %s8455_s23 = smov 24  }
 0x258   : > { %6226 = vrot.lane.b32.xlu1 %v6224_v61, %s8447_s24  ;;  %s9763_s24 = scalar_lea.vmem %s9717_s7, %s8583_s29 }
 0x259   : > { %6228 = vrot.lane.b32.xlu0 %v6224_v61, %s8444_s20  ;;  %s8454_s20 = smov 16  }
 0x25c   : > { %6400 = vrot.lane.b32.xlu1 %v6398_v62, %s8448_s26 }
 0x25d   : > { %6402 = vrot.lane.b32.xlu0 %v6398_v62, %s8446_s30  ;;  %s9772_s30 = sld [smem:[#allocation18_spill]] (!%p7533_p5) }
 0x260   : > { %1136 = vrot.lane.b32.xlu1 %v8690_v32, %s8449_s2 }
 0x262   : > { %v1220_v63 = vpop.permute.xlu1 %1219 }
 0x263   : > { %v1047_v0 = vpop.permute.xlu0 %1046 }
 0x264   : > { %7758 = vmatpush3.xpose.msk.msra.mxu1 %vm1048_vm4, %v1047_v0 }
 0x265   : > { %7762 = vmatprep.subr.mxu1 %v8440_v25 }
 0x266   : > { %v1397_v1 = vpop.permute.xlu1 %1396 }
 0x267   : > { %7760 = vmatmul.mubr.msk.f32.vlgmr.msra.gmra.mrb[2].mxu1 %vm1048_vm4, %v8690_v32  ;;  %v1222_v2 = vpop.permute.xlu0 %1221 }
 0x268   : > { %7768 = vmatpush3.xpose.msk.msra.mxu0 %vm1048_vm4, %v1222_v2  ;;  %7764 = vmatprep.mubr.msk.f32.mxu1 %vm8441_vm3, %v8440_v25 }
 0x269   : > { %7777 = vmatprep.subr.mxu0 %v8440_v25 }
 0x26a   : > { %v1572_v3 = vpop.permute.xlu1 %1571 }
 0x26b   : > { %7770 = vmatmul.mubr.msk.f32.vlgmr.msra.gmra.mrb[0].mxu0 %vm1048_vm4, %v1220_v63  ;;  %v1395_v4 = vpop.permute.xlu0 %1394 }
 0x26c   : > { %7778 = vmatpush3.xpose.msk.msra.mxu0 %vm1048_vm4, %v1397_v1  ;;  %7779 = vmatprep.mubr.msk.f32.mxu0 %vm8441_vm3, %v8440_v25 }
 0x26d   : > { %7787 = vmatprep.subr.mxu0 %v8440_v25 }
 0x26e   : > { %v1745_v5 = vpop.permute.xlu1 %1744 }
 0x26f   : > { %7780 = vmatmul.mubr.msk.f32.vlgmr.msra.gmra.mrb[2].mxu0 %vm1048_vm4, %v1395_v4  ;;  %v1570_v6 = vpop.permute.xlu0 %1569 }
 0x270   : > { %7788 = vmatpush3.xpose.msk.msra.mxu0 %vm1048_vm4, %v1572_v3  ;;  %7789 = vmatprep.mubr.msk.f32.mxu0 %vm8441_vm3, %v8440_v25 }
 0x271   : > { %7797 = vmatprep.subr.mxu0 %v8440_v25 }
 0x272   : > { %v1913_v7 = vpop.permute.xlu1 %1912 }
 0x273   : > { %7790 = vmatmul.mubr.msk.f32.vlgmr.msra.gmra.mrb[4].mxu0 %vm1048_vm4, %v1570_v6  ;;  %v1915_v8 = vpop.permute.xlu0 %1914 }
 0x274   : > { %7798 = vmatpush3.xpose.msk.msra.mxu0 %vm1048_vm4, %v1745_v5  ;;  %7799 = vmatprep.mubr.msk.f32.mxu0 %vm8441_vm3, %v8440_v25 }
 0x275   : > { %7807 = vmatprep.subr.mxu0 %v8440_v25 }
 0x276   : > { %v2087_v9 = vpop.permute.xlu1 %2086 }
 0x277   : > { %7800 = vmatmul.mubr.msk.f32.vlgmr.msra.gmra.mrb[6].mxu0 %vm1048_vm4, %v8708_v35  ;;  %v2089_v10 = vpop.permute.xlu0 %2088 }
 0x278   : > { %7808 = vmatpush3.xpose.msk.msra.mxu0 %vm1048_vm4, %v1915_v8  ;;  %7809 = vmatprep.mubr.msk.f32.mxu0 %vm8441_vm3, %v8440_v25 }
 0x279   : > { %7817 = vmatprep.subr.mxu0 %v8440_v25 }
 0x27a   : > { %v2261_v11 = vpop.permute.xlu1 %2260 }
 0x27b   : > { %7810 = vmatmul.mubr.msk.f32.vlgmr.msra.gmra.mrb[8].mxu0 %vm1048_vm4, %v1913_v7  ;;  %v2263_v12 = vpop.permute.xlu0 %2262 }
 0x27c   : > { %7818 = vmatpush3.xpose.msk.msra.mxu0 %vm1048_vm4, %v2089_v10  ;;  %7819 = vmatprep.mubr.msk.f32.mxu0 %vm8441_vm3, %v8440_v25 }
 0x27d   : > { %7827 = vmatprep.subr.mxu0 %v8440_v25 }
 0x27e   : > { %v2605_v13 = vpop.permute.xlu1 %2604 }
 0x27f   : > { %7820 = vmatmul.mubr.msk.f32.vlgmr.msra.gmra.mrb[10].mxu0 %vm1048_vm4, %v2087_v9  ;;  %v2435_v14 = vpop.permute.xlu0 %2434 }
 0x280   : > { %7828 = vmatpush3.xpose.msk.msra.mxu0 %vm1048_vm4, %v2263_v12  ;;  %7829 = vmatprep.mubr.msk.f32.mxu0 %vm8441_vm3, %v8440_v25 }
 0x281   : > { %7837 = vmatprep.subr.mxu0 %v8440_v25 }
 0x282   : > { %v2779_v15 = vpop.permute.xlu1 %2778 }
 0x283   : > { %7830 = vmatmul.mubr.msk.f32.vlgmr.msra.gmra.mrb[12].mxu0 %vm1048_vm4, %v2261_v11  ;;  %v2603_v16 = vpop.permute.xlu0 %2602 }
 0x284   : > { %7838 = vmatpush3.xpose.msk.msra.mxu0 %vm1048_vm4, %v2435_v14  ;;  %7839 = vmatprep.mubr.msk.f32.mxu0 %vm8441_vm3, %v8440_v25 }
 0x285   : > { %7847 = vmatprep.subr.mxu0 %v8440_v25 }
 0x286   : > { %v2953_v17 = vpop.permute.xlu1 %2952 }
 0x287   : > { %7840 = vmatmul.mubr.msk.f32.vlgmr.msra.gmra.mrb[14].mxu0 %vm1048_vm4, %v8732_v40  ;;  %v2777_v18 = vpop.permute.xlu0 %2776 }
 0x288   : > { %7848 = vmatpush3.xpose.msk.msra.mxu0 %vm1048_vm4, %v2605_v13  ;;  %7849 = vmatprep.mubr.msk.f32.mxu0 %vm8441_vm3, %v8440_v25 }
 0x289   : > { %7857 = vmatprep.subr.mxu0 %v8440_v25 }
 0x28a   : > { %v3125_v19 = vpop.permute.xlu1 %3124 }
 0x28b   : > { %7850 = vmatmul.mubr.msk.f32.vlgmr.msra.gmra.mrb[16].mxu0 %vm1048_vm4, %v2603_v16  ;;  %v2951_v20 = vpop.permute.xlu0 %2950 }
 0x28c   : > { %7858 = vmatpush3.xpose.msk.msra.mxu0 %vm1048_vm4, %v2779_v15  ;;  %7859 = vmatprep.mubr.msk.f32.mxu0 %vm8441_vm3, %v8440_v25 }
 0x28d   : > { %7867 = vmatprep.subr.mxu0 %v8440_v25 }
 0x28e   : > { %v3293_v21 = vpop.permute.xlu1 %3292 }
 0x28f   : > { %7860 = vmatmul.mubr.msk.f32.vlgmr.msra.gmra.mrb[18].mxu0 %vm1048_vm4, %v2777_v18  ;;  %v3295_v22 = vpop.permute.xlu0 %3294 }
 0x290   : > { %7868 = vmatpush3.xpose.msk.msra.mxu0 %vm1048_vm4, %v2953_v17  ;;  %7869 = vmatprep.mubr.msk.f32.mxu0 %vm8441_vm3, %v8440_v25 }
 0x291   : > { %7877 = vmatprep.subr.mxu0 %v8440_v25 }
 0x292   : > { %v3467_v23 = vpop.permute.xlu1 %3466 }
 0x293   : > { %7870 = vmatmul.mubr.msk.f32.vlgmr.msra.gmra.mrb[20].mxu0 %vm1048_vm4, %v2951_v20  ;;  %v3469_v24 = vpop.permute.xlu0 %3468 }
 0x294   : > { %7878 = vmatpush3.xpose.msk.msra.mxu0 %vm1048_vm4, %v3125_v19  ;;  %7879 = vmatprep.mubr.msk.f32.mxu0 %vm8441_vm3, %v8440_v25 }
 0x295   : > { %7887 = vmatprep.subr.mxu0 %v8440_v25 }
 0x296   : > { %v3641_v26 = vpop.permute.xlu1 %3640 }
 0x297   : > { %7880 = vmatmul.mubr.msk.f32.vlgmr.msra.gmra.mrb[22].mxu0 %vm1048_vm4, %v8741_v43  ;;  %v3643_v27 = vpop.permute.xlu0 %3642 }
 0x298   : > { %7888 = vmatpush3.xpose.msk.msra.mxu0 %vm1048_vm4, %v3295_v22  ;;  %7889 = vmatprep.mubr.msk.f32.mxu0 %vm8441_vm3, %v8440_v25 }
 0x299   : > { %7897 = vmatprep.subr.mxu0 %v8440_v25 }
 0x29a   : > { %v3985_v28 = vpop.permute.xlu1 %3984 }
 0x29b   : > { %7890 = vmatmul.mubr.msk.f32.vlgmr.msra.gmra.mrb[24].mxu0 %vm1048_vm4, %v3293_v21  ;;  %v3815_v29 = vpop.permute.xlu0 %3814 }
 0x29c   : > { %7898 = vmatpush3.xpose.msk.msra.mxu0 %vm1048_vm4, %v3469_v24  ;;  %7899 = vmatprep.mubr.msk.f32.mxu0 %vm8441_vm3, %v8440_v25 }
 0x29d   : > { %7907 = vmatprep.subr.mxu0 %v8440_v25 }
 0x29e   : > { %v4159_v30 = vpop.permute.xlu1 %4158 }
 0x29f   : > { %7900 = vmatmul.mubr.msk.f32.vlgmr.msra.gmra.mrb[26].mxu0 %vm1048_vm4, %v3467_v23  ;;  %v3983_v32 = vpop.permute.xlu0 %3982 }
 0x2a0   : > { %7908 = vmatpush3.xpose.msk.msra.mxu0 %vm1048_vm4, %v3643_v27  ;;  %7909 = vmatprep.mubr.msk.f32.mxu0 %vm8441_vm3, %v8440_v25 }
 0x2a1   : > { %7917 = vmatprep.subr.mxu0 %v8440_v25 }
 0x2a2   : > { %v4333_v39 = vpop.permute.xlu1 %4332 }
 0x2a3   : > { %7910 = vmatmul.mubr.msk.f32.vlgmr.msra.gmra.mrb[28].mxu0 %vm1048_vm4, %v3641_v26  ;;  %v4157_v41 = vpop.permute.xlu0 %4156 }
 0x2a4   : > { %7918 = vmatpush3.xpose.msk.msra.mxu0 %vm1048_vm4, %v3815_v29  ;;  %7919 = vmatprep.mubr.msk.f32.mxu0 %vm8441_vm3, %v8440_v25 }
 0x2a5   : > { %7927 = vmatprep.subr.mxu0 %v8440_v25 }
 0x2a6   : > { %v4505_v42 = vpop.permute.xlu1 %4504 }
 0x2a7   : > { %7920 = vmatmul.mubr.msk.f32.vlgmr.msra.gmra.mrb[30].mxu0 %vm1048_vm4, %v8752_v48  ;;  %v4331_v43 = vpop.permute.xlu0 %4330 }
 0x2a8   : > { %7928 = vmatpush3.xpose.msk.msra.mxu0 %vm1048_vm4, %v3985_v28  ;;  %7929 = vmatprep.mubr.msk.f32.mxu0 %vm8441_vm3, %v8440_v25 }
 0x2a9   : > { %7937 = vmatprep.subr.mxu0 %v8440_v25 }
 0x2aa   : > { %v4673_v44 = vpop.permute.xlu1 %4672 }
 0x2ab   : > { %7930 = vmatmul.mubr.msk.f32.vlgmr.msra.gmra.mrb[32].mxu0 %vm1048_vm4, %v3983_v32  ;;  %v4675_v45 = vpop.permute.xlu0 %4674 }
 0x2ac   : > { %7938 = vmatpush3.xpose.msk.msra.mxu0 %vm1048_vm4, %v4159_v30  ;;  %7939 = vmatprep.mubr.msk.f32.mxu0 %vm8441_vm3, %v8440_v25 }
 0x2ad   : > { %7947 = vmatprep.subr.mxu0 %v8440_v25 }
 0x2ae   : > { %v4847_v46 = vpop.permute.xlu1 %4846 }
 0x2af   : > { %7940 = vmatmul.mubr.msk.f32.vlgmr.msra.gmra.mrb[34].mxu0 %vm1048_vm4, %v4157_v41  ;;  %v4849_v47 = vpop.permute.xlu0 %4848 }
 0x2b0   : > { %7948 = vmatpush3.xpose.msk.msra.mxu0 %vm1048_vm4, %v4333_v39  ;;  %7949 = vmatprep.mubr.msk.f32.mxu0 %vm8441_vm3, %v8440_v25 }
 0x2b1   : > { %7957 = vmatprep.subr.mxu0 %v8440_v25 }
 0x2b2   : > { %v5021_v48 = vpop.permute.xlu1 %5020 }
 0x2b3   : > { %7950 = vmatmul.mubr.msk.f32.vlgmr.msra.gmra.mrb[36].mxu0 %vm1048_vm4, %v4331_v43  ;;  %v5023_v49 = vpop.permute.xlu0 %5022 }
 0x2b4   : > { %7958 = vmatpush3.xpose.msk.msra.mxu0 %vm1048_vm4, %v4505_v42  ;;  %7959 = vmatprep.mubr.msk.f32.mxu0 %vm8441_vm3, %v8440_v25 }
 0x2b5   : > { %7967 = vmatprep.subr.mxu0 %v8440_v25 }
 0x2b6   : > { %v5365_v50 = vpop.permute.xlu1 %5364 }
 0x2b7   : > { %7960 = vmatmul.mubr.msk.f32.vlgmr.msra.gmra.mrb[38].mxu0 %vm1048_vm4, %v8761_v51  ;;  %v5195_v52 = vpop.permute.xlu0 %5194 }
 0x2b8   : > { %7968 = vmatpush3.xpose.msk.msra.mxu0 %vm1048_vm4, %v4675_v45  ;;  %7969 = vmatprep.mubr.msk.f32.mxu0 %vm8441_vm3, %v8440_v25 }
 0x2b9   : > { %7977 = vmatprep.subr.mxu0 %v8440_v25 }
 0x2ba   : > { %v5539_v53 = vpop.permute.xlu1 %5538 }
 0x2bb   : > { %7970 = vmatmul.mubr.msk.f32.vlgmr.msra.gmra.mrb[40].mxu0 %vm1048_vm4, %v4673_v44  ;;  %v5363_v51 = vpop.permute.xlu0 %5362 }
 0x2bc   : > { %7978 = vmatpush3.xpose.msk.msra.mxu0 %vm1048_vm4, %v4849_v47  ;;  %7979 = vmatprep.mubr.msk.f32.mxu0 %vm8441_vm3, %v8440_v25 }
 0x2bd   : > { %7987 = vmatprep.subr.mxu0 %v8440_v25 }
 0x2be   : > { %v5713_v54 = vpop.permute.xlu1 %5712 }
 0x2bf   : > { %7980 = vmatmul.mubr.msk.f32.vlgmr.msra.gmra.mrb[42].mxu0 %vm1048_vm4, %v4847_v46  ;;  %v5537_v57 = vpop.permute.xlu0 %5536 }
 0x2c0   : > { %7988 = vmatpush3.xpose.msk.msra.mxu0 %vm1048_vm4, %v5023_v49  ;;  %7989 = vmatprep.mubr.msk.f32.mxu0 %vm8441_vm3, %v8440_v25 }
 0x2c1   : > { %7997 = vmatprep.subr.mxu0 %v8440_v25 }
 0x2c2   : > { %v5885_v55 = vpop.permute.xlu1 %5884 }
 0x2c3   : > { %7990 = vmatmul.mubr.msk.f32.vlgmr.msra.gmra.mrb[44].mxu0 %vm1048_vm4, %v5021_v48  ;;  %v5711_v61 = vpop.permute.xlu0 %5710 }
 0x2c4   : > { %7998 = vmatpush3.xpose.msk.msra.mxu0 %vm1048_vm4, %v5195_v52  ;;  %7999 = vmatprep.mubr.msk.f32.mxu0 %vm8441_vm3, %v8440_v25 }
 0x2c5   : > { %8007 = vmatprep.subr.mxu0 %v8440_v25 }
 0x2c6   : > { %v6053_v58 = vpop.permute.xlu1 %6052 }
 0x2c7   : > { %8000 = vmatmul.mubr.msk.f32.vlgmr.msra.gmra.mrb[46].mxu0 %vm1048_vm4, %v8772_v56  ;;  %v6055_v56 = vpop.permute.xlu0 %6054 }
 0x2c8   : > { %8008 = vmatpush3.xpose.msk.msra.mxu0 %vm1048_vm4, %v5365_v50  ;;  %8009 = vmatprep.mubr.msk.f32.mxu0 %vm8441_vm3, %v8440_v25 }
 0x2c9   : > { %8017 = vmatprep.subr.mxu0 %v8440_v25 }
 0x2ca   : > { %v6227_v60 = vpop.permute.xlu1 %6226 }
 0x2cb   : > { %8010 = vmatmul.mubr.msk.f32.vlgmr.msra.gmra.mrb[48].mxu0 %vm1048_vm4, %v5363_v51  ;;  %v6229_v0 = vpop.permute.xlu0 %6228 }
 0x2cc   : > { %8018 = vmatpush3.xpose.msk.msra.mxu0 %vm1048_vm4, %v5539_v53  ;;  %8019 = vmatprep.mubr.msk.f32.mxu0 %vm8441_vm3, %v8440_v25 }
 0x2cd   : > { %8027 = vmatprep.subr.mxu0 %v8440_v25 }
 0x2ce   : > { %v6401_v62 = vpop.permute.xlu1 %6400 }
 0x2cf   : > { %8020 = vmatmul.mubr.msk.f32.vlgmr.msra.gmra.mrb[50].mxu0 %vm1048_vm4, %v5537_v57  ;;  %v6403_v1 = vpop.permute.xlu0 %6402 }
 0x2d0   : > { %8028 = vmatpush3.xpose.msk.msra.mxu0 %vm1048_vm4, %v5713_v54  ;;  %8029 = vmatprep.mubr.msk.f32.mxu0 %vm8441_vm3, %v8440_v25 }
 0x2d1   : > { %8037 = vmatprep.subr.mxu0 %v8440_v25 }
 0x2d2   : > { %v1137_v63 = vpop.permute.xlu1 %1136 }
 0x2d3   : > { %8030 = vmatmul.mubr.msk.f32.vlgmr.msra.gmra.mrb[52].mxu0 %vm1048_vm4, %v5711_v61  ;;  %7763 = vmatpush3.msk.msra.mxu1 %vm1142_vm5, %v1137_v63 }
 0x2d4   : > { %8038 = vmatpush3.xpose.msk.msra.mxu0 %vm1048_vm4, %v5885_v55  ;;  %8039 = vmatprep.mubr.msk.f32.mxu0 %vm8441_vm3, %v8440_v25 }
 0x2d5   : > { %8047 = vmatprep.subr.mxu0 %v8440_v25  ;;  %7772 = vmatprep.subr.mxu1 %v8440_v25 }
 0x2d7   : > { %8040 = vmatmul.mubr.msk.f32.vlgmr.msra.gmra.mrb[54].mxu0 %vm1048_vm4, %v8781_v59 }
 0x2d8   : > { %8048 = vmatpush3.xpose.msk.msra.mxu0 %vm1048_vm4, %v6055_v56  ;;  %8049 = vmatprep.mubr.msk.f32.mxu0 %vm8441_vm3, %v8440_v25 }
 0x2d9   : > { %8057 = vmatprep.subr.mxu0 %v8440_v25 }
 0x2db   : > { %8050 = vmatmul.mubr.msk.f32.vlgmr.msra.gmra.mrb[56].mxu0 %vm1048_vm4, %v6053_v58 }
 0x2dc   : > { %8058 = vmatpush3.xpose.msk.msra.mxu0 %vm1048_vm4, %v6229_v0  ;;  %8059 = vmatprep.mubr.msk.f32.mxu0 %vm8441_vm3, %v8440_v25 }
 0x2dd   : > { %8067 = vmatprep.subr.mxu0 %v8440_v25 }
 0x2df   : > { %8060 = vmatmul.mubr.msk.f32.vlgmr.msra.gmra.mrb[58].mxu0 %vm1048_vm4, %v6227_v60 }
 0x2e0   : > { %8068 = vmatpush3.xpose.msk.msra.mxu0 %vm1048_vm4, %v6403_v1  ;;  %8069 = vmatprep.mubr.msk.f32.mxu0 %vm8441_vm3, %v8440_v25 }
 0x2e3   : > { %8070 = vmatmul.mubr.msk.f32.vlgmr.msra.gmra.mrb[60].mxu0 %vm1048_vm4, %v6401_v62 }
 0x33a   : > { %v1119_v59 = vpop.f32.mrb[2].mxu1 }
 0x33b   : > { %v8961_v2 = vmul.f32 0.35355338, %v1119_v59  ;;  %v7761_v3 = vpop.f32.mrb[3].mxu1 }
 0x33d   : > { %v1125_v4 = vsel %vm1124_vm6, %v8961_v2, -inf }
 0x33e   : > { %1126 = vmax.xlane.f32.xlu0 %v1125_v4  ;;  %v1293_v5 = vpop.f32.mrb[0].mxu0 }
 0x33f   : > { %v8965_v6 = vmul.f32 0.35355338, %v1293_v5  ;;  %v7771_v7 = vpop.f32.mrb[1].mxu0 }
 0x341   : > { %v1298_v8 = vsel %vm1124_vm6, %v8965_v6, -inf }
 0x342   : > { %1299 = vmax.xlane.f32.xlu1 %v1298_v8  ;;  %v1468_v9 = vpop.f32.mrb[2].mxu0 }
 0x343   : > { %v8969_v10 = vmul.f32 0.35355338, %v1468_v9  ;;  %v7781_v11 = vpop.f32.mrb[3].mxu0 }
 0x345   : > { %v1473_v12 = vsel %vm1124_vm6, %v8969_v10, -inf }
 0x346   : > { %1474 = vmax.xlane.f32.xlu0 %v1473_v12  ;;  %v1643_v13 = vpop.f32.mrb[4].mxu0 }
 0x347   : > { %v8973_v14 = vmul.f32 0.35355338, %v1643_v13  ;;  %v7791_v15 = vpop.f32.mrb[5].mxu0 }
 0x349   : > { %v1648_v16 = vsel %vm1124_vm6, %v8973_v14, -inf }
 0x34a   : > { %1649 = vmax.xlane.f32.xlu0 %v1648_v16  ;;  %v1816_v17 = vpop.f32.mrb[6].mxu0 }
 0x34b   : > { %v7801_v18 = vpop.f32.mrb[7].mxu0  ;;  %v9009_v58 = vmul.f32 0.35355338, %v1816_v17 }
 0x34d   : > { %v1821_v59 = vsel %vm1124_vm6, %v9009_v58, -inf }
 0x34e   : > { %v1986_v19 = vpop.f32.mrb[8].mxu0 }
 0x34f   : > { %v7811_v20 = vpop.f32.mrb[9].mxu0  ;;  %v8993_v45 = vmul.f32 0.35355338, %v1986_v19 }
 0x351   : > { %v1991_v48 = vsel %vm1124_vm6, %v8993_v45, -inf }
 0x352   : > { %v2160_v21 = vpop.f32.mrb[10].mxu0 }
 0x353   : > { %1484 = vrot.lane.b32.xlu1 %v8696_v33, %s8450_s1  ;;  %v7821_v22 = vpop.f32.mrb[11].mxu0  ;;  %v9015_v63 = vmul.f32 0.35355338, %v2160_v21 }
 0x355   : > { %v2165_v5 = vsel %vm1124_vm6, %v9015_v63, -inf }
 0x356   : > { %v2334_v23 = vpop.f32.mrb[12].mxu0 }
 0x357   : > { %1659 = vrot.lane.b32.xlu1 %v8702_v34, %s8451_s25  ;;  %v7831_v24 = vpop.f32.mrb[13].mxu0  ;;  %v8997_v47 = vmul.f32 0.35355338, %v2334_v23 }
 0x359   : > { %v2339_v52 = vsel %vm1124_vm6, %v8997_v47, -inf }
 0x35a   : > { %v2506_v26 = vpop.f32.mrb[14].mxu0 }
 0x35b   : > { %1832 = vrot.lane.b32.xlu1 %v8708_v35, %s8449_s2  ;;  %v7841_v27 = vpop.f32.mrb[15].mxu0  ;;  %v9025_v7 = vmul.f32 0.35355338, %v2506_v26 }
 0x35d   : > { %v2511_v17 = vsel %vm1124_vm6, %v9025_v7, -inf }
 0x35e   : > { %v2676_v28 = vpop.f32.mrb[16].mxu0 }
 0x35f   : > { %2002 = vrot.lane.b32.xlu1 %v8714_v36, %s8452_s22  ;;  %v7851_v29 = vpop.f32.mrb[17].mxu0  ;;  %v9001_v49 = vmul.f32 0.35355338, %v2676_v28 }
 0x360   : > { %1309 = vrot.lane.b32.xlu0 %v8688_v31, %s8452_s22 }
 0x361   : > { %v2681_v55 = vsel %vm1124_vm6, %v9001_v49, -inf }
 0x362   : > { %v2850_v33 = vpop.f32.mrb[18].mxu0 }
 0x363   : > { %2176 = vrot.lane.b32.xlu1 %v8720_v37, %s8450_s1  ;;  %v7861_v34 = vpop.f32.mrb[19].mxu0  ;;  %v9031_v13 = vmul.f32 0.35355338, %v2850_v33 }
 0x365   : > { %v2855_v20 = vsel %vm1124_vm6, %v9031_v13, -inf }
 0x366   : > { %v3024_v30 = vpop.f32.mrb[20].mxu0 }
 0x367   : > { %2350 = vrot.lane.b32.xlu1 %v8726_v38, %s8451_s25  ;;  %v7871_v35 = vpop.f32.mrb[21].mxu0  ;;  %v9005_v54 = vmul.f32 0.35355338, %v3024_v30 }
 0x369   : > { %v3029_v62 = vsel %vm1124_vm6, %v9005_v54, -inf }
 0x36a   : > { %v3196_v32 = vpop.f32.mrb[22].mxu0 }
 0x36b   : > { %2522 = vrot.lane.b32.xlu1 %v8732_v40, %s8449_s2  ;;  %v7881_v39 = vpop.f32.mrb[23].mxu0  ;;  %v9041_v21 = vmul.f32 0.35355338, %v3196_v32 }
 0x36d   : > { %v3201_v33 = vsel %vm1124_vm6, %v9041_v21, -inf }
 0x36e   : > { %v3366_v36 = vpop.f32.mrb[24].mxu0 }
 0x36f   : > { %v7891_v41 = vpop.f32.mrb[25].mxu0  ;;  %v9011_v60 = vmul.f32 0.35355338, %v3366_v36 }
 0x371   : > { %v3371_v3 = vsel %vm1124_vm6, %v9011_v60, -inf }
 0x372   : > { %v3540_v42 = vpop.f32.mrb[26].mxu0 }
 0x373   : > { %v7901_v43 = vpop.f32.mrb[27].mxu0  ;;  %v9047_v27 = vmul.f32 0.35355338, %v3540_v42 }
 0x375   : > { %v3545_v35 = vsel %vm1124_vm6, %v9047_v27, -inf }
 0x376   : > { %v3714_v31 = vpop.f32.mrb[28].mxu0 }
 0x377   : > { %v7911_v44 = vpop.f32.mrb[29].mxu0  ;;  %v9017_v0 = vmul.f32 0.35355338, %v3714_v31 }
 0x379   : > { %v3719_v11 = vsel %vm1124_vm6, %v9017_v0, -inf }
 0x37a   : > { %v8995_v37 = vpop.f32.mrb[30].mxu0 }
 0x37b   : > { %v7921_v46 = vpop.f32.mrb[31].mxu0  ;;  %v9058_v32 = vmul.f32 0.35355338, %v8995_v37 }
 0x37d   : > { %v3891_v46 = vsel %vm1124_vm6, %v9058_v32, -inf }
 0x37e   : > { %v4056_v38 = vpop.f32.mrb[32].mxu0 }
 0x37f   : > { %1992 = vmax.xlane.f32.xlu0 %v1991_v48  ;;  %v7931_v40 = vpop.f32.mrb[33].mxu0  ;;  %v9027_v8 = vmul.f32 0.35355338, %v4056_v38 }
 0x381   : > { %v4061_v18 = vsel %vm1124_vm6, %v9027_v8, -inf }
 0x382   : > { %v4230_v50 = vpop.f32.mrb[34].mxu0 }
 0x383   : > { %2340 = vmax.xlane.f32.xlu0 %v2339_v52  ;;  %v7941_v53 = vpop.f32.mrb[35].mxu0  ;;  %v9064_v43 = vmul.f32 0.35355338, %v4230_v50 }
 0x385   : > { %v4235_v48 = vsel %vm1124_vm6, %v9064_v43, -inf }
 0x386   : > { %v4404_v51 = vpop.f32.mrb[36].mxu0 }
 0x387   : > { %2682 = vmax.xlane.f32.xlu0 %v2681_v55  ;;  %v7951_v57 = vpop.f32.mrb[37].mxu0  ;;  %v9033_v15 = vmul.f32 0.35355338, %v4404_v51 }
 0x389   : > { %v4409_v24 = vsel %vm1124_vm6, %v9033_v15, -inf }
 0x38a   : > { %v4576_v61 = vpop.f32.mrb[38].mxu0 }
 0x38b   : > { %3030 = vmax.xlane.f32.xlu0 %v3029_v62  ;;  %v7961_v56 = vpop.f32.mrb[39].mxu0  ;;  %v9074_v40 = vmul.f32 0.35355338, %v4576_v61 }
 0x38d   : > { %v4581_v62 = vsel %vm1124_vm6, %v9074_v40, -inf }
 0x38e   : > { %v4746_v1 = vpop.f32.mrb[40].mxu0 }
 0x38f   : > { %1822 = vmax.xlane.f32.xlu1 %v1821_v59  ;;  %3372 = vmax.xlane.f32.xlu0 %v3371_v3  ;;  %v7971_v4 = vpop.f32.mrb[41].mxu0  ;;  %v9043_v22 = vmul.f32 0.35355338, %v4746_v1 }
 0x391   : > { %v4751_v34 = vsel %vm1124_vm6, %v9043_v22, -inf }
 0x392   : > { %v4920_v9 = vpop.f32.mrb[42].mxu0 }
 0x393   : > { %2166 = vmax.xlane.f32.xlu1 %v2165_v5  ;;  %3720 = vmax.xlane.f32.xlu0 %v3719_v11  ;;  %v7981_v12 = vpop.f32.mrb[43].mxu0  ;;  %v9049_v28 = vmul.f32 0.35355338, %v4920_v9 }
 0x395   : > { %v4925_v41 = vsel %vm1124_vm6, %v9049_v28, -inf }
 0x396   : > { %v5094_v16 = vpop.f32.mrb[44].mxu0 }
 0x397   : > { %2512 = vmax.xlane.f32.xlu1 %v2511_v17  ;;  %4062 = vmax.xlane.f32.xlu0 %v4061_v18  ;;  %v7991_v19 = vpop.f32.mrb[45].mxu0  ;;  %v9060_v39 = vmul.f32 0.35355338, %v5094_v16 }
 0x399   : > { %v5099_v37 = vsel %vm1124_vm6, %v9060_v39, -inf }
 0x39a   : > { %v5266_v23 = vpop.f32.mrb[46].mxu0 }
 0x39b   : > { %2856 = vmax.xlane.f32.xlu1 %v2855_v20  ;;  %4410 = vmax.xlane.f32.xlu0 %v4409_v24  ;;  %v8001_v26 = vpop.f32.mrb[47].mxu0  ;;  %v9066_v31 = vmul.f32 0.35355338, %v5266_v23 }
 0x39d   : > { %v5271_v53 = vsel %vm1124_vm6, %v9066_v31, -inf }
 0x39e   : > { %v5436_v29 = vpop.f32.mrb[48].mxu0 }
 0x39f   : > { %3202 = vmax.xlane.f32.xlu1 %v3201_v33  ;;  %4752 = vmax.xlane.f32.xlu0 %v4751_v34  ;;  %v8011_v30 = vpop.f32.mrb[49].mxu0  ;;  %v9076_v52 = vmul.f32 0.35355338, %v5436_v29 }
 0x3a1   : > { %v5441_v56 = vsel %vm1124_vm6, %v9076_v52, -inf }
 0x3a2   : > { %v5610_v36 = vpop.f32.mrb[50].mxu0 }
 0x3a3   : > { %3546 = vmax.xlane.f32.xlu1 %v3545_v35  ;;  %4926 = vmax.xlane.f32.xlu0 %v4925_v41  ;;  %v8021_v42 = vpop.f32.mrb[51].mxu0  ;;  %v9080_v55 = vmul.f32 0.35355338, %v5610_v36 }
 0x3a5   : > { %v5615_v3 = vsel %vm1124_vm6, %v9080_v55, -inf }
 0x3a6   : > { %v5784_v44 = vpop.f32.mrb[52].mxu0 }
 0x3a7   : > { %3892 = vmax.xlane.f32.xlu1 %v3891_v46  ;;  %5100 = vmax.xlane.f32.xlu0 %v5099_v37  ;;  %v8031_v38 = vpop.f32.mrb[53].mxu0  ;;  %v9086_v1 = vmul.f32 0.35355338, %v5784_v44 }
 0x3a9   : > { %v5789_v11 = vsel %vm1124_vm6, %v9086_v1, -inf }
 0x3aa   : > { %v5956_v50 = vpop.f32.mrb[54].mxu0 }
 0x3ab   : > { %4236 = vmax.xlane.f32.xlu1 %v4235_v48  ;;  %5272 = vmax.xlane.f32.xlu0 %v5271_v53  ;;  %v8041_v51 = vpop.f32.mrb[55].mxu0  ;;  %v9090_v5 = vmul.f32 0.35355338, %v5956_v50 }
 0x3ad   : > { %v5961_v17 = vsel %vm1124_vm6, %v9090_v5, -inf }
 0x3ae   : > { %v6126_v57 = vpop.f32.mrb[56].mxu0 }
 0x3af   : > { %4582 = vmax.xlane.f32.xlu1 %v4581_v62  ;;  %5442 = vmax.xlane.f32.xlu0 %v5441_v56  ;;  %v8051_v61 = vpop.f32.mrb[57].mxu0  ;;  %v9094_v16 = vmul.f32 0.35355338, %v6126_v57 }
 0x3b1   : > { %v6131_v19 = vsel %vm1124_vm6, %v9094_v16, -inf }
 0x3b2   : > { %v6300_v59 = vpop.f32.mrb[58].mxu0 }
 0x3b3   : > { %5616 = vmax.xlane.f32.xlu0 %v5615_v3  ;;  %v8061_v4 = vpop.f32.mrb[59].mxu0  ;;  %v9098_v18 = vmul.f32 0.35355338, %v6300_v59 }
 0x3b5   : > { %v6305_v23 = vsel %vm1124_vm6, %v9098_v18, -inf }
 0x3b6   : > { %v6474_v9 = vpop.f32.mrb[60].mxu0 }
 0x3b7   : > { %5790 = vmax.xlane.f32.xlu0 %v5789_v11  ;;  %v8071_v12 = vpop.f32.mrb[61].mxu0  ;;  %v9102_v20 = vmul.f32 0.35355338, %v6474_v9 }
 0x3b9   : > { %v6479_v24 = vsel %vm1124_vm6, %v9102_v20, -inf }
 0x3bb   : > { %5962 = vmax.xlane.f32.xlu0 %v5961_v17 }
 0x3bf   : > { %6132 = vmax.xlane.f32.xlu0 %v6131_v19 }
 0x3c3   : > { %6306 = vmax.xlane.f32.xlu0 %v6305_v23 }
 0x3c7   : > { %6480 = vmax.xlane.f32.xlu0 %v6479_v24 }
 0x3cb   : > { %v1127_v26 = vpop.xlane.xlu0 %1126 }
 0x3cc   : > { %v1128_v29 = vsub.f32 %v8961_v2, %v1127_v26 }
 0x3ce   : > { %v1129_v33 = vmul.f32 1.442695, %v1128_v29 }
 0x3cf   : > { %v1300_v34 = vpop.xlane.xlu1 %1299 }
 0x3d0   : > { %8271 = vpow2.f32 %v1129_v33  ;;  %v1301_v30 = vsub.f32 %v8965_v6, %v1300_v34 }
 0x3d2   : > { %v1302_v35 = vmul.f32 1.442695, %v1301_v30 }
 0x3d3   : > { %v1475_v36 = vpop.xlane.xlu0 %1474  ;;  %v9128_v51 = vpop.permute.xlu1 %1484 }
 0x3d4   : > { %8273 = vpow2.f32 %v1302_v35  ;;  %v1476_v41 = vsub.f32 %v8969_v10, %v1475_v36 }
 0x3d6   : > { %v1477_v42 = vmul.f32 1.442695, %v1476_v41 }
 0x3d7   : > { %v1650_v44 = vpop.xlane.xlu0 %1649  ;;  %v9130_v57 = vpop.permute.xlu1 %1659 }
 0x3d8   : > { %8275 = vpow2.f32 %v1477_v42  ;;  %v1651_v46 = vsub.f32 %v8973_v14, %v1650_v44 }
 0x3da   : > { %v9112_v37 = vpop.eup %8271  ;;  %v1652_v38 = vmul.f32 1.442695, %v1651_v46 }
 0x3db   : > { %v1131_v2 = vsel %vm1124_vm6, %v9112_v37, 0.0  ;;  %v9132_v62 = vpop.permute.xlu1 %1832  ;;  %v9136_v61 = vpop.permute.xlu0 %1309 }
 0x3dc   : > { %8277 = vpow2.f32 %v1652_v38  ;;  %1132 = vadd.xlane.f32.xlu1 %v1131_v2 }
 0x3de   : > { %v9116_v48 = vpop.eup %8273 }
 0x3df   : > { %v1304_v6 = vsel %vm1124_vm6, %v9116_v48, 0.0  ;;  %v9134_v56 = vpop.permute.xlu1 %2002 }
 0x3e0   : > { %1305 = vadd.xlane.f32.xlu1 %v1304_v6 }
 0x3e2   : > { %v9120_v10 = vpop.eup %8275 }
 0x3e3   : > { %v1479_v50 = vsel %vm1124_vm6, %v9120_v10, 0.0  ;;  %v9138_v59 = vpop.permute.xlu1 %2176 }
 0x3e4   : > { %1480 = vadd.xlane.f32.xlu1 %v1479_v50 }
 0x3e6   : > { %v9124_v14 = vpop.eup %8277 }
 0x3e7   : > { %v1654_v53 = vsel %vm1124_vm6, %v9124_v14, 0.0  ;;  %v9141_v11 = vpop.permute.xlu1 %2350 }
 0x3e8   : > { %1655 = vadd.xlane.f32.xlu1 %v1654_v53 }
 0x3eb   : > { %v9144_v24 = vpop.permute.xlu1 %2522 }
 0x40c   : > { %v1993_v3 = vpop.xlane.xlu0 %1992 }
 0x40d   : > { %v1994_v29 = vsub.f32 %v8993_v45, %v1993_v3 }
 0x410   : > { %v2341_v4 = vpop.xlane.xlu0 %2340 }
 0x411   : > { %v2342_v9 = vsub.f32 %v8997_v47, %v2341_v4  ;;  %v1995_v47 = vmul.f32 1.442695, %v1994_v29 }
 0x413   : > { %v2343_v12 = vmul.f32 1.442695, %v2342_v9 }
 0x414   : > { %v2683_v17 = vpop.xlane.xlu0 %2682 }
 0x415   : > { %8279 = vpow2.f32 %v2343_v12  ;;  %v2684_v19 = vsub.f32 %v9001_v49, %v2683_v17 }
 0x417   : > { %v2685_v23 = vmul.f32 1.442695, %v2684_v19 }
 0x418   : > { %v3031_v26 = vpop.xlane.xlu0 %3030 }
 0x419   : > { %8281 = vpow2.f32 %v2685_v23  ;;  %v3032_v2 = vsub.f32 %v9005_v54, %v3031_v26 }
 0x41c   : > { %v1823_v33 = vpop.xlane.xlu1 %1822  ;;  %v3373_v36 = vpop.xlane.xlu0 %3372 }
 0x41d   : > { %v1824_v34 = vsub.f32 %v9009_v58, %v1823_v33  ;;  %v3374_v54 = vsub.f32 %v9011_v60, %v3373_v36 }
 0x41f   : > { %v9148_v30 = vpop.eup %8279  ;;  %v1825_v35 = vmul.f32 1.442695, %v1824_v34  ;;  %v3375_v34 = vmul.f32 1.442695, %v3374_v54 }
 0x420   : > { %v2167_v41 = vpop.xlane.xlu1 %2166  ;;  %v2345_v42 = vsel %vm1124_vm6, %v9148_v30, 0.0  ;;  %v3721_v38 = vpop.xlane.xlu0 %3720 }
 0x421   : > { %8283 = vpow2.f32 %v1825_v35  ;;  %v2168_v49 = vsub.f32 %v9015_v63, %v2167_v41  ;;  %2346 = vadd.xlane.f32.xlu0 %v2345_v42  ;;  %v3033_v63 = vmul.f32 1.442695, %v3032_v2  ;;  %v3722_v60 = vsub.f32 %v9017_v0, %v3721_v38 }
 0x422   : > { %8285 = vpow2.f32 %v1995_v47 }
 0x423   : > { %v9153_v44 = vpop.eup %8281  ;;  %v2169_v45 = vmul.f32 1.442695, %v2168_v49 }
 0x424   : > { %v9155_v46 = vpop.xlane.xlu1 %2512  ;;  %v2687_v58 = vsel %vm1124_vm6, %v9153_v44, 0.0  ;;  %v4063_v4 = vpop.xlane.xlu0 %4062 }
 0x425   : > { %2688 = vadd.xlane.f32.xlu0 %v2687_v58  ;;  %8287 = vpow2.f32 %v2169_v45  ;;  %v3723_v58 = vmul.f32 1.442695, %v3722_v60  ;;  %v4064_v38 = vsub.f32 %v9027_v8, %v4063_v4  ;;  %v8407_v8 = vld [vmem:[#allocation3 + $0x4] sm:$0x3] }
 0x428   : > { %v2857_v6 = vpop.xlane.xlu1 %2856  ;;  %v4411_v33 = vpop.xlane.xlu0 %4410 }
 0x429   : > { %v2858_v50 = vsub.f32 %v9031_v13, %v2857_v6  ;;  %v4412_v4 = vsub.f32 %v9033_v15, %v4411_v33 }
 0x42b   : > { %v9161_v53 = vpop.eup %8283  ;;  %v2859_v3 = vmul.f32 1.442695, %v2858_v50 }
 0x42c   : > { %v3203_v9 = vpop.xlane.xlu1 %3202  ;;  %v1827_v12 = vsel %vm1124_vm6, %v9161_v53, 0.0  ;;  %v9165_v17 = vpop.eup %8285 }
 0x42d   : > { %8289 = vpow2.f32 %v2859_v3  ;;  %v3204_v19 = vsub.f32 %v9041_v21, %v3203_v9  ;;  %1828 = vadd.xlane.f32.xlu1 %v1827_v12  ;;  %v1997_v26 = vsel %vm1124_vm6, %v9165_v17, 0.0  ;;  %v4753_v41 = vpop.xlane.xlu0 %4752  ;;  %v4065_v12 = vmul.f32 1.442695, %v4064_v38 }
 0x42e   : > { %8291 = vpow2.f32 %v3033_v63  ;;  %v4754_v15 = vsub.f32 %v9043_v22, %v4753_v41  ;;  %v2514_v38 = vsub.f32 %v9025_v7, %v9155_v46 }
 0x42f   : > { %v3205_v23 = vmul.f32 1.442695, %v3204_v19  ;;  %v9171_v29 = vpop.eup %8287 }
 0x430   : > { %v3547_v13 = vpop.xlane.xlu1 %3546  ;;  %v2171_v21 = vsel %vm1124_vm6, %v9171_v29, 0.0 }
 0x431   : > { %1998 = vadd.xlane.f32.xlu1 %v1997_v26  ;;  %8293 = vpow2.f32 %v3205_v23  ;;  %v3548_v47 = vsub.f32 %v9047_v27, %v3547_v13  ;;  %v4927_v0 = vpop.xlane.xlu0 %4926 }
 0x432   : > { %8295 = vpow2.f32 %v3375_v34 }
 0x433   : > { %v3549_v36 = vmul.f32 1.442695, %v3548_v47 }
 0x434   : > { %v3893_v42 = vpop.xlane.xlu1 %3892 }
 0x435   : > { %2172 = vadd.xlane.f32.xlu1 %v2171_v21  ;;  %8297 = vpow2.f32 %v3549_v36  ;;  %v3894_v27 = vsub.f32 %v9058_v32, %v3893_v42  ;;  %v5101_v19 = vpop.xlane.xlu0 %5100  ;;  %v4413_v21 = vmul.f32 1.442695, %v4412_v4 }
 0x436   : > { %8299 = vpow2.f32 %v3723_v58 }
 0x437   : > { %v9176_v35 = vpop.eup %8289  ;;  %v3895_v50 = vmul.f32 1.442695, %v3894_v27 }
 0x438   : > { %v2861_v49 = vsel %vm1124_vm6, %v9176_v35, 0.0  ;;  %v9181_v45 = vpop.eup %8291  ;;  %v4237_v63 = vpop.xlane.xlu1 %4236 }
 0x439   : > { %2862 = vadd.xlane.f32.xlu0 %v2861_v49  ;;  %v3035_v2 = vsel %vm1124_vm6, %v9181_v45, 0.0  ;;  %8301 = vpow2.f32 %v3895_v50  ;;  %v4238_v32 = vsub.f32 %v9064_v43, %v4237_v63  ;;  %v5273_v43 = vpop.xlane.xlu0 %5272 }
 0x43a   : > { %8303 = vpow2.f32 %v4065_v12  ;;  %v2515_v12 = vmul.f32 1.442695, %v2514_v38  ;;  %v5274_v46 = vsub.f32 %v9066_v31, %v5273_v43 }
 0x43b   : > { %v9186_v6 = vpop.eup %8293  ;;  %v4239_v13 = vmul.f32 1.442695, %v4238_v32 }
 0x43c   : > { %v3207_v3 = vsel %vm1124_vm6, %v9186_v6, 0.0  ;;  %v9191_v9 = vpop.eup %8295  ;;  %v4583_v26 = vpop.xlane.xlu1 %4582 }
 0x43d   : > { %3036 = vadd.xlane.f32.xlu0 %v3035_v2  ;;  %v3377_v54 = vsel %vm1124_vm6, %v9191_v9, 0.0  ;;  %8305 = vpow2.f32 %v4239_v13  ;;  %v4584_v60 = vsub.f32 %v9074_v40, %v4583_v26  ;;  %v5443_v49 = vpop.xlane.xlu0 %5442  ;;  %v4755_v2 = vmul.f32 1.442695, %v4754_v15 }
 0x43e   : > { %8307 = vpow2.f32 %v4413_v21  ;;  %v4928_v40 = vsub.f32 %v9049_v28, %v4927_v0 }
 0x43f   : > { %v9196_v23 = vpop.eup %8297  ;;  %v4585_v33 = vmul.f32 1.442695, %v4584_v60 }
 0x440   : > { %v3551_v34 = vsel %vm1124_vm6, %v9196_v23, 0.0  ;;  %v9202_v47 = vpop.eup %8299  ;;  %v4929_v41 = vmul.f32 1.442695, %v4928_v40 }
 0x441   : > { %3208 = vadd.xlane.f32.xlu0 %v3207_v3  ;;  %v3725_v36 = vsel %vm1124_vm6, %v9202_v47, 0.0  ;;  %8309 = vpow2.f32 %v4585_v33  ;;  %v5617_v22 = vpop.xlane.xlu0 %5616  ;;  %v5102_v3 = vsub.f32 %v9060_v39, %v5101_v19  ;;  %v5275_v39 = vmul.f32 1.442695, %v5274_v46 }
 0x442   : > { %8311 = vpow2.f32 %v4755_v2  ;;  %v5444_v19 = vsub.f32 %v9076_v52, %v5443_v49 }
 0x443   : > { %v9207_v42 = vpop.eup %8301  ;;  %8313 = vpow2.f32 %v4929_v41  ;;  %v5103_v7 = vmul.f32 1.442695, %v5102_v3 }
 0x444   : > { %v3897_v58 = vsel %vm1124_vm6, %v9207_v42, 0.0  ;;  %v9212_v27 = vpop.eup %8303  ;;  %8315 = vpow2.f32 %v2515_v12  ;;  %v5445_v31 = vmul.f32 1.442695, %v5444_v19 }
 0x445   : > { %3378 = vadd.xlane.f32.xlu0 %v3377_v54  ;;  %v4067_v50 = vsel %vm1124_vm6, %v9212_v27, 0.0  ;;  %v5791_v0 = vpop.xlane.xlu0 %5790  ;;  %8317 = vpow2.f32 %v5103_v7 }
 0x446   : > { %2692 = vrot.lane.b32.xlu1 %v8407_v8, %s8452_s22  ;;  %8319 = vpow2.f32 %v5275_v39 }
 0x447   : > { %v9219_v63 = vpop.eup %8305  ;;  %8321 = vpow2.f32 %v5445_v31 }
 0x448   : > { %v4241_v32 = vsel %vm1124_vm6, %v9219_v63, 0.0  ;;  %v9224_v28 = vpop.eup %8307 }
 0x449   : > { %3552 = vadd.xlane.f32.xlu0 %v3551_v34  ;;  %v4415_v54 = vsel %vm1124_vm6, %v9224_v28, 0.0  ;;  %v5963_v26 = vpop.xlane.xlu0 %5962  ;;  %v5618_v34 = vsub.f32 %v9080_v55, %v5617_v22 }
 0x44a   : > { %v5964_v40 = vsub.f32 %v9090_v5, %v5963_v26 }
 0x44b   : > { %v9229_v8 = vpop.eup %8309  ;;  %v5619_v52 = vmul.f32 1.442695, %v5618_v34 }
 0x44c   : > { %v4587_v4 = vsel %vm1124_vm6, %v9229_v8, 0.0  ;;  %v9234_v13 = vpop.eup %8311  ;;  %v5965_v41 = vmul.f32 1.442695, %v5964_v40 }
 0x44d   : > { %3726 = vadd.xlane.f32.xlu0 %v3725_v36  ;;  %v4757_v43 = vsel %vm1124_vm6, %v9234_v13, 0.0  ;;  %v9239_v21 = vpop.eup %8313  ;;  %v5792_v36 = vsub.f32 %v9086_v1, %v5791_v0  ;;  %v6133_v15 = vpop.xlane.xlu0 %6132 }
 0x44e   : > { %v9241_v60 = vpop.eup %8315  ;;  %v4931_v33 = vsel %vm1124_vm6, %v9239_v21, 0.0  ;;  %v6134_v3 = vsub.f32 %v9094_v16, %v6133_v15 }
 0x44f   : > { %v9246_v49 = vpop.eup %8317  ;;  %v2517_v55 = vsel %vm1124_vm6, %v9241_v60, 0.0  ;;  %v5793_v2 = vmul.f32 1.442695, %v5792_v36 }
 0x450   : > { %v5105_v1 = vsel %vm1124_vm6, %v9246_v49, 0.0  ;;  %v9253_v38 = vpop.eup %8319  ;;  %v6135_v5 = vmul.f32 1.442695, %v6134_v3  ;;  %v8414_v3 = vld [vmem:[#allocation3 + $0x8] sm:$0x3] }
 0x451   : > { %3898 = vadd.xlane.f32.xlu0 %v3897_v58  ;;  %v6307_v22 = vpop.xlane.xlu0 %6306  ;;  %v5277_v12 = vsel %vm1124_vm6, %v9253_v38, 0.0 }
 0x452   : > { %v6308_v46 = vsub.f32 %v9098_v18, %v6307_v22 }
 0x454   : > { %v6309_v26 = vmul.f32 1.442695, %v6308_v46  ;;  %v8418_v46 = vld [vmem:[#allocation3 + $0xa] sm:$0x3] }
 0x455   : > { %4068 = vadd.xlane.f32.xlu0 %v4067_v50 }
 0x459   : > { %4242 = vadd.xlane.f32.xlu0 %v4241_v32  ;;  %v9258_v32 = vpop.eup %8321 }
 0x45a   : > { %v5447_v39 = vsel %vm1124_vm6, %v9258_v32, 0.0 }
 0x45d   : > { %4416 = vadd.xlane.f32.xlu0 %v4415_v54  ;;  %v6481_v54 = vpop.xlane.xlu0 %6480 }
 0x45e   : > { %v6482_v31 = vsub.f32 %v9102_v20, %v6481_v54  ;;  %v8420_v54 = vld [vmem:[#allocation3 + $0xa] sm:$0x3] }
 0x460   : > { %v6483_v20 = vmul.f32 1.442695, %v6482_v31 }
 0x461   : > { %4588 = vadd.xlane.f32.xlu0 %v4587_v4 }
 0x465   : > { %4758 = vadd.xlane.f32.xlu0 %v4757_v43 }
 0x469   : > { %v1133_v58 = vpop.xlane.xlu1 %1132  ;;  %4932 = vadd.xlane.f32.xlu0 %v4931_v33  ;;  %v8409_v33 = vld [vmem:[#allocation3 + $0x4] sm:$0x3] }
 0x46a   : > { %8323 = vrcp.f32 %v1133_v58  ;;  %2518 = vadd.xlane.f32.xlu1 %v2517_v55 }
 0x46b   : > { %8325 = vpow2.f32 %v5619_v52  ;;  %v8408_v52 = vld [vmem:[#allocation3 + $0x4] sm:$0x3] }
 0x46d   : > { %v1306_v50 = vpop.xlane.xlu1 %1305  ;;  %5106 = vadd.xlane.f32.xlu0 %v5105_v1 }
 0x46e   : > { %8327 = vrcp.f32 %v1306_v50 }
 0x46f   : > { %8329 = vpow2.f32 %v5793_v2  ;;  %v8410_v2 = vld [vmem:[#allocation3 + $0x6] sm:$0x3] }
 0x471   : > { %v1481_v7 = vpop.xlane.xlu1 %1480  ;;  %5278 = vadd.xlane.f32.xlu0 %v5277_v12  ;;  %v8415_v12 = vld [vmem:[#allocation3 + $0x8] sm:$0x3] }
 0x472   : > { %8331 = vrcp.f32 %v1481_v7  ;;  %v8416_v7 = vld [vmem:[#allocation3 + $0x8] sm:$0x3] }
 0x473   : > { %8333 = vpow2.f32 %v5965_v41  ;;  %v8413_v41 = vld [vmem:[#allocation3 + $0x6] sm:$0x3] }
 0x474   : > { %v8324_v0 = vpop.eup %8323 }
 0x475   : > { %v9263_v19 = vpop.eup %8325  ;;  %v1135_v16 = vmul.f32 %v8324_v0, %v9112_v37  ;;  %v1656_v4 = vpop.xlane.xlu1 %1655  ;;  %5448 = vadd.xlane.f32.xlu0 %v5447_v39  ;;  %v8419_v0 = vld [vmem:[#allocation3 + $0xc] sm:$0x3]  ;;  %v8421_v39 = vld [vmem:[#allocation3 + $0xa] sm:$0x3] }
 0x476   : > { %8335 = vrcp.f32 %v1656_v4  ;;  %v5621_v34 = vsel %vm1124_vm6, %v9263_v19, 0.0  ;;  %v8423_v4 = vld [vmem:[#allocation3 + $0xc] sm:$0x3] }
 0x477   : > { %8337 = vpow2.f32 %v6135_v5  ;;  %7765 = vmatmul.mubr.msk.f32.vlgmr.msra.gmra.mrb[4].mxu1 %vm1138_vm7, %v1135_v16  ;;  %v8417_v5 = vld [vmem:[#allocation3 + $0x8] sm:$0x3]  ;;  %v8422_v16 = vld [vmem:[#allocation3 + $0xa] sm:$0x3] }
 0x478   : > { %v8328_v18 = vpop.eup %8327  ;;  %7773 = vmatpush3.msk.msra.mxu1 %vm1142_vm5, %v9136_v61  ;;  %7774 = vmatprep.mubr.msk.f32.mxu1 %vm8441_vm3, %v8440_v25  ;;  %8339 = vpow2.f32 %v6309_v26  ;;  %v8424_v26 = vld [vmem:[#allocation3 + $0xc] sm:$0x3] }
 0x479   : > { %v9274_v37 = vpop.eup %8329  ;;  %v1308_v43 = vmul.f32 %v8328_v18, %v9116_v48  ;;  %5622 = vadd.xlane.f32.xlu0 %v5621_v34  ;;  %7782 = vmatprep.subr.mxu1 %v8440_v25  ;;  %8341 = vpow2.f32 %v6483_v20  ;;  %v8425_v18 = vld [vmem:[#allocation3 + $0xc] sm:$0x3]  ;;  %v8426_v20 = vld [vmem:[#allocation3 + $0xe] sm:$0x3] }
 0x47a   : > { %v5795_v36 = vsel %vm1124_vm6, %v9274_v37, 0.0 }
 0x47b   : > { %7775 = vmatmul.mubr.msk.f32.vlgmr.msra.gmra.mrb[6].mxu1 %vm1138_vm7, %v1308_v43  ;;  %2866 = vrot.lane.b32.xlu1 %v8408_v52, %s8450_s1 }
 0x47c   : > { %v8332_v61 = vpop.eup %8331  ;;  %7783 = vmatpush3.msk.msra.mxu1 %vm1142_vm5, %v9128_v51  ;;  %7784 = vmatprep.mubr.msk.f32.mxu1 %vm8441_vm3, %v8440_v25 }
 0x47d   : > { %v9286_v48 = vpop.eup %8333  ;;  %v1483_v15 = vmul.f32 %v8332_v61, %v9120_v10  ;;  %5796 = vadd.xlane.f32.xlu0 %v5795_v36  ;;  %7792 = vmatprep.subr.mxu1 %v8440_v25  ;;  %v8427_v36 = vld [vmem:[#allocation3 + $0xe] sm:$0x3] }
 0x47e   : > { %v5967_v58 = vsel %vm1124_vm6, %v9286_v48, 0.0 }
 0x47f   : > { %7785 = vmatmul.mubr.msk.f32.vlgmr.msra.gmra.mrb[8].mxu1 %vm1138_vm7, %v1483_v15  ;;  %3040 = vrot.lane.b32.xlu1 %v8409_v33, %s8451_s25 }
 0x480   : > { %v8336_v51 = vpop.eup %8335  ;;  %7793 = vmatpush3.msk.msra.mxu1 %vm1142_vm5, %v9130_v57  ;;  %7794 = vmatprep.mubr.msk.f32.mxu1 %vm8441_vm3, %v8440_v25 }
 0x481   : > { %v9298_v10 = vpop.eup %8337  ;;  %v1658_v55 = vmul.f32 %v8336_v51, %v9124_v14  ;;  %5968 = vadd.xlane.f32.xlu0 %v5967_v58  ;;  %7802 = vmatprep.subr.mxu1 %v8440_v25  ;;  %v8411_v14 = vld [vmem:[#allocation3 + $0x6] sm:$0x3]  ;;  %v8428_v58 = vld [vmem:[#allocation3 + $0xe] sm:$0x3] }
 0x482   : > { %v6137_v57 = vsel %vm1124_vm6, %v9298_v10, 0.0  ;;  %v9310_v40 = vpop.eup %8339 }
 0x483   : > { %7795 = vmatmul.mubr.msk.f32.vlgmr.msra.gmra.mrb[10].mxu1 %vm1138_vm7, %v1658_v55  ;;  %3212 = vrot.lane.b32.xlu1 %v8410_v2, %s8449_s2  ;;  %v6311_v1 = vsel %vm1124_vm6, %v9310_v40, 0.0  ;;  %v9316_v50 = vpop.eup %8341 }
 0x484   : > { %7803 = vmatpush3.msk.msra.mxu1 %vm1142_vm5, %v9132_v62  ;;  %7804 = vmatprep.mubr.msk.f32.mxu1 %vm8441_vm3, %v8440_v25  ;;  %v8412_v62 = vld [vmem:[#allocation3 + $0x6] sm:$0x3]  ;;  %v6485_v22 = vsel %vm1124_vm6, %v9316_v50, 0.0 }
 0x485   : > { %6138 = vadd.xlane.f32.xlu0 %v6137_v57  ;;  %7812 = vmatprep.subr.mxu1 %v8440_v25 }
 0x487   : > { %3382 = vrot.lane.b32.xlu1 %v8411_v14, %s8452_s22  ;;  %v8429_v14 = vld [vmem:[#allocation3 + $0xe] sm:$0x3] }
 0x489   : > { %6312 = vadd.xlane.f32.xlu0 %v6311_v1 }
 0x48b   : > { %3556 = vrot.lane.b32.xlu1 %v8412_v62, %s8450_s1 }
 0x48d   : > { %6486 = vadd.xlane.f32.xlu0 %v6485_v22 }
 0x48f   : > { %3730 = vrot.lane.b32.xlu1 %v8413_v41, %s8451_s25 }
 0x493   : > { %3902 = vrot.lane.b32.xlu1 %v8414_v3, %s8449_s2 }
 0x497   : > { %4072 = vrot.lane.b32.xlu1 %v8415_v12, %s8452_s22 }
 0x49b   : > { %4246 = vrot.lane.b32.xlu1 %v8416_v7, %s8450_s1 }
 0x49f   : > { %4420 = vrot.lane.b32.xlu1 %v8417_v5, %s8451_s25 }
 0x4a3   : > { %4592 = vrot.lane.b32.xlu1 %v8418_v46, %s8449_s2  ;;  %5626 = vrot.lane.b32.xlu0 %v8419_v0, %s8450_s1 }
 0x4a7   : > { %4762 = vrot.lane.b32.xlu1 %v8420_v54, %s8452_s22 }
 0x4ab   : > { %4936 = vrot.lane.b32.xlu1 %v8421_v39, %s8450_s1 }
 0x4ae   : > { %v2347_v34 = vpop.xlane.xlu0 %2346 }
 0x4af   : > { %5110 = vrot.lane.b32.xlu1 %v8422_v16, %s8451_s25 }
 0x4b2   : > { %v2689_v52 = vpop.xlane.xlu0 %2688 }
 0x4b3   : > { %5282 = vrot.lane.b32.xlu1 %v8423_v4, %s8449_s2 }
 0x4b7   : > { %5452 = vrot.lane.b32.xlu1 %v8424_v26, %s8452_s22 }
 0x4ba   : > { %v1829_v31 = vpop.xlane.xlu1 %1828 }
 0x4bb   : > { %8343 = vrcp.f32 %v1829_v31  ;;  %5800 = vrot.lane.b32.xlu1 %v8425_v18, %s8451_s25 }
 0x4be   : > { %v1999_v43 = vpop.xlane.xlu1 %1998 }
 0x4bf   : > { %8345 = vrcp.f32 %v1999_v43  ;;  %5972 = vrot.lane.b32.xlu1 %v8426_v20, %s8449_s2  ;;  %s9764_s2 = scalar_lea.vmem %s9718_s8, %s8583_s29 }
 0x4c2   : > { %v2173_v61 = vpop.xlane.xlu1 %2172 }
 0x4c3   : > { %8347 = vrcp.f32 %v2173_v61  ;;  %6142 = vrot.lane.b32.xlu1 %v8427_v36, %s8452_s22  ;;  %s9765_s22 = scalar_lea.vmem %s9719_s9, %s8583_s29 }
 0x4c4   : > { %8349 = vrcp.f32 %v2347_v34 }
 0x4c5   : > { %v8344_v15 = vpop.eup %8343 }
 0x4c6   : > { %v1831_v33 = vmul.f32 %v8344_v15, %v9161_v53  ;;  %v2863_v51 = vpop.xlane.xlu0 %2862  ;;  %v2693_v3 = vpop.permute.xlu1 %2692 }
 0x4c7   : > { %6316 = vrot.lane.b32.xlu1 %v8428_v58, %s8450_s1 }
 0x4c8   : > { %7805 = vmatmul.mubr.msk.f32.vlgmr.msra.gmra.mrb[12].mxu1 %vm1138_vm7, %v1831_v33 }
 0x4c9   : > { %v8346_v55 = vpop.eup %8345  ;;  %7813 = vmatpush3.msk.msra.mxu1 %vm1142_vm5, %v9134_v56  ;;  %7814 = vmatprep.mubr.msk.f32.mxu1 %vm8441_vm3, %v8440_v25 }
 0x4ca   : > { %v2001_v2 = vmul.f32 %v8346_v55, %v9165_v17  ;;  %7822 = vmatprep.subr.mxu1 %v8440_v25  ;;  %v3037_v57 = vpop.xlane.xlu0 %3036 }
 0x4cb   : > { %6490 = vrot.lane.b32.xlu1 %v8429_v14, %s8451_s25 }
 0x4cc   : > { %7815 = vmatmul.mubr.msk.f32.vlgmr.msra.gmra.mrb[14].mxu1 %vm1138_vm7, %v2001_v2 }
 0x4cd   : > { %v8348_v53 = vpop.eup %8347  ;;  %7823 = vmatpush3.msk.msra.mxu1 %vm1142_vm5, %v9138_v59  ;;  %7824 = vmatprep.mubr.msk.f32.mxu1 %vm8441_vm3, %v8440_v25 }
 0x4ce   : > { %v2175_v56 = vmul.f32 %v8348_v53, %v9171_v29  ;;  %7832 = vmatprep.subr.mxu1 %v8440_v25  ;;  %v8350_v17 = vpop.eup %8349  ;;  %v3209_v1 = vpop.xlane.xlu0 %3208 }
 0x4cf   : > { %v2349_v62 = vmul.f32 %v8350_v17, %v9148_v30 }
 0x4d0   : > { %7825 = vmatmul.mubr.msk.f32.vlgmr.msra.gmra.mrb[16].mxu1 %vm1138_vm7, %v2175_v56 }
 0x4d1   : > { %7833 = vmatpush3.msk.msra.mxu1 %vm1142_vm5, %v9141_v11  ;;  %7834 = vmatprep.mubr.msk.f32.mxu1 %vm8441_vm3, %v8440_v25 }
 0x4d2   : > { %7842 = vmatprep.subr.mxu1 %v8440_v25  ;;  %v3379_v59 = vpop.xlane.xlu0 %3378 }
 0x4d4   : > { %7835 = vmatmul.mubr.msk.f32.vlgmr.msra.gmra.mrb[18].mxu1 %vm1138_vm7, %v2349_v62 }
 0x4d5   : > { %7843 = vmatpush3.msk.msra.mxu1 %vm1142_vm5, %v9144_v24  ;;  %7844 = vmatprep.mubr.msk.f32.mxu1 %vm8441_vm3, %v8440_v25 }
 0x4d6   : > { %7852 = vmatprep.subr.mxu1 %v8440_v25  ;;  %v3553_v29 = vpop.xlane.xlu0 %3552 }
 0x4da   : > { %v3727_v11 = vpop.xlane.xlu0 %3726 }
 0x4de   : > { %v3899_v22 = vpop.xlane.xlu0 %3898 }
 0x4e2   : > { %v4069_v41 = vpop.xlane.xlu0 %4068 }
 0x4e6   : > { %v9366_v12 = vpop.xlane.xlu0 %4242 }
 0x4ea   : > { %v9368_v7 = vpop.xlane.xlu0 %4416 }
 0x4ee   : > { %v9370_v46 = vpop.xlane.xlu0 %4588 }
 0x4f2   : > { %v9378_v26 = vpop.xlane.xlu0 %4758 }
 0x4f6   : > { %v9387_v43 = vpop.xlane.xlu0 %4932 }
 0x4f7   : > { %v2519_v30 = vpop.xlane.xlu1 %2518 }
 0x4f8   : > { %8351 = vrcp.f32 %v2519_v30 }
 0x4f9   : > { %8353 = vrcp.f32 %v2689_v52 }
 0x4fa   : > { %8355 = vrcp.f32 %v2863_v51  ;;  %v9400_v36 = vpop.xlane.xlu0 %5106 }
 0x4fb   : > { %v2867_v5 = vpop.permute.xlu1 %2866  ;;  %8357 = vrcp.f32 %v3037_v57 }
 0x4fc   : > { %8359 = vrcp.f32 %v3209_v1 }
 0x4fd   : > { %8361 = vrcp.f32 %v3379_v59 }
 0x4fe   : > { %8363 = vrcp.f32 %v3553_v29  ;;  %v5279_v58 = vpop.xlane.xlu0 %5278 }
 0x4ff   : > { %v3041_v24 = vpop.permute.xlu1 %3040  ;;  %8365 = vrcp.f32 %v3727_v11 }
 0x500   : > { %8367 = vrcp.f32 %v3899_v22 }
 0x501   : > { %8369 = vrcp.f32 %v4069_v41 }
 0x502   : > { %v8352_v0 = vpop.eup %8351  ;;  %8371 = vrcp.f32 %v9366_v12  ;;  %v5449_v14 = vpop.xlane.xlu0 %5448 }
 0x503   : > { %v2521_v54 = vmul.f32 %v8352_v0, %v9241_v60  ;;  %v3213_v39 = vpop.permute.xlu1 %3212  ;;  %v8354_v16 = vpop.eup %8353  ;;  %8373 = vrcp.f32 %v9368_v7 }
 0x504   : > { %v2691_v4 = vmul.f32 %v8354_v16, %v9153_v44  ;;  %v8356_v18 = vpop.eup %8355  ;;  %8375 = vrcp.f32 %v9370_v46 }
 0x505   : > { %7845 = vmatmul.mubr.msk.f32.vlgmr.msra.gmra.mrb[20].mxu1 %vm1138_vm7, %v2521_v54  ;;  %v2865_v60 = vmul.f32 %v8356_v18, %v9176_v35  ;;  %v8358_v44 = vpop.eup %8357  ;;  %8377 = vrcp.f32 %v9378_v26 }
 0x506   : > { %7853 = vmatpush3.msk.msra.mxu1 %vm1142_vm5, %v2693_v3  ;;  %7854 = vmatprep.mubr.msk.f32.mxu1 %vm8441_vm3, %v8440_v25  ;;  %v3039_v20 = vmul.f32 %v8358_v44, %v9181_v45  ;;  %v8360_v35 = vpop.eup %8359  ;;  %v5623_v1 = vpop.xlane.xlu0 %5622  ;;  %8379 = vrcp.f32 %v9387_v43 }
 0x507   : > { %v3383_v31 = vpop.permute.xlu1 %3382  ;;  %7862 = vmatprep.subr.mxu1 %v8440_v25  ;;  %v3211_v61 = vmul.f32 %v8360_v35, %v9186_v6  ;;  %v8362_v45 = vpop.eup %8361  ;;  %8381 = vrcp.f32 %v9400_v36 }
 0x508   : > { %v3381_v33 = vmul.f32 %v8362_v45, %v9191_v9  ;;  %v8364_v6 = vpop.eup %8363  ;;  %8383 = vrcp.f32 %v5279_v58 }
 0x509   : > { %7855 = vmatmul.mubr.msk.f32.vlgmr.msra.gmra.mrb[22].mxu1 %vm1138_vm7, %v2691_v4  ;;  %v3555_v55 = vmul.f32 %v8364_v6, %v9196_v23  ;;  %v8366_v57 = vpop.eup %8365  ;;  %8385 = vrcp.f32 %v5449_v14 }
 0x50a   : > { %7863 = vmatpush3.msk.msra.mxu1 %vm1142_vm5, %v2867_v5  ;;  %7864 = vmatprep.mubr.msk.f32.mxu1 %vm8441_vm3, %v8440_v25  ;;  %v3729_v9 = vmul.f32 %v8366_v57, %v9202_v47  ;;  %v8368_v23 = vpop.eup %8367  ;;  %v5797_v11 = vpop.xlane.xlu0 %5796  ;;  %8387 = vrcp.f32 %v5623_v1 }
 0x50b   : > { %v3557_v34 = vpop.permute.xlu1 %3556  ;;  %7872 = vmatprep.subr.mxu1 %v8440_v25  ;;  %v3901_v56 = vmul.f32 %v8368_v23, %v9207_v42  ;;  %v8370_v47 = vpop.eup %8369  ;;  %8389 = vrcp.f32 %v5797_v11 }
 0x50c   : > { %v4071_v62 = vmul.f32 %v8370_v47, %v9212_v27  ;;  %v8372_v42 = vpop.eup %8371 }
 0x50d   : > { %7865 = vmatmul.mubr.msk.f32.vlgmr.msra.gmra.mrb[24].mxu1 %vm1138_vm7, %v2865_v60  ;;  %v4245_v29 = vmul.f32 %v8372_v42, %v9219_v63  ;;  %v8374_v22 = vpop.eup %8373 }
 0x50e   : > { %7873 = vmatpush3.msk.msra.mxu1 %vm1142_vm5, %v3041_v24  ;;  %7874 = vmatprep.mubr.msk.f32.mxu1 %vm8441_vm3, %v8440_v25  ;;  %v4419_v41 = vmul.f32 %v8374_v22, %v9224_v28  ;;  %v8376_v3 = vpop.eup %8375  ;;  %v5969_v63 = vpop.xlane.xlu0 %5968 }
 0x50f   : > { %v3731_v52 = vpop.permute.xlu1 %3730  ;;  %7882 = vmatprep.subr.mxu1 %v8440_v25  ;;  %v4591_v12 = vmul.f32 %v8376_v3, %v9229_v8  ;;  %v8378_v7 = vpop.eup %8377  ;;  %8391 = vrcp.f32 %v5969_v63 }
 0x510   : > { %v4761_v28 = vmul.f32 %v8378_v7, %v9234_v13  ;;  %v8380_v24 = vpop.eup %8379 }
 0x511   : > { %7875 = vmatmul.mubr.msk.f32.vlgmr.msra.gmra.mrb[26].mxu1 %vm1138_vm7, %v3039_v20  ;;  %v4935_v8 = vmul.f32 %v8380_v24, %v9239_v21  ;;  %v8382_v0 = vpop.eup %8381 }
 0x512   : > { %7883 = vmatpush3.msk.msra.mxu1 %vm1142_vm5, %v3213_v39  ;;  %7884 = vmatprep.mubr.msk.f32.mxu1 %vm8441_vm3, %v8440_v25  ;;  %v6139_v5 = vpop.xlane.xlu0 %6138  ;;  %v5109_v13 = vmul.f32 %v8382_v0, %v9246_v49  ;;  %v8384_v16 = vpop.eup %8383 }
 0x513   : > { %v3903_v15 = vpop.permute.xlu1 %3902  ;;  %7892 = vmatprep.subr.mxu1 %v8440_v25  ;;  %v5281_v21 = vmul.f32 %v8384_v16, %v9253_v38  ;;  %v8386_v26 = vpop.eup %8385  ;;  %8393 = vrcp.f32 %v6139_v5 }
 0x514   : > { %v5451_v49 = vmul.f32 %v8386_v26, %v9258_v32  ;;  %v8388_v18 = vpop.eup %8387 }
 0x515   : > { %7885 = vmatmul.mubr.msk.f32.vlgmr.msra.gmra.mrb[28].mxu1 %vm1138_vm7, %v3211_v61  ;;  %v8390_v43 = vpop.eup %8389 }
 0x516   : > { %7893 = vmatpush3.msk.msra.mxu1 %vm1142_vm5, %v3383_v31  ;;  %7894 = vmatprep.mubr.msk.f32.mxu1 %vm8441_vm3, %v8440_v25  ;;  %v6313_v54 = vpop.xlane.xlu0 %6312 }
 0x517   : > { %v4073_v51 = vpop.permute.xlu1 %4072  ;;  %7902 = vmatprep.subr.mxu1 %v8440_v25  ;;  %8395 = vrcp.f32 %v6313_v54 }
 0x519   : > { %7895 = vmatmul.mubr.msk.f32.vlgmr.msra.gmra.mrb[30].mxu1 %vm1138_vm7, %v3381_v33 }
 0x51a   : > { %7903 = vmatpush3.msk.msra.mxu1 %vm1142_vm5, %v3557_v34  ;;  %7904 = vmatprep.mubr.msk.f32.mxu1 %vm8441_vm3, %v8440_v25  ;;  %v6487_v4 = vpop.xlane.xlu0 %6486  ;;  %v5625_v34 = vmul.f32 %v8388_v18, %v9263_v19  ;;  %v8392_v19 = vpop.eup %8391 }
 0x51b   : > { %v4247_v2 = vpop.permute.xlu1 %4246  ;;  %7912 = vmatprep.subr.mxu1 %v8440_v25  ;;  %8397 = vrcp.f32 %v6487_v4 }
 0x51d   : > { %7905 = vmatmul.mubr.msk.f32.vlgmr.msra.gmra.mrb[32].mxu1 %vm1138_vm7, %v3555_v55  ;;  %v8394_v45 = vpop.eup %8393 }
 0x51e   : > { %7913 = vmatpush3.msk.msra.mxu1 %vm1142_vm5, %v3731_v52  ;;  %7914 = vmatprep.mubr.msk.f32.mxu1 %vm8441_vm3, %v8440_v25  ;;  %v5627_v38 = vpop.permute.xlu0 %5626  ;;  %v5799_v52 = vmul.f32 %v8390_v43, %v9274_v37 }
 0x51f   : > { %v4421_v53 = vpop.permute.xlu1 %4420  ;;  %7922 = vmatprep.subr.mxu1 %v8440_v25 }
 0x521   : > { %7915 = vmatmul.mubr.msk.f32.vlgmr.msra.gmra.mrb[34].mxu1 %vm1138_vm7, %v3729_v9 }
 0x522   : > { %7923 = vmatpush3.msk.msra.mxu1 %vm1142_vm5, %v3903_v15  ;;  %7924 = vmatprep.mubr.msk.f32.mxu1 %vm8441_vm3, %v8440_v25  ;;  %v5971_v15 = vmul.f32 %v8392_v19, %v9286_v48  ;;  %v8396_v48 = vpop.eup %8395 }
 0x523   : > { %v4593_v17 = vpop.permute.xlu1 %4592  ;;  %7932 = vmatprep.subr.mxu1 %v8440_v25  ;;  %v6315_v55 = vmul.f32 %v8396_v48, %v9310_v40 }
 0x525   : > { %7925 = vmatmul.mubr.msk.f32.vlgmr.msra.gmra.mrb[36].mxu1 %vm1138_vm7, %v3901_v56 }
 0x526   : > { %7933 = vmatpush3.msk.msra.mxu1 %vm1142_vm5, %v4073_v51  ;;  %7934 = vmatprep.mubr.msk.f32.mxu1 %vm8441_vm3, %v8440_v25  ;;  %v6141_v51 = vmul.f32 %v8394_v45, %v9298_v10  ;;  %v8398_v10 = vpop.eup %8397 }
 0x527   : > { %v4763_v59 = vpop.permute.xlu1 %4762  ;;  %7942 = vmatprep.subr.mxu1 %v8440_v25  ;;  %v6489_v57 = vmul.f32 %v8398_v10, %v9316_v50 }
 0x529   : > { %7935 = vmatmul.mubr.msk.f32.vlgmr.msra.gmra.mrb[38].mxu1 %vm1138_vm7, %v4071_v62 }
 0x52a   : > { %7943 = vmatpush3.msk.msra.mxu1 %vm1142_vm5, %v4247_v2  ;;  %7944 = vmatprep.mubr.msk.f32.mxu1 %vm8441_vm3, %v8440_v25 }
 0x52b   : > { %7952 = vmatprep.subr.mxu1 %v8440_v25  ;;  %v4937_v27 = vpop.permute.xlu1 %4936 }
 0x52d   : > { %7945 = vmatmul.mubr.msk.f32.vlgmr.msra.gmra.mrb[40].mxu1 %vm1138_vm7, %v4245_v29 }
 0x52e   : > { %7953 = vmatpush3.msk.msra.mxu1 %vm1142_vm5, %v4421_v53  ;;  %7954 = vmatprep.mubr.msk.f32.mxu1 %vm8441_vm3, %v8440_v25 }
 0x52f   : > { %7962 = vmatprep.subr.mxu1 %v8440_v25  ;;  %v5111_v30 = vpop.permute.xlu1 %5110 }
 0x531   : > { %7955 = vmatmul.mubr.msk.f32.vlgmr.msra.gmra.mrb[42].mxu1 %vm1138_vm7, %v4419_v41 }
 0x532   : > { %7963 = vmatpush3.msk.msra.mxu1 %vm1142_vm5, %v4593_v17  ;;  %7964 = vmatprep.mubr.msk.f32.mxu1 %vm8441_vm3, %v8440_v25 }
 0x533   : > { %7972 = vmatprep.subr.mxu1 %v8440_v25  ;;  %v5283_v46 = vpop.permute.xlu1 %5282 }
 0x535   : > { %7965 = vmatmul.mubr.msk.f32.vlgmr.msra.gmra.mrb[44].mxu1 %vm1138_vm7, %v4591_v12 }
 0x536   : > { %7973 = vmatpush3.msk.msra.mxu1 %vm1142_vm5, %v4763_v59  ;;  %7974 = vmatprep.mubr.msk.f32.mxu1 %vm8441_vm3, %v8440_v25 }
 0x537   : > { %7982 = vmatprep.subr.mxu1 %v8440_v25  ;;  %v5453_v39 = vpop.permute.xlu1 %5452 }
 0x539   : > { %7975 = vmatmul.mubr.msk.f32.vlgmr.msra.gmra.mrb[46].mxu1 %vm1138_vm7, %v4761_v28 }
 0x53a   : > { %7983 = vmatpush3.msk.msra.mxu1 %vm1142_vm5, %v4937_v27  ;;  %7984 = vmatprep.mubr.msk.f32.mxu1 %vm8441_vm3, %v8440_v25 }
 0x53b   : > { %7992 = vmatprep.subr.mxu1 %v8440_v25  ;;  %v5801_v31 = vpop.permute.xlu1 %5800 }
 0x53d   : > { %7985 = vmatmul.mubr.msk.f32.vlgmr.msra.gmra.mrb[48].mxu1 %vm1138_vm7, %v4935_v8 }
 0x53e   : > { %7993 = vmatpush3.msk.msra.mxu1 %vm1142_vm5, %v5111_v30  ;;  %7994 = vmatprep.mubr.msk.f32.mxu1 %vm8441_vm3, %v8440_v25 }
 0x53f   : > { %8002 = vmatprep.subr.mxu1 %v8440_v25  ;;  %v5973_v44 = vpop.permute.xlu1 %5972 }
 0x541   : > { %7995 = vmatmul.mubr.msk.f32.vlgmr.msra.gmra.mrb[50].mxu1 %vm1138_vm7, %v5109_v13 }
 0x542   : > { %8003 = vmatpush3.msk.msra.mxu1 %vm1142_vm5, %v5283_v46  ;;  %8004 = vmatprep.mubr.msk.f32.mxu1 %vm8441_vm3, %v8440_v25 }
 0x543   : > { %8012 = vmatprep.subr.mxu1 %v8440_v25  ;;  %v6143_v61 = vpop.permute.xlu1 %6142 }
 0x545   : > { %8005 = vmatmul.mubr.msk.f32.vlgmr.msra.gmra.mrb[52].mxu1 %vm1138_vm7, %v5281_v21 }
 0x546   : > { %8013 = vmatpush3.msk.msra.mxu1 %vm1142_vm5, %v5453_v39  ;;  %8014 = vmatprep.mubr.msk.f32.mxu1 %vm8441_vm3, %v8440_v25 }
 0x547   : > { %8022 = vmatprep.subr.mxu1 %v8440_v25  ;;  %v6317_v6 = vpop.permute.xlu1 %6316 }
 0x549   : > { %8015 = vmatmul.mubr.msk.f32.vlgmr.msra.gmra.mrb[54].mxu1 %vm1138_vm7, %v5451_v49 }
 0x54a   : > { %8023 = vmatpush3.msk.msra.mxu1 %vm1142_vm5, %v5627_v38  ;;  %v1211_v60 = vpop.f32.mrb[4].mxu1  ;;  %8024 = vmatprep.mubr.msk.f32.mxu1 %vm8441_vm3, %v8440_v25 }
 0x54b   : > { %1216 = vst.msk [vmem:[#allocation4] sm:$0x3] %vm1215_vm8, %v1211_v60  ;;  %v7766_v32 = vpop.f32.mrb[5].mxu1  ;;  %8032 = vmatprep.subr.mxu1 %v8440_v25  ;;  %v6491_v2 = vpop.permute.xlu1 %6490 }
 0x54d   : > { %8025 = vmatmul.mubr.msk.f32.vlgmr.msra.gmra.mrb[56].mxu1 %vm1138_vm7, %v5625_v34 }
 0x54e   : > { %8033 = vmatpush3.msk.msra.mxu1 %vm1142_vm5, %v5801_v31  ;;  %v1382_v20 = vpop.f32.mrb[6].mxu1  ;;  %8034 = vmatprep.mubr.msk.f32.mxu1 %vm8441_vm3, %v8440_v25 }
 0x54f   : > { %v7776_v35 = vpop.f32.mrb[7].mxu1  ;;  %1387 = vrot.lane.b32.xlu0 %v1382_v20, %s8453_s17  ;;  %8042 = vmatprep.subr.mxu1 %v8440_v25 }
 0x551   : > { %8035 = vmatmul.mubr.msk.f32.vlgmr.msra.gmra.mrb[58].mxu1 %vm1138_vm7, %v5799_v52 }
 0x552   : > { %8043 = vmatpush3.msk.msra.mxu1 %vm1142_vm5, %v5973_v44  ;;  %v1557_v36 = vpop.f32.mrb[8].mxu1  ;;  %8044 = vmatprep.mubr.msk.f32.mxu1 %vm8441_vm3, %v8440_v25 }
 0x553   : > { %v7786_v37 = vpop.f32.mrb[9].mxu1  ;;  %1562 = vrot.lane.b32.xlu0 %v1557_v36, %s8454_s20  ;;  %8052 = vmatprep.subr.mxu1 %v8440_v25 }
 0x555   : > { %8045 = vmatmul.mubr.msk.f32.vlgmr.msra.gmra.mrb[60].mxu1 %vm1138_vm7, %v5971_v15 }
 0x556   : > { %8053 = vmatpush3.msk.msra.mxu1 %vm1142_vm5, %v6143_v61  ;;  %v1732_v33 = vpop.f32.mrb[10].mxu1  ;;  %8054 = vmatprep.mubr.msk.f32.mxu1 %vm8441_vm3, %v8440_v25 }
 0x557   : > { %v7796_v58 = vpop.f32.mrb[11].mxu1  ;;  %1737 = vrot.lane.b32.xlu0 %v1732_v33, %s8455_s23  ;;  %8062 = vmatprep.subr.mxu1 %v8440_v25  ;;  %v6574_v33 = vld [vmem:[%s8598_s3] sm:$0xff] }
 0x559   : > { %8055 = vmatmul.mubr.msk.f32.vlgmr.msra.gmra.mrb[62].mxu1 %vm1138_vm7, %v6141_v51  ;;  %v6575_v51 = vld [vmem:[%s8598_s3 + $0x8] sm:$0xff] }
 0x55a   : > { %8063 = vmatpush3.msk.msra.mxu1 %vm1142_vm5, %v6317_v6  ;;  %8064 = vmatprep.mubr.msk.f32.mxu1 %vm8441_vm3, %v8440_v25  ;;  %v6576_v6 = vld [vmem:[%s8598_s3 + $0x10] sm:$0xff]  ;;  %v8179_v48 = vpack.c.bf16 %v6575_v51, %v6574_v33  ;;  %v6810_v33 = vld [vmem:[%s8625_s19 + $0x18] sm:$0xff] }
 0x55b   : > { %8072 = vmatprep.subr.mxu1 %v8440_v25 }
 0x55d   : > { %8065 = vmatmul.mubr.msk.f32.vlgmr.msra.gmra.mrb[64].mxu1 %vm1138_vm7, %v6315_v55  ;;  %v6577_v55 = vld [vmem:[%s8598_s3 + $0x18] sm:$0xff] }
 0x55e   : > { %8073 = vmatpush3.msk.msra.mxu1 %vm1142_vm5, %v6491_v2  ;;  %8074 = vmatprep.mubr.msk.f32.mxu1 %vm8441_vm3, %v8440_v25  ;;  %v8183_v10 = vpack.c.bf16 %v6577_v55, %v6576_v6  ;;  %v6811_v6 = vld [vmem:[%s8625_s19 + $0x20] sm:$0xff]  ;;  %v6813_v55 = vld [vmem:[%s8625_s19 + $0x30] sm:$0xff] }
 0x55f   : > { %8180 = vmatprep.subr.bf16.mxu1 %v8179_v48 }
 0x561   : > { %8075 = vmatmul.mubr.msk.f32.vlgmr.msra.gmra.mrb[66].mxu1 %vm1138_vm7, %v6489_v57 }
 0x562   : > { %8182 = vmatpush3.bf16.msra.mxu1 %v8179_v48 }
 0x563   : > { %8184 = vmatprep.subr.bf16.mxu1 %v8183_v10 }
 0x566   : > { %8186 = vmatpush3.bf16.msra.mxu1 %v8183_v10  ;;  %v6814_v10 = vld [vmem:[%s8625_s19 + $0x38] sm:$0xff] }
 0x59b   : > { %v1905_v9 = vpop.f32.mrb[12].mxu1 }
 0x59c   : > { %1909 = vst.msk [vmem:[#allocation4 + $0x2] sm:$0x3] %vm1215_vm8, %v1905_v9  ;;  %v7806_v14 = vpop.f32.mrb[13].mxu1 }
 0x59f   : > { %v2075_v40 = vpop.f32.mrb[14].mxu1 }
 0x5a0   : > { %2080 = vrot.lane.b32.xlu1 %v2075_v40, %s8453_s17  ;;  %v7816_v53 = vpop.f32.mrb[15].mxu1 }
 0x5a3   : > { %v2249_v23 = vpop.f32.mrb[16].mxu1 }
 0x5a4   : > { %2254 = vrot.lane.b32.xlu1 %v2249_v23, %s8454_s20  ;;  %v7826_v56 = vpop.f32.mrb[17].mxu1 }
 0x5a7   : > { %v2423_v17 = vpop.f32.mrb[18].mxu1 }
 0x5a8   : > { %2428 = vrot.lane.b32.xlu1 %v2423_v17, %s8455_s23  ;;  %v7836_v25 = vpop.f32.mrb[19].mxu1 }
 0x5c1   : > { %v1388_v50 = vpop.permute.xlu0 %1387 }
 0x5c2   : > { %1391 = vst.msk [vmem:[#allocation4] sm:$0x3] %vm1390_vm9, %v1388_v50 }
 0x5c5   : > { %v1563_v47 = vpop.permute.xlu0 %1562 }
 0x5c6   : > { %1566 = vst.msk [vmem:[#allocation4] sm:$0x3] %vm1565_vm10, %v1563_v47 }
 0x5c9   : > { %v1738_v1 = vpop.permute.xlu0 %1737 }
 0x5ca   : > { %1741 = vst.msk [vmem:[#allocation4] sm:$0x3] %vm1740_vm11, %v1738_v1 }
 0x5d8   : > { %v2595_v62 = vpop.f32.mrb[20].mxu1 }
 0x5d9   : > { %2599 = vst.msk [vmem:[#allocation4 + $0x4] sm:$0x3] %vm1215_vm8, %v2595_v62  ;;  %v7846_v59 = vpop.f32.mrb[21].mxu1 }
 0x5dc   : > { %v2765_v42 = vpop.f32.mrb[22].mxu1 }
 0x5dd   : > { %2770 = vrot.lane.b32.xlu0 %v2765_v42, %s8453_s17  ;;  %v7856_v29 = vpop.f32.mrb[23].mxu1 }
 0x5e0   : > { %v2939_v11 = vpop.f32.mrb[24].mxu1 }
 0x5e1   : > { %2944 = vrot.lane.b32.xlu0 %v2939_v11, %s8454_s20  ;;  %v7866_v22 = vpop.f32.mrb[25].mxu1 }
 0x5e4   : > { %v3113_v27 = vpop.f32.mrb[26].mxu1 }
 0x5e5   : > { %3118 = vrot.lane.b32.xlu0 %v3113_v27, %s8455_s23  ;;  %v7876_v41 = vpop.f32.mrb[27].mxu1 }
 0x5e8   : > { %v3285_v3 = vpop.f32.mrb[28].mxu1 }
 0x5e9   : > { %3289 = vst.msk [vmem:[#allocation4 + $0x6] sm:$0x3] %vm1215_vm8, %v3285_v3  ;;  %v7886_v63 = vpop.f32.mrb[29].mxu1 }
 0x5ec   : > { %v3455_v12 = vpop.f32.mrb[30].mxu1 }
 0x5ed   : > { %3460 = vrot.lane.b32.xlu1 %v3455_v12, %s8453_s17  ;;  %v7896_v30 = vpop.f32.mrb[31].mxu1 }
 0x5f0   : > { %v3629_v7 = vpop.f32.mrb[32].mxu1 }
 0x5f1   : > { %3634 = vrot.lane.b32.xlu1 %v3629_v7, %s8454_s20  ;;  %v7906_v28 = vpop.f32.mrb[33].mxu1 }
 0x5f2   : > { %v7522_v28 = vld [vmem:[%s9763_s24] ss:$0 sm:$0xff]  ;;  %s9766_s24 = scalar_lea.vmem %s9725_s15, %s8583_s29  ;;  %s9769_s29 = sld [smem:[#allocation16_spill]] (!%p7533_p5) }
 0x5f4   : > { %v3803_v5 = vpop.f32.mrb[34].mxu1 }
 0x5f5   : > { %3808 = vrot.lane.b32.xlu1 %v3803_v5, %s8455_s23  ;;  %v7916_v24 = vpop.f32.mrb[35].mxu1 }
 0x5f8   : > { %v3975_v46 = vpop.f32.mrb[36].mxu1 }
 0x5f9   : > { %3979 = vst.msk [vmem:[#allocation4 + $0x8] sm:$0x3] %vm1215_vm8, %v3975_v46  ;;  %v7926_v8 = vpop.f32.mrb[37].mxu1 }
 0x5fc   : > { %v4145_v0 = vpop.f32.mrb[38].mxu1 }
 0x5fd   : > { %4150 = vrot.lane.b32.xlu0 %v4145_v0, %s8453_s17  ;;  %v7936_v54 = vpop.f32.mrb[39].mxu1  ;;  %v8430_v0 = vld [vmem:[#allocation2 + $0x8] sm:$0xff] }
 0x600   : > { %v4319_v13 = vpop.f32.mrb[40].mxu1 }
 0x601   : > { %4324 = vrot.lane.b32.xlu0 %v4319_v13, %s8454_s20  ;;  %v7946_v39 = vpop.f32.mrb[41].mxu1  ;;  %v8431_v13 = vld [vmem:[#allocation2] sm:$0xff] }
 0x604   : > { %v4493_v16 = vpop.f32.mrb[42].mxu1 }
 0x605   : > { %4498 = vrot.lane.b32.xlu0 %v4493_v16, %s8455_s23  ;;  %v7956_v21 = vpop.f32.mrb[43].mxu1 }
 0x608   : > { %v4665_v4 = vpop.f32.mrb[44].mxu1 }
 0x609   : > { %4669 = vst.msk [vmem:[#allocation4 + $0xa] sm:$0x3] %vm1215_vm8, %v4665_v4  ;;  %v7966_v26 = vpop.f32.mrb[45].mxu1 }
 0x60c   : > { %v4835_v31 = vpop.f32.mrb[46].mxu1 }
 0x60d   : > { %4840 = vrot.lane.b32.xlu1 %v4835_v31, %s8453_s17  ;;  %v7976_v49 = vpop.f32.mrb[47].mxu1 }
 0x610   : > { %v5009_v18 = vpop.f32.mrb[48].mxu1 }
 0x611   : > { %5014 = vrot.lane.b32.xlu1 %v5009_v18, %s8454_s20  ;;  %v7986_v38 = vpop.f32.mrb[49].mxu1 }
 0x612   : > { %v2081_v60 = vpop.permute.xlu1 %2080 }
 0x613   : > { %2083 = vst.msk [vmem:[#allocation4 + $0x2] sm:$0x3] %vm1390_vm9, %v2081_v60 }
 0x614   : > { %v5183_v34 = vpop.f32.mrb[50].mxu1 }
 0x615   : > { %5188 = vrot.lane.b32.xlu1 %v5183_v34, %s8455_s23  ;;  %v7996_v44 = vpop.f32.mrb[51].mxu1 }
 0x616   : > { %v2255_v32 = vpop.permute.xlu1 %2254 }
 0x617   : > { %2257 = vst.msk [vmem:[#allocation4 + $0x2] sm:$0x3] %vm1565_vm10, %v2255_v32 }
 0x618   : > { %v5355_v43 = vpop.f32.mrb[52].mxu1 }
 0x619   : > { %5359 = vst.msk [vmem:[#allocation4 + $0xc] sm:$0x3] %vm1215_vm8, %v5355_v43  ;;  %v8006_v20 = vpop.f32.mrb[53].mxu1  ;;  %v6713_v43 = vld [vmem:[%s8615_s6] sm:$0xff] }
 0x61a   : > { %v2429_v52 = vpop.permute.xlu1 %2428  ;;  %v6714_v20 = vld [vmem:[%s8615_s6 + $0x8] sm:$0xff] }
 0x61b   : > { %2431 = vst.msk [vmem:[#allocation4 + $0x2] sm:$0x3] %vm1740_vm11, %v2429_v52  ;;  %v6715_v52 = vld [vmem:[%s8615_s6 + $0x10] sm:$0xff] }
 0x61c   : > { %v5525_v35 = vpop.f32.mrb[54].mxu1 }
 0x61d   : > { %5530 = vrot.lane.b32.xlu0 %v5525_v35, %s8453_s17  ;;  %v8016_v19 = vpop.f32.mrb[55].mxu1  ;;  %v8187_v35 = vpack.c.bf16 %v6714_v20, %v6713_v43 }
 0x61e   : > { %v6716_v19 = vld [vmem:[%s8615_s6 + $0x18] sm:$0xff]  ;;  %s9768_s6 = sld [smem:[#allocation13_spill]] (!%p7533_p5) }
 0x61f   : > { %8188 = vmatprep.subr.bf16.mxu1 %v8187_v35 }
 0x620   : > { %v5699_v61 = vpop.f32.mrb[56].mxu1 }
 0x621   : > { %5704 = vrot.lane.b32.xlu0 %v5699_v61, %s8454_s20  ;;  %v8026_v36 = vpop.f32.mrb[57].mxu1  ;;  %v8191_v61 = vpack.c.bf16 %v6716_v19, %v6715_v52 }
 0x622   : > { %v6807_v36 = vld [vmem:[%s8625_s19] sm:$0xff] }
 0x624   : > { %v5873_v15 = vpop.f32.mrb[58].mxu1 }
 0x625   : > { %5878 = vrot.lane.b32.xlu0 %v5873_v15, %s8455_s23  ;;  %v8036_v37 = vpop.f32.mrb[59].mxu1  ;;  %v6808_v15 = vld [vmem:[%s8625_s19 + $0x8] sm:$0xff] }
 0x626   : > { %v6809_v37 = vld [vmem:[%s8625_s19 + $0x10] sm:$0xff] }
 0x627   : > { %v8199_v51 = vpack.c.bf16 %v6810_v33, %v6809_v37 }
 0x628   : > { %v6045_v45 = vpop.f32.mrb[60].mxu1 }
 0x629   : > { %6049 = vst.msk [vmem:[#allocation4 + $0xe] sm:$0x3] %vm1215_vm8, %v6045_v45  ;;  %v8046_v58 = vpop.f32.mrb[61].mxu1  ;;  %v8195_v45 = vpack.c.bf16 %v6808_v15, %v6807_v36 }
 0x62a   : > { %v6812_v58 = vld [vmem:[%s8625_s19 + $0x28] sm:$0xff] }
 0x62b   : > { %8196 = vmatprep.subr.bf16.mxu0 %v8195_v45  ;;  %v8203_v48 = vpack.c.bf16 %v6812_v58, %v6811_v6 }
 0x62c   : > { %v6215_v2 = vpop.f32.mrb[62].mxu1  ;;  %8198 = vmatpush3.bf16.msra.mxu0 %v8195_v45 }
 0x62d   : > { %6220 = vrot.lane.b32.xlu1 %v6215_v2, %s8453_s17  ;;  %v8056_v57 = vpop.f32.mrb[63].mxu1  ;;  %8200 = vmatprep.subr.bf16.mxu0 %v8199_v51  ;;  %v8207_v2 = vpack.c.bf16 %v6814_v10, %v6813_v55  ;;  %v7531_v55 = vld [vmem:[%s837_s5] ss:$0 sm:$0xff]  ;;  %s9770_s17 = sld [smem:[#allocation15_spill]] (!%p7533_p5) }
 0x62e   : > { %v6815_v57 = vld [vmem:[%s8625_s19 + $0x40] sm:$0xff] }
 0x630   : > { %v6389_v9 = vpop.f32.mrb[64].mxu1  ;;  %8202 = vmatpush3.bf16.msra.mxu0 %v8199_v51 }
 0x631   : > { %6394 = vrot.lane.b32.xlu1 %v6389_v9, %s8454_s20  ;;  %v8066_v14 = vpop.f32.mrb[65].mxu1  ;;  %8204 = vmatprep.subr.bf16.mxu0 %v8203_v48  ;;  %v6816_v9 = vld [vmem:[%s8625_s19 + $0x48] sm:$0xff]  ;;  %s9767_s20 = sld [smem:[#allocation14_spill]] (!%p7533_p5) }
 0x632   : > { %v8211_v14 = vpack.c.bf16 %v6816_v9, %v6815_v57  ;;  %v7532_v57 = vld [vmem:[%s9766_s24] ss:$0 sm:$0xff] }
 0x634   : > { %v6563_v40 = vpop.f32.mrb[66].mxu1  ;;  %8206 = vmatpush3.bf16.msra.mxu0 %v8203_v48 }
 0x635   : > { %6568 = vrot.lane.b32.xlu1 %v6563_v40, %s8455_s23  ;;  %v8076_v53 = vpop.f32.mrb[67].mxu1  ;;  %8208 = vmatprep.subr.bf16.mxu0 %v8207_v2  ;;  %v6817_v40 = vld [vmem:[%s8625_s19 + $0x50] sm:$0xff] }
 0x636   : > { %v6818_v53 = vld [vmem:[%s8625_s19 + $0x58] sm:$0xff] }
 0x638   : > { %8210 = vmatpush3.bf16.msra.mxu0 %v8207_v2 }
 0x639   : > { %8212 = vmatprep.subr.bf16.mxu0 %v8211_v14 }
 0x63c   : > { %8214 = vmatpush3.bf16.msra.mxu0 %v8211_v14 }
 0x64f   : > { %v2771_v23 = vpop.permute.xlu0 %2770 }
 0x650   : > { %2773 = vst.msk [vmem:[#allocation4 + $0x4] sm:$0x3] %vm1390_vm9, %v2771_v23  ;;  %v8215_v23 = vpack.c.bf16 %v6818_v53, %v6817_v40 }
 0x652   : > { %8216 = vmatprep.subr.bf16.mxu0 %v8215_v23 }
 0x653   : > { %v2945_v56 = vpop.permute.xlu0 %2944  ;;  %8218 = vmatpush3.bf16.msra.mxu0 %v8215_v23 }
 0x654   : > { %2947 = vst.msk [vmem:[#allocation4 + $0x4] sm:$0x3] %vm1565_vm10, %v2945_v56  ;;  %v6819_v56 = vld [vmem:[%s8625_s19 + $0x60] sm:$0xff] }
 0x657   : > { %v3119_v17 = vpop.permute.xlu0 %3118 }
 0x658   : > { %3121 = vst.msk [vmem:[#allocation4 + $0x4] sm:$0x3] %vm1740_vm11, %v3119_v17  ;;  %v6820_v17 = vld [vmem:[%s8625_s19 + $0x68] sm:$0xff] }
 0x65f   : > { %v3461_v25 = vpop.permute.xlu1 %3460 }
 0x660   : > { %3463 = vst.msk [vmem:[#allocation4 + $0x6] sm:$0x3] %vm1390_vm9, %v3461_v25  ;;  %v8219_v25 = vpack.c.bf16 %v6820_v17, %v6819_v56  ;;  %v6957_v56 = vld [vmem:[%s9726_s16] sm:$0xff] (!%p7533_p5)  ;;  %v6958_v17 = vld [vmem:[%s9726_s16 + $0x8] sm:$0xff] (!%p7533_p5) }
 0x662   : > { %8220 = vmatprep.subr.bf16.mxu0 %v8219_v25 }
 0x663   : > { %v3635_v50 = vpop.permute.xlu1 %3634  ;;  %8222 = vmatpush3.bf16.msra.mxu0 %v8219_v25  ;;  %v6959_v25 = vld [vmem:[%s9726_s16 + $0x10] sm:$0xff] (!%p7533_p5) }
 0x664   : > { %3637 = vst.msk [vmem:[#allocation4 + $0x6] sm:$0x3] %vm1565_vm10, %v3635_v50 }
 0x667   : > { %v3809_v47 = vpop.permute.xlu1 %3808 }
 0x668   : > { %3811 = vst.msk [vmem:[#allocation4 + $0x6] sm:$0x3] %vm1740_vm11, %v3809_v47 }
 0x66f   : > { %v4151_v1 = vpop.permute.xlu0 %4150  ;;  %v6572_v62 = vld [vmem:[#allocation4] sm:$0xff] }
 0x670   : > { %4153 = vst.msk [vmem:[#allocation4 + $0x8] sm:$0x3] %vm1390_vm9, %v4151_v1  ;;  %8085 = vmatprep.mubr.msk.f32.mxu1 %vm959_vm1, %v6572_v62 }
 0x673   : > { %v4325_v59 = vpop.permute.xlu0 %4324 }
 0x674   : > { %4327 = vst.msk [vmem:[#allocation4 + $0x8] sm:$0x3] %vm1565_vm10, %v4325_v59 }
 0x677   : > { %v4499_v42 = vpop.permute.xlu0 %4498 }
 0x678   : > { %4501 = vst.msk [vmem:[#allocation4 + $0x8] sm:$0x3] %vm1740_vm11, %v4499_v42 }
 0x67f   : > { %v4841_v29 = vpop.permute.xlu1 %4840 }
 0x680   : > { %4843 = vst.msk [vmem:[#allocation4 + $0xa] sm:$0x3] %vm1390_vm9, %v4841_v29 }
 0x683   : > { %v5015_v11 = vpop.permute.xlu1 %5014 }
 0x684   : > { %5017 = vst.msk [vmem:[#allocation4 + $0xa] sm:$0x3] %vm1565_vm10, %v5015_v11  ;;  %v7525_v11 = vld [vmem:[%s9764_s2] ss:$0 sm:$0xff] }
 0x687   : > { %v5189_v22 = vpop.permute.xlu1 %5188 }
 0x688   : > { %5191 = vst.msk [vmem:[#allocation4 + $0xa] sm:$0x3] %vm1740_vm11, %v5189_v22 }
 0x68f   : > { %v5531_v27 = vpop.permute.xlu0 %5530 }
 0x690   : > { %5533 = vst.msk [vmem:[#allocation4 + $0xc] sm:$0x3] %vm1390_vm9, %v5531_v27  ;;  %v7526_v27 = vld [vmem:[%s9765_s22] ss:$0 sm:$0xff] }
 0x693   : > { %v5705_v41 = vpop.permute.xlu0 %5704 }
 0x694   : > { %5707 = vst.msk [vmem:[#allocation4 + $0xc] sm:$0x3] %vm1565_vm10, %v5705_v41 }
 0x697   : > { %v5879_v3 = vpop.permute.xlu0 %5878 }
 0x698   : > { %5881 = vst.msk [vmem:[#allocation4 + $0xc] sm:$0x3] %vm1740_vm11, %v5879_v3 }
 0x69f   : > { %v6221_v63 = vpop.permute.xlu1 %6220 }
 0x6a0   : > { %6223 = vst.msk [vmem:[#allocation4 + $0xe] sm:$0x3] %vm1390_vm9, %v6221_v63 }
 0x6a3   : > { %v6395_v12 = vpop.permute.xlu1 %6394 }
 0x6a4   : > { %6397 = vst.msk [vmem:[#allocation4 + $0xe] sm:$0x3] %vm1565_vm10, %v6395_v12 }
 0x6a7   : > { %v6569_v30 = vpop.permute.xlu1 %6568 }
 0x6a8   : > { %6571 = vst.msk [vmem:[#allocation4 + $0xe] sm:$0x3] %vm1740_vm11, %v6569_v30 }
 0x6af   : > { %v6573_v7 = vld [vmem:[#allocation4 + $0x8] sm:$0xff] }
 0x6b0   : > { %8086 = vmatmul.mubr.msk.f32.vlgmr.msra.gmra.mrb[68].mxu1 %vm959_vm1, %v6573_v7 }
 0x6b1   : > { %8190 = vmatpush3.bf16.msra.mxu1 %v8187_v35 }
 0x6b2   : > { %8192 = vmatprep.subr.bf16.mxu1 %v8191_v61 }
 0x6b5   : > { %8194 = vmatpush3.bf16.msra.mxu1 %v8191_v61 }
 0x783   : > { %v8087_v5 = vpop.f32.mrb[68].mxu1 }
 0x784   : > { %v6663_v24 = vadd.f32 %v8087_v5, %v7522_v28  ;;  %v6657_v46 = vpop.f32.mrb[69].mxu1  ;;  %v6822_v5 = vld [vmem:[%s8625_s19 + $0x78] sm:$0xff] }
 0x785   : > { %v6658_v8 = vadd.f32 %v7522_v28, %v6657_v46  ;;  %v6821_v28 = vld [vmem:[%s8625_s19 + $0x70] sm:$0xff]  ;;  %v7527_v46 = vld [vmem:[%s826_s27] ss:$0 sm:$0xff]  ;;  %s9771_s19 = sld [smem:[#allocation17_spill]] (!%p7533_p5) }
 0x786   : > { %v6667_v54 = vadd.f32 %v8430_v0, %v6663_v24  ;;  %v8223_v24 = vpack.c.bf16 %v6822_v5, %v6821_v28  ;;  %v7145_v28 = vld [vmem:[%s9769_s29] sm:$0xff] (!%p7533_p5)  ;;  %v7146_v5 = vld [vmem:[%s9769_s29 + $0x8] sm:$0xff] (!%p7533_p5) }
 0x787   : > { %v6666_v39 = vadd.f32 %v8431_v13, %v6658_v8 }
 0x788   : > { %v6671_v16 = vsel %vm959_vm1, %v6667_v54, 0.0  ;;  %8224 = vmatprep.subr.bf16.mxu0 %v8223_v24 }
 0x789   : > { %6672 = vadd.xlane.f32.xlu1 %v6671_v16  ;;  %v6668_v21 = vsel %vm959_vm1, %v6666_v39, 0.0  ;;  %8226 = vmatpush3.bf16.msra.mxu0 %v8223_v24  ;;  %v8243_v24 = vpack.c.bf16 (!%p7533_p5), %v7146_v5, %v7145_v28 }
 0x78a   : > { %6669 = vadd.xlane.f32.xlu0 %v6668_v21  ;;  %v7530_v21 = vld [vmem:[%s834_s4] ss:$0 sm:$0xff] }
 0x816   : > { %v6673_v4 = vpop.xlane.xlu1 %6672 }
 0x817   : > { %v6676_v26 = vmul.f32 0.03125, %v6673_v4  ;;  %v6670_v31 = vpop.xlane.xlu0 %6669 }
 0x818   : > { %v6675_v49 = vmul.f32 0.03125, %v6670_v31 }
 0x819   : > { %v9592_v18 = vsub.f32 %v6667_v54, %v6676_v26 }
 0x81a   : > { %v6677_v38 = vsub.f32 %v6666_v39, %v6675_v49 }
 0x81b   : > { %v6680_v44 = vmul.f32 %v9592_v18, %v9592_v18 }
 0x81c   : > { %v6679_v60 = vmul.f32 %v6677_v38, %v6677_v38 }
 0x81d   : > { %v6684_v32 = vsel %vm959_vm1, %v6680_v44, 0.0 }
 0x81e   : > { %v6681_v34 = vsel %vm959_vm1, %v6679_v60, 0.0 }
 0x81f   : > { %6682 = vadd.xlane.f32.xlu0 %v6681_v34 }
 0x823   : > { %6685 = vadd.xlane.f32.xlu0 %v6684_v32 }
 0x8ac   : > { %v6683_v50 = vpop.xlane.xlu0 %6682 }
 0x8ad   : > { %v6687_v47 = vmul.f32 0.03125, %v6683_v50  ;;  %v8227_v50 = vpack.c.bf16 (!%p7533_p5), %v6958_v17, %v6957_v56 }
 0x8af   : > { %v6689_v1 = vadd.f32 1e-05, %v6687_v47  ;;  %v6960_v47 = vld [vmem:[%s9726_s16 + $0x18] sm:$0xff] (!%p7533_p5)  ;;  %8228 = vmatprep.subr.bf16.mxu0 (!%p7533_p5), %v8227_v50 }
 0x8b0   : > { %v6686_v62 = vpop.xlane.xlu0 %6685 }
 0x8b1   : > { %8399 = vrsqrt.f32 %v6689_v1  ;;  %v6688_v59 = vmul.f32 0.03125, %v6686_v62  ;;  %v7051_v1 = vld [vmem:[%s9767_s20] sm:$0xff] (!%p7533_p5)  ;;  %v7052_v62 = vld [vmem:[%s9767_s20 + $0x8] sm:$0xff] (!%p7533_p5) }
 0x8b3   : > { %v6690_v42 = vadd.f32 1e-05, %v6688_v59  ;;  %v8231_v59 = vpack.c.bf16 (!%p7533_p5), %v6960_v47, %v6959_v25 }
 0x8b5   : > { %8401 = vrsqrt.f32 %v6690_v42  ;;  %v8235_v42 = vpack.c.bf16 (!%p7533_p5), %v7052_v62, %v7051_v1 }
 0x8b7   : > { %8236 = vmatprep.subr.bf16.mxu1 (!%p7533_p5), %v8235_v42 }
 0x8bb   : > { %v8400_v29 = vpop.eup %8399 }
 0x8bc   : > { %v6693_v22 = vmul.f32 %v8400_v29, %v6677_v38  ;;  %v7053_v29 = vld [vmem:[%s9767_s20 + $0x10] sm:$0xff] (!%p7533_p5) }
 0x8be   : > { %v6702_v41 = vmul.f32 %v7525_v11, %v6693_v22 }
 0x8bf   : > { %v8402_v3 = vpop.eup %8401 }
 0x8c0   : > { %v6694_v63 = vmul.f32 %v8402_v3, %v9592_v18  ;;  %v6711_v12 = vadd.f32 %v7526_v27, %v6702_v41 }
 0x8c2   : > { %v6703_v30 = vmul.f32 %v7525_v11, %v6694_v63  ;;  %8096 = vmatprep.mubr.msk.f32.mxu1 %vm959_vm1, %v6711_v12  ;;  %v7054_v11 = vld [vmem:[%s9767_s20 + $0x18] sm:$0xff] (!%p7533_p5) }
 0x8c3   : > { %v8239_v22 = vpack.c.bf16 (!%p7533_p5), %v7054_v11, %v7053_v29 }
 0x8c4   : > { %v6712_v7 = vadd.f32 %v7526_v27, %v6703_v30  ;;  %v7534_v27 = vld [vmem:[%s9768_s6] ss:$0 sm:$0xff] (!%p7533_p5) }
 0x8c6   : > { %8097 = vmatmul.mubr.msk.f32.vlgmr.msra.gmra.mrb[70].mxu1 %vm959_vm1, %v6712_v7 }
 0x8c7   : > { %8238 = vmatpush3.bf16.msra.mxu1 (!%p7533_p5), %v8235_v42 }
 0x8c8   : > { %8240 = vmatprep.subr.bf16.mxu1 (!%p7533_p5), %v8239_v22 }
 0x8cb   : > { %8242 = vmatpush3.bf16.msra.mxu1 (!%p7533_p5), %v8239_v22 }
 0x999   : > { %v8098_v8 = vpop.f32.mrb[70].mxu1 }
 0x99a   : > { %v6802_v0 = vadd.f32 %v8098_v8, %v7527_v46  ;;  %v6796_v54 = vpop.f32.mrb[71].mxu1 }
 0x99b   : > { %v6797_v13 = vadd.f32 %v7527_v46, %v6796_v54  ;;  %v7537_v46 = vld [vmem:[%s9770_s17] ss:$0 sm:$0xff] (!%p7533_p5) }
 0x99c   : > { %v6806_v16 = vmax.f32 %v6802_v0, 0.0 }
 0x99d   : > { %v6805_v39 = vmax.f32 %v6797_v13, 0.0 }
 0x99f   : > { %8131 = vmatprep.mubr.f32.mxu0 %v6805_v39 }
 0x9a0   : > { %8132 = vmatmul.mubr.f32.vlgmr.msra.gmra.mrb[62].mxu0 %v6806_v16 }
 0x9a1   : > { %8230 = vmatpush3.bf16.msra.mxu0 (!%p7533_p5), %v8227_v50 }
 0x9a2   : > { %8232 = vmatprep.subr.bf16.mxu0 (!%p7533_p5), %v8231_v59 }
 0x9a5   : > { %8234 = vmatpush3.bf16.msra.mxu0 (!%p7533_p5), %v8231_v59 }
 0x9a6   : > { %8244 = vmatprep.subr.bf16.mxu0 (!%p7533_p5), %v8243_v24 }
 0xa73   : > { %v8133_v4 = vpop.f32.mrb[62].mxu0 }
 0xa74   : > { %v6902_v26 = vadd.f32 %v8133_v4, %v7530_v21  ;;  %v6896_v31 = vpop.f32.mrb[63].mxu0 }
 0xa75   : > { %v6897_v49 = vadd.f32 %v7530_v21, %v6896_v31  ;;  %v7540_v21 = vld [vmem:[%s9771_s19] ss:$0 sm:$0xff] (!%p7533_p5) }
 0xa76   : > { %v6906_v18 = vadd.f32 %v6902_v26, %v6712_v7 }
 0xa77   : > { %v6905_v38 = vadd.f32 %v6897_v49, %v6711_v12 }
 0xa78   : > { %v6910_v60 = vsel %vm959_vm1, %v6906_v18, 0.0 }
 0xa79   : > { %6911 = vadd.xlane.f32.xlu0 %v6910_v60  ;;  %v6907_v34 = vsel %vm959_vm1, %v6905_v38, 0.0 }
 0xa7a   : > { %6908 = vadd.xlane.f32.xlu1 %v6907_v34 }
 0xb06   : > { %v6912_v44 = vpop.xlane.xlu0 %6911 }
 0xb07   : > { %v6914_v32 = vmul.f32 0.03125, %v6912_v44  ;;  %v6909_v43 = vpop.xlane.xlu1 %6908 }
 0xb08   : > { %v6913_v20 = vmul.f32 0.03125, %v6909_v43 }
 0xb09   : > { %v6916_v52 = vsub.f32 %v6906_v18, %v6914_v32 }
 0xb0a   : > { %v6915_v35 = vsub.f32 %v6905_v38, %v6913_v20 }
 0xb0b   : > { %v6918_v19 = vmul.f32 %v6916_v52, %v6916_v52 }
 0xb0c   : > { %v6917_v61 = vmul.f32 %v6915_v35, %v6915_v35 }
 0xb0d   : > { %v6922_v36 = vsel %vm959_vm1, %v6918_v19, 0.0 }
 0xb0e   : > { %6923 = vadd.xlane.f32.xlu0 %v6922_v36  ;;  %v6919_v15 = vsel %vm959_vm1, %v6917_v61, 0.0 }
 0xb0f   : > { %6920 = vadd.xlane.f32.xlu1 %v6919_v15 }
 0xb9b   : > { %v6924_v37 = vpop.xlane.xlu0 %6923 }
 0xb9c   : > { %v6926_v45 = vmul.f32 0.03125, %v6924_v37  ;;  %v6921_v33 = vpop.xlane.xlu1 %6920 }
 0xb9d   : > { %v6925_v51 = vmul.f32 0.03125, %v6921_v33 }
 0xb9e   : > { %v6928_v6 = vadd.f32 1e-05, %v6926_v45 }
 0xb9f   : > { %v6927_v58 = vadd.f32 1e-05, %v6925_v51 }
 0xba0   : > { %8403 = vrsqrt.f32 %v6928_v6 }
 0xba1   : > { %8405 = vrsqrt.f32 %v6927_v58 }
 0xbaa   : > { %v8404_v48 = vpop.eup %8403 }
 0xbab   : > { %v8406_v10 = vpop.eup %8405  ;;  %v6932_v2 = vmul.f32 %v8404_v48, %v6916_v52 }
 0xbac   : > { %v6931_v9 = vmul.f32 %v8406_v10, %v6915_v35  ;;  %6956 = sbr.rel (%p7533_p5) target bundleno = 3647 (0xe3f), region = 116 }
 0xbad   : > { %v6941_v14 = vmul.f32 %v7531_v55, %v6932_v2 }
 0xbae   : > { %v6940_v40 = vmul.f32 %v7531_v55, %v6931_v9 }
 0xbaf   : > { %v6950_v53 = vadd.f32 %v7532_v57, %v6941_v14 }
 0xbb0   : > { %v6949_v23 = vadd.f32 %v7532_v57, %v6940_v40 }
 0xbb1   : > { %6952 = vst.msk [vmem:[#allocation2 + $0x8] sm:$0xff] %vm959_vm1, %v6950_v53 }
 0xbb2   : > { %6951 = vst.msk [vmem:[#allocation2] sm:$0xff] %vm959_vm1, %v6949_v23  ;;  %8142 = vmatprep.mubr.msk.f32.mxu0 (!%p7533_p5), %vm959_vm1, %v6949_v23 }
 0xbb3   : > { %8143 = vmatmul.mubr.msk.f32.vlgmr.msra.gmra.mrb[0].mxu0 %vm959_vm1, %v6950_v53 }
 0xbb4   : > { %8246 = vmatpush3.bf16.msra.mxu0 %v8243_v24 }
 0xc86   : > { %v8144_v41 = vpop.f32.mrb[0].mxu0 }
 0xc87   : > { %v7046_v3 = vadd.f32 %v8144_v41, %v7534_v27  ;;  %v7040_v63 = vpop.f32.mrb[1].mxu0 }
 0xc88   : > { %v7041_v12 = vadd.f32 %v7534_v27, %v7040_v63 }
 0xc89   : > { %v7050_v7 = vmax.f32 %v7046_v3, 0.0 }
 0xc8a   : > { %v7049_v30 = vmax.f32 %v7041_v12, 0.0 }
 0xc8c   : > { %8153 = vmatprep.mubr.msk.f32.mxu1 %vm959_vm1, %v7049_v30 }
 0xc8d   : > { %8154 = vmatmul.mubr.msk.f32.vlgmr.msra.gmra.mrb[0].mxu1 %vm959_vm1, %v7050_v7 }
 0xd60   : > { %v8155_v8 = vpop.f32.mrb[0].mxu1 }
 0xd61   : > { %v7140_v0 = vadd.f32 %v8155_v8, %v7537_v46  ;;  %v7134_v54 = vpop.f32.mrb[1].mxu1 }
 0xd62   : > { %v7135_v13 = vadd.f32 %v7537_v46, %v7134_v54 }
 0xd63   : > { %v7144_v16 = vmax.f32 %v7140_v0, 0.0 }
 0xd64   : > { %v7143_v39 = vmax.f32 %v7135_v13, 0.0 }
 0xd66   : > { %8160 = vmatprep.mubr.msk.f32.mxu0 %vm7154_vm12, %v7143_v39 }
 0xd67   : > { %8161 = vmatmul.mubr.msk.f32.vlgmr.msra.gmra.mrb[2].mxu0 %vm7154_vm12, %v7144_v16 }
 0xe3a   : > { %v8162_v4 = vpop.f32.mrb[2].mxu0 }
 0xe3b   : > { %v7233_v26 = vadd.f32 %v8162_v4, %v7540_v21  ;;  %v7227_v31 = vpop.f32.mrb[3].mxu0 }
 0xe3c   : > { %v7228_v49 = vadd.f32 %v7540_v21, %v7227_v31 }
 0xe3d   : > { %7238 = vst.msk [vmem:[%s9772_s30 + $0x8] sm:$0xff] %vm7236_vm13, %v7233_v26 }
 0xe3e   : > { %7237 = vst.msk [vmem:[%s9772_s30] sm:$0xff] %vm7236_vm13, %v7228_v49 }
 0xe3f PF: > { %s9773_s6 = sld [smem:[#allocation5_spill]] }
 0xe45   : > { %s32_s3 = sadd.s32 1, %s9773_s6  }
 0xe46   : > { %p29_p6 = scmp.ge.s32.totalorder %s32_s3, 4  }
 0xe48   :  { %31 = sbr.rel (!%p29_p6) target bundleno = 14 (0xe), region = 175 }

</bundles_post_ra>
